<compile_context>
chip_gen: v6e
topology: v6e:2x2x1
jax: 0.10.0
libtpu: 0.0.40
codegen_flags: <defaults>
</compile_context>

<pallas_src>
import jax
import jax.numpy as jnp
import numpy as np
from jax.experimental import pallas as pl
from jax.experimental.pallas import tpu as pltpu


def _bottleneck_kernel(x_ref, w1_ref, w2_ref, w3_ref, b1_ref, b2_ref, b3_ref,
                       o_ref, pad_ref, col_ref):
    # x_ref: (1, H, W, Cin) bf16 full frame for one batch element (resident
    #        across all row strips of that batch element).
    # o_ref: (1, S, W, Cout) bf16 output strip.
    _, H, W, Cin = x_ref.shape
    _, S, _, Cout = o_ref.shape
    P = w1_ref.shape[1]          # bottleneck width (planes)
    M = S * W

    r = pl.program_id(1)
    n_strips = pl.num_programs(1)
    row0 = pl.multiple_of(r * S, S)          # first output row of this strip

    # --- conv1 (1x1, BN1 scale folded into w1) + bias + relu ----------------
    xs = x_ref[:, pl.ds(row0, S), :, :].reshape(M, Cin)          # bf16
    h1 = jnp.dot(xs, w1_ref[...], preferred_element_type=jnp.float32)
    h1 = jnp.maximum(h1 + b1_ref[...], 0.0)

    # --- conv2 (3x3, stride 1, SAME) ----------------------------------------
    # Padded strip scratch (bf16): zero left/right halo columns (covers the
    # corners), then fill top/bottom halo rows (recomputed h1 of the neighbour
    # rows, or zeros at the frame border) and the interior.
    pad_ref[:, 0:1, :] = jnp.zeros((S + 2, 1, P), jnp.bfloat16)
    pad_ref[:, W + 1:W + 2, :] = jnp.zeros((S + 2, 1, P), jnp.bfloat16)

    top_src = jnp.maximum(row0 - 1, 0)
    bot_src = jnp.minimum(row0 + S, H - 1)
    x_top = x_ref[:, pl.ds(top_src, 1), :, :].reshape(W, Cin)
    x_bot = x_ref[:, pl.ds(bot_src, 1), :, :].reshape(W, Cin)
    h1_top = jnp.maximum(
        jnp.dot(x_top, w1_ref[...], preferred_element_type=jnp.float32)
        + b1_ref[...], 0.0)
    h1_bot = jnp.maximum(
        jnp.dot(x_bot, w1_ref[...], preferred_element_type=jnp.float32)
        + b1_ref[...], 0.0)
    pad_ref[0:1, 1:W + 1, :] = (
        jnp.where(r > 0, h1_top, 0.0).reshape(1, W, P).astype(jnp.bfloat16))
    pad_ref[S + 1:S + 2, 1:W + 1, :] = (
        jnp.where(r < n_strips - 1, h1_bot, 0.0)
        .reshape(1, W, P).astype(jnp.bfloat16))
    pad_ref[1:S + 1, 1:W + 1, :] = h1.reshape(S, W, P).astype(jnp.bfloat16)

    # Build the (M, 9P) im2col slab (bf16, no per-tap casts), one K=9P matmul.
    for dy in range(3):
        for dx in range(3):
            t = dy * 3 + dx
            col_ref[:, t * P:(t + 1) * P] = (
                pad_ref[dy:dy + S, dx:dx + W, :].reshape(M, P))
    h2 = jnp.dot(col_ref[...], w2_ref[...], preferred_element_type=jnp.float32)
    h2 = jnp.maximum(h2 + b2_ref[...], 0.0)

    # --- conv3 (1x1, BN3 folded) + bias, identity residual, final relu ------
    h3 = jnp.dot(h2.astype(jnp.bfloat16), w3_ref[...],
                 preferred_element_type=jnp.float32)
    # Late re-read of the residual from the VMEM-resident x block (keeps the
    # f32 residual live range short).
    res = x_ref[:, pl.ds(row0, S), :, :].reshape(M, Cin).astype(jnp.float32)
    out = jnp.maximum(h3 + b3_ref[...] + res, 0.0)
    o_ref[...] = out.reshape(1, S, W, Cout).astype(o_ref.dtype)


def _fold_bn(gamma, beta, mean, var, eps):
    s = gamma / jnp.sqrt(var + eps)
    b = beta - mean * s
    return s, b                                   # both shape (C,)


def bottleneck_forward_nhwc(x_nhwc, params, *, bn_eps=1e-5, rows_per_strip=8):
    """NHWC / bf16 hot path.  x_nhwc: (N, H, W, Cin); returns (N, H, W, Cout) bf16."""
    x = x_nhwc.astype(jnp.bfloat16)
    N, H, W, Cin = x.shape
    w1, w2, w3 = params["w1"], params["w2"], params["w3"]  # (Cin,P) (3,3,P,P) (P,Cout)
    P = w1.shape[1]
    Cout = w3.shape[1]
    # Identity residual path (stride=1, downsample=None) requires Cin == Cout.
    assert Cin == Cout, "Bottleneck without downsample needs inplanes == planes*4"

    s1, b1 = _fold_bn(params["g1"], params["be1"], params["m1"], params["v1"], bn_eps)
    s2, b2 = _fold_bn(params["g2"], params["be2"], params["m2"], params["v2"], bn_eps)
    s3, b3 = _fold_bn(params["g3"], params["be3"], params["m3"], params["v3"], bn_eps)

    # Fold BN scales into the conv weights (output-channel scaling); bf16 MXU
    # operands, f32 biases broadcast as (1, C).
    w1f = (w1 * s1[None, :]).astype(jnp.bfloat16)                                # (Cin, P)
    w2f = (w2 * s2[None, None, None, :]).reshape(9 * P, P).astype(jnp.bfloat16)  # (9P, P)
    w3f = (w3 * s3[None, :]).astype(jnp.bfloat16)                                # (P, Cout)
    b1v = b1[None, :].astype(jnp.float32)
    b2v = b2[None, :].astype(jnp.float32)
    b3v = b3[None, :].astype(jnp.float32)

    # Row-strip size: must divide H; fall back to a single full-height strip.
    S = rows_per_strip if (H % rows_per_strip == 0) else H
    n_strips = H // S

    full = lambda a: pl.BlockSpec(a.shape, lambda n, r: (0,) * a.ndim)

    out_nhwc = pl.pallas_call(
        _bottleneck_kernel,
        out_shape=jax.ShapeDtypeStruct((N, H, W, Cout), jnp.bfloat16),
        grid_spec=pltpu.PrefetchScalarGridSpec(
            num_scalar_prefetch=0,
            grid=(N, n_strips),
            in_specs=[
                # Full frame per batch element; re-DMA'd only when n changes
                # (at 56x56x256 bf16 this is ~1.6 MB, well within budget).
                pl.BlockSpec((1, H, W, Cin), lambda n, r: (n, 0, 0, 0)),
                full(w1f), full(w2f), full(w3f),
                full(b1v), full(b2v), full(b3v),
            ],
            out_specs=pl.BlockSpec((1, S, W, Cout), lambda n, r: (n, r, 0, 0)),
            scratch_shapes=[
                pltpu.VMEM((S + 2, W + 2, P), jnp.bfloat16),     # padded conv2 strip
                pltpu.VMEM((S * W, 9 * P), jnp.bfloat16),        # im2col slab
            ],
        ),
        compiler_params=pltpu.CompilerParams(
            # Both axes independent -> megacore-shardable on v7x.
            dimension_semantics=("parallel", "parallel"),
            vmem_limit_bytes=32 * 1024 * 1024,   # safe on all gens incl. v7x
        ),
    )(x, w1f, w2f, w3f, b1v, b2v, b3v)
    return out_nhwc


def bottleneck_forward(x_nchw, params, *, bn_eps=1e-5, rows_per_strip=8):
    """NCHW shim for PyTorch-layout parity.  In a full ResNet keep activations
    NHWC (bf16) between blocks and call bottleneck_forward_nhwc directly —
    each transpose here is a full HBM round trip of the activation tensor."""
    x = jnp.transpose(x_nchw, (0, 2, 3, 1))
    out = bottleneck_forward_nhwc(x, params, bn_eps=bn_eps,
                                  rows_per_strip=rows_per_strip)
    return jnp.transpose(out, (0, 3, 1, 2)).astype(jnp.float32)


# ----------------------- pure-JAX reference (for check) -----------------------
def _ref_bottleneck(x_nchw, params, *, bn_eps=1e-5):
    x = jnp.transpose(x_nchw, (0, 2, 3, 1)).astype(jnp.float32)
    s1, b1 = _fold_bn(params["g1"], params["be1"], params["m1"], params["v1"], bn_eps)
    s2, b2 = _fold_bn(params["g2"], params["be2"], params["m2"], params["v2"], bn_eps)
    s3, b3 = _fold_bn(params["g3"], params["be3"], params["m3"], params["v3"], bn_eps)

    h = jnp.einsum("nhwc,co->nhwo", x, params["w1"]) * s1[None, None, None, :] + b1
    h = jnp.maximum(h, 0.0)
    h = jax.lax.conv_general_dilated(
        h, params["w2"], window_strides=(1, 1), padding="SAME",
        dimension_numbers=("NHWC", "HWIO", "NHWC")) * s2[None, None, None, :] + b2
    h = jnp.maximum(h, 0.0)
    h = jnp.einsum("nhwc,co->nhwo", h, params["w3"]) * s3[None, None, None, :] + b3
    out = jnp.maximum(h + x, 0.0)
    return jnp.transpose(out, (0, 3, 1, 2))


def _init_params(key, inplanes, planes, expansion=4):
    cout = planes * expansion
    ks = jax.random.split(key, 16)
    return {
        # conv weights in kernel-friendly layouts:
        #   w1: (Cin, P)       (PyTorch conv1.weight (P, Cin, 1, 1))
        #   w2: (3, 3, P, P)   HWIO (PyTorch conv2.weight (P, P, 3, 3))
        #   w3: (P, Cout)      (PyTorch conv3.weight (Cout, P, 1, 1))
        "w1": 0.3 * jax.random.normal(ks[0], (inplanes, planes), jnp.float32),
        "w2": 0.1 * jax.random.normal(ks[1], (3, 3, planes, planes), jnp.float32),
        "w3": 0.3 * jax.random.normal(ks[2], (planes, cout), jnp.float32),
        "g1": 1.0 + 0.1 * jax.random.normal(ks[3], (planes,), jnp.float32),
        "be1": 0.1 * jax.random.normal(ks[4], (planes,), jnp.float32),
        "m1": 0.1 * jax.random.normal(ks[5], (planes,), jnp.float32),
        "v1": 0.5 + jnp.abs(jax.random.normal(ks[6], (planes,), jnp.float32)),
        "g2": 1.0 + 0.1 * jax.random.normal(ks[7], (planes,), jnp.float32),
        "be2": 0.1 * jax.random.normal(ks[8], (planes,), jnp.float32),
        "m2": 0.1 * jax.random.normal(ks[9], (planes,), jnp.float32),
        "v2": 0.5 + jnp.abs(jax.random.normal(ks[10], (planes,), jnp.float32)),
        "g3": 1.0 + 0.1 * jax.random.normal(ks[11], (cout,), jnp.float32),
        "be3": 0.1 * jax.random.normal(ks[12], (cout,), jnp.float32),
        "m3": 0.1 * jax.random.normal(ks[13], (cout,), jnp.float32),
        "v3": 0.5 + jnp.abs(jax.random.normal(ks[14], (cout,), jnp.float32)),
    }


if __name__ == "__main__":
    # Bottleneck(inplanes=16, planes=4, stride=1, downsample=None)
    # => identity residual requires inplanes == planes * expansion (16 == 4*4).
    # NOTE: production-shape tuning (P>=64, C>=256, H=W<=56) should be done at
    # those shapes; these small sizes only validate correctness.
    N, Cin, H, W = 2, 16, 16, 16
    planes = 4

    key = jax.random.PRNGKey(0)
    kx, kp = jax.random.split(key)
    x = jax.random.normal(kx, (N, Cin, H, W), jnp.float32)   # NCHW like PyTorch
    params = _init_params(kp, Cin, planes)

    out = jax.block_until_ready(bottleneck_forward(x, params, rows_per_strip=8))
    ref = jax.block_until_ready(_ref_bottleneck(x, params))

    assert out.shape == (N, planes * 4, H, W)
    # bf16 activations + bf16 matmul operands (f32 accumulation) -> looser
    # tolerance than the all-f32 reference (values are O(1)).
    np.testing.assert_allclose(np.asarray(out), np.asarray(ref),
                               rtol=2e-2, atol=5e-2)
    print("KERNEL_OK")
</pallas_src>

<mosaic_0001>
module attributes {stable_mosaic.version = 11 : i64} {
  func.func @_bottleneck_kernel(%arg0: i32, %arg1: i32, %arg2: memref<1x16x16x16xbf16, #tpu.memory_space<vmem>>, %arg3: memref<16x4xbf16, #tpu.memory_space<vmem>>, %arg4: memref<36x4xbf16, #tpu.memory_space<vmem>>, %arg5: memref<4x16xbf16, #tpu.memory_space<vmem>>, %arg6: memref<1x4xf32, #tpu.memory_space<vmem>>, %arg7: memref<1x4xf32, #tpu.memory_space<vmem>>, %arg8: memref<1x16xf32, #tpu.memory_space<vmem>>, %arg9: memref<1x8x16x16xbf16, #tpu.memory_space<vmem>>, %arg10: memref<10x18x4xbf16, #tpu.memory_space<vmem>>, %arg11: memref<128x36xbf16, #tpu.memory_space<vmem>>) attributes {dimension_semantics = [#tpu.dimension_semantics<parallel>, #tpu.dimension_semantics<parallel>], iteration_bounds = array<i64: 2, 2>, scalar_prefetch = 0 : i64, scratch_operands = 2 : i64, tpu.core_type = #tpu.core_type<tc>, window_params = [{transform_indices = @transform_0, window_bounds = array<i64: 1, 16, 16, 16>}, {pipeline_mode = #tpu.pipeline_mode<synchronous>, transform_indices = @transform_1, window_bounds = array<i64: 16, 4>}, {pipeline_mode = #tpu.pipeline_mode<synchronous>, transform_indices = @transform_2, window_bounds = array<i64: 36, 4>}, {pipeline_mode = #tpu.pipeline_mode<synchronous>, transform_indices = @transform_3, window_bounds = array<i64: 4, 16>}, {pipeline_mode = #tpu.pipeline_mode<synchronous>, transform_indices = @transform_4, window_bounds = array<i64: 1, 4>}, {pipeline_mode = #tpu.pipeline_mode<synchronous>, transform_indices = @transform_5, window_bounds = array<i64: 1, 4>}, {pipeline_mode = #tpu.pipeline_mode<synchronous>, transform_indices = @transform_6, window_bounds = array<i64: 1, 16>}, {transform_indices = @transform_7, window_bounds = array<i64: 1, 8, 16, 16>}]} {
    %c8_i32 = arith.constant 8 : i32
    %0 = arith.muli %arg1, %c8_i32 : i32
    %1 = tpu.assume_multiple %0, 8 : i32
    %c0 = arith.constant 0 : index
    %2 = arith.index_cast %1 : i32 to index
    %c0_0 = arith.constant 0 : index
    %c0_1 = arith.constant 0 : index
    %3 = vector.load %arg2[%c0, %2, %c0_0, %c0_1] : memref<1x16x16x16xbf16, #tpu.memory_space<vmem>>, vector<1x8x16x16xbf16>
    %4 = vector.shape_cast %3 : vector<1x8x16x16xbf16> to vector<128x16xbf16>
    %c0_2 = arith.constant 0 : index
    %c0_3 = arith.constant 0 : index
    %5 = vector.load %arg3[%c0_2, %c0_3] : memref<16x4xbf16, #tpu.memory_space<vmem>>, vector<16x4xbf16>
    %cst = arith.constant dense<0.000000e+00> : vector<128x4xf32>
    %6 = tpu.matmul %4, %5, %cst {dimension_numbers = #tpu.dot_dimension_numbers<[1], [0], [0], [1], [0, 0, 1, 1], [], []>} : vector<128x16xbf16>, vector<16x4xbf16>, vector<128x4xf32> -> vector<128x4xf32>
    %c0_4 = arith.constant 0 : index
    %c0_5 = arith.constant 0 : index
    %7 = vector.load %arg6[%c0_4, %c0_5] : memref<1x4xf32, #tpu.memory_space<vmem>>, vector<1x4xf32>
    %8 = vector.broadcast %7 : vector<1x4xf32> to vector<128x4xf32>
    %9 = arith.addf %6, %8 : vector<128x4xf32>
    %cst_6 = arith.constant 0.000000e+00 : f32
    %10 = vector.broadcast %cst_6 : f32 to vector<128x4xf32>
    %11 = arith.maximumf %9, %10 : vector<128x4xf32>
    %cst_7 = arith.constant 0.000000e+00 : bf16
    %12 = vector.broadcast %cst_7 : bf16 to vector<10x1x4xbf16>
    %c0_8 = arith.constant 0 : index
    %c0_9 = arith.constant 0 : index
    %c0_10 = arith.constant 0 : index
    %13 = vector.load %arg10[%c0_8, %c0_9, %c0_10] : memref<10x18x4xbf16, #tpu.memory_space<vmem>>, vector<10x1x4xbf16>
    tpu.vector_store %arg10[%c0_8, %c0_9, %c0_10], %12 {strides = array<i32>} : memref<10x18x4xbf16, #tpu.memory_space<vmem>>, vector<10x1x4xbf16>,
    %cst_11 = arith.constant 0.000000e+00 : bf16
    %14 = vector.broadcast %cst_11 : bf16 to vector<10x1x4xbf16>
    %c0_12 = arith.constant 0 : index
    %c17 = arith.constant 17 : index
    %c0_13 = arith.constant 0 : index
    %15 = vector.load %arg10[%c0_12, %c17, %c0_13] : memref<10x18x4xbf16, #tpu.memory_space<vmem>>, vector<10x1x4xbf16>
    tpu.vector_store %arg10[%c0_12, %c17, %c0_13], %14 {strides = array<i32>} : memref<10x18x4xbf16, #tpu.memory_space<vmem>>, vector<10x1x4xbf16>,
    %c1_i32 = arith.constant 1 : i32
    %16 = arith.subi %1, %c1_i32 : i32
    %c0_i32 = arith.constant 0 : i32
    %17 = arith.maxsi %16, %c0_i32 : i32
    %c8_i32_14 = arith.constant 8 : i32
    %18 = arith.addi %1, %c8_i32_14 : i32
    %c15_i32 = arith.constant 15 : i32
    %19 = arith.minsi %18, %c15_i32 : i32
    %c0_15 = arith.constant 0 : index
    %20 = arith.index_cast %17 : i32 to index
    %c0_16 = arith.constant 0 : index
    %c0_17 = arith.constant 0 : index
    %21 = vector.load %arg2[%c0_15, %20, %c0_16, %c0_17] : memref<1x16x16x16xbf16, #tpu.memory_space<vmem>>, vector<1x1x16x16xbf16>
    %22 = vector.shape_cast %21 : vector<1x1x16x16xbf16> to vector<16x16xbf16>
    %c0_18 = arith.constant 0 : index
    %23 = arith.index_cast %19 : i32 to index
    %c0_19 = arith.constant 0 : index
    %c0_20 = arith.constant 0 : index
    %24 = vector.load %arg2[%c0_18, %23, %c0_19, %c0_20] : memref<1x16x16x16xbf16, #tpu.memory_space<vmem>>, vector<1x1x16x16xbf16>
    %25 = vector.shape_cast %24 : vector<1x1x16x16xbf16> to vector<16x16xbf16>
    %c0_21 = arith.constant 0 : index
    %c0_22 = arith.constant 0 : index
    %26 = vector.load %arg3[%c0_21, %c0_22] : memref<16x4xbf16, #tpu.memory_space<vmem>>, vector<16x4xbf16>
    %cst_23 = arith.constant dense<0.000000e+00> : vector<16x4xf32>
    %27 = tpu.matmul %22, %26, %cst_23 {dimension_numbers = #tpu.dot_dimension_numbers<[1], [0], [0], [1], [0, 0, 1, 1], [], []>} : vector<16x16xbf16>, vector<16x4xbf16>, vector<16x4xf32> -> vector<16x4xf32>
    %c0_24 = arith.constant 0 : index
    %c0_25 = arith.constant 0 : index
    %28 = vector.load %arg6[%c0_24, %c0_25] : memref<1x4xf32, #tpu.memory_space<vmem>>, vector<1x4xf32>
    %29 = vector.broadcast %28 : vector<1x4xf32> to vector<16x4xf32>
    %30 = arith.addf %27, %29 : vector<16x4xf32>
    %cst_26 = arith.constant 0.000000e+00 : f32
    %31 = vector.broadcast %cst_26 : f32 to vector<16x4xf32>
    %32 = arith.maximumf %30, %31 : vector<16x4xf32>
    %c0_27 = arith.constant 0 : index
    %c0_28 = arith.constant 0 : index
    %33 = vector.load %arg3[%c0_27, %c0_28] : memref<16x4xbf16, #tpu.memory_space<vmem>>, vector<16x4xbf16>
    %cst_29 = arith.constant dense<0.000000e+00> : vector<16x4xf32>
    %34 = tpu.matmul %25, %33, %cst_29 {dimension_numbers = #tpu.dot_dimension_numbers<[1], [0], [0], [1], [0, 0, 1, 1], [], []>} : vector<16x16xbf16>, vector<16x4xbf16>, vector<16x4xf32> -> vector<16x4xf32>
    %c0_30 = arith.constant 0 : index
    %c0_31 = arith.constant 0 : index
    %35 = vector.load %arg6[%c0_30, %c0_31] : memref<1x4xf32, #tpu.memory_space<vmem>>, vector<1x4xf32>
    %36 = vector.broadcast %35 : vector<1x4xf32> to vector<16x4xf32>
    %37 = arith.addf %34, %36 : vector<16x4xf32>
    %cst_32 = arith.constant 0.000000e+00 : f32
    %38 = vector.broadcast %cst_32 : f32 to vector<16x4xf32>
    %39 = arith.maximumf %37, %38 : vector<16x4xf32>
    %c0_i32_33 = arith.constant 0 : i32
    %40 = arith.cmpi sgt, %arg1, %c0_i32_33 : i32
    %cst_34 = arith.constant 0.000000e+00 : f32
    %41 = vector.broadcast %cst_34 : f32 to vector<16x4xf32>
    %42 = arith.select %40, %32, %41 : vector<16x4xf32>
    %43 = vector.shape_cast %42 : vector<16x4xf32> to vector<1x16x4xf32>
    %44 = arith.truncf %43 : vector<1x16x4xf32> to vector<1x16x4xbf16>
    %c0_35 = arith.constant 0 : index
    %c1 = arith.constant 1 : index
    %c0_36 = arith.constant 0 : index
    %45 = vector.load %arg10[%c0_35, %c1, %c0_36] : memref<10x18x4xbf16, #tpu.memory_space<vmem>>, vector<1x16x4xbf16>
    tpu.vector_store %arg10[%c0_35, %c1, %c0_36], %44 {strides = array<i32>} : memref<10x18x4xbf16, #tpu.memory_space<vmem>>, vector<1x16x4xbf16>,
    %c1_i32_37 = arith.constant 1 : i32
    %46 = arith.cmpi slt, %arg1, %c1_i32_37 : i32
    %cst_38 = arith.constant 0.000000e+00 : f32
    %47 = vector.broadcast %cst_38 : f32 to vector<16x4xf32>
    %48 = arith.select %46, %39, %47 : vector<16x4xf32>
    %49 = vector.shape_cast %48 : vector<16x4xf32> to vector<1x16x4xf32>
    %50 = arith.truncf %49 : vector<1x16x4xf32> to vector<1x16x4xbf16>
    %c9 = arith.constant 9 : index
    %c1_39 = arith.constant 1 : index
    %c0_40 = arith.constant 0 : index
    %51 = vector.load %arg10[%c9, %c1_39, %c0_40] : memref<10x18x4xbf16, #tpu.memory_space<vmem>>, vector<1x16x4xbf16>
    tpu.vector_store %arg10[%c9, %c1_39, %c0_40], %50 {strides = array<i32>} : memref<10x18x4xbf16, #tpu.memory_space<vmem>>, vector<1x16x4xbf16>,
    %52 = vector.shape_cast %11 : vector<128x4xf32> to vector<8x16x4xf32>
    %53 = arith.truncf %52 : vector<8x16x4xf32> to vector<8x16x4xbf16>
    %c1_41 = arith.constant 1 : index
    %c1_42 = arith.constant 1 : index
    %c0_43 = arith.constant 0 : index
    %54 = vector.load %arg10[%c1_41, %c1_42, %c0_43] : memref<10x18x4xbf16, #tpu.memory_space<vmem>>, vector<8x16x4xbf16>
    tpu.vector_store %arg10[%c1_41, %c1_42, %c0_43], %53 {strides = array<i32>} : memref<10x18x4xbf16, #tpu.memory_space<vmem>>, vector<8x16x4xbf16>,
    %c0_44 = arith.constant 0 : index
    %c0_45 = arith.constant 0 : index
    %c0_46 = arith.constant 0 : index
    %55 = vector.load %arg10[%c0_44, %c0_45, %c0_46] : memref<10x18x4xbf16, #tpu.memory_space<vmem>>, vector<8x16x4xbf16>
    %56 = vector.shape_cast %55 : vector<8x16x4xbf16> to vector<128x4xbf16>
    %c0_47 = arith.constant 0 : index
    %c0_48 = arith.constant 0 : index
    %57 = vector.load %arg11[%c0_47, %c0_48] : memref<128x36xbf16, #tpu.memory_space<vmem>>, vector<128x4xbf16>
    tpu.vector_store %arg11[%c0_47, %c0_48], %56 {strides = array<i32>} : memref<128x36xbf16, #tpu.memory_space<vmem>>, vector<128x4xbf16>,
    %c0_49 = arith.constant 0 : index
    %c1_50 = arith.constant 1 : index
    %c0_51 = arith.constant 0 : index
    %58 = vector.load %arg10[%c0_49, %c1_50, %c0_51] : memref<10x18x4xbf16, #tpu.memory_space<vmem>>, vector<8x16x4xbf16>
    %59 = vector.shape_cast %58 : vector<8x16x4xbf16> to vector<128x4xbf16>
    %c0_52 = arith.constant 0 : index
    %c4 = arith.constant 4 : index
    %60 = vector.load %arg11[%c0_52, %c4] : memref<128x36xbf16, #tpu.memory_space<vmem>>, vector<128x4xbf16>
    tpu.vector_store %arg11[%c0_52, %c4], %59 {strides = array<i32>} : memref<128x36xbf16, #tpu.memory_space<vmem>>, vector<128x4xbf16>,
    %c0_53 = arith.constant 0 : index
    %c2 = arith.constant 2 : index
    %c0_54 = arith.constant 0 : index
    %61 = vector.load %arg10[%c0_53, %c2, %c0_54] : memref<10x18x4xbf16, #tpu.memory_space<vmem>>, vector<8x16x4xbf16>
    %62 = vector.shape_cast %61 : vector<8x16x4xbf16> to vector<128x4xbf16>
    %c0_55 = arith.constant 0 : index
    %c8 = arith.constant 8 : index
    %63 = vector.load %arg11[%c0_55, %c8] : memref<128x36xbf16, #tpu.memory_space<vmem>>, vector<128x4xbf16>
    tpu.vector_store %arg11[%c0_55, %c8], %62 {strides = array<i32>} : memref<128x36xbf16, #tpu.memory_space<vmem>>, vector<128x4xbf16>,
    %c1_56 = arith.constant 1 : index
    %c0_57 = arith.constant 0 : index
    %c0_58 = arith.constant 0 : index
    %64 = vector.load %arg10[%c1_56, %c0_57, %c0_58] : memref<10x18x4xbf16, #tpu.memory_space<vmem>>, vector<8x16x4xbf16>
    %65 = vector.shape_cast %64 : vector<8x16x4xbf16> to vector<128x4xbf16>
    %c0_59 = arith.constant 0 : index
    %c12 = arith.constant 12 : index
    %66 = vector.load %arg11[%c0_59, %c12] : memref<128x36xbf16, #tpu.memory_space<vmem>>, vector<128x4xbf16>
    tpu.vector_store %arg11[%c0_59, %c12], %65 {strides = array<i32>} : memref<128x36xbf16, #tpu.memory_space<vmem>>, vector<128x4xbf16>,
    %c1_60 = arith.constant 1 : index
    %c1_61 = arith.constant 1 : index
    %c0_62 = arith.constant 0 : index
    %67 = vector.load %arg10[%c1_60, %c1_61, %c0_62] : memref<10x18x4xbf16, #tpu.memory_space<vmem>>, vector<8x16x4xbf16>
    %68 = vector.shape_cast %67 : vector<8x16x4xbf16> to vector<128x4xbf16>
    %c0_63 = arith.constant 0 : index
    %c16 = arith.constant 16 : index
    %69 = vector.load %arg11[%c0_63, %c16] : memref<128x36xbf16, #tpu.memory_space<vmem>>, vector<128x4xbf16>
    tpu.vector_store %arg11[%c0_63, %c16], %68 {strides = array<i32>} : memref<128x36xbf16, #tpu.memory_space<vmem>>, vector<128x4xbf16>,
    %c1_64 = arith.constant 1 : index
    %c2_65 = arith.constant 2 : index
    %c0_66 = arith.constant 0 : index
    %70 = vector.load %arg10[%c1_64, %c2_65, %c0_66] : memref<10x18x4xbf16, #tpu.memory_space<vmem>>, vector<8x16x4xbf16>
    %71 = vector.shape_cast %70 : vector<8x16x4xbf16> to vector<128x4xbf16>
    %c0_67 = arith.constant 0 : index
    %c20 = arith.constant 20 : index
    %72 = vector.load %arg11[%c0_67, %c20] : memref<128x36xbf16, #tpu.memory_space<vmem>>, vector<128x4xbf16>
    tpu.vector_store %arg11[%c0_67, %c20], %71 {strides = array<i32>} : memref<128x36xbf16, #tpu.memory_space<vmem>>, vector<128x4xbf16>,
    %c2_68 = arith.constant 2 : index
    %c0_69 = arith.constant 0 : index
    %c0_70 = arith.constant 0 : index
    %73 = vector.load %arg10[%c2_68, %c0_69, %c0_70] : memref<10x18x4xbf16, #tpu.memory_space<vmem>>, vector<8x16x4xbf16>
    %74 = vector.shape_cast %73 : vector<8x16x4xbf16> to vector<128x4xbf16>
    %c0_71 = arith.constant 0 : index
    %c24 = arith.constant 24 : index
    %75 = vector.load %arg11[%c0_71, %c24] : memref<128x36xbf16, #tpu.memory_space<vmem>>, vector<128x4xbf16>
    tpu.vector_store %arg11[%c0_71, %c24], %74 {strides = array<i32>} : memref<128x36xbf16, #tpu.memory_space<vmem>>, vector<128x4xbf16>,
    %c2_72 = arith.constant 2 : index
    %c1_73 = arith.constant 1 : index
    %c0_74 = arith.constant 0 : index
    %76 = vector.load %arg10[%c2_72, %c1_73, %c0_74] : memref<10x18x4xbf16, #tpu.memory_space<vmem>>, vector<8x16x4xbf16>
    %77 = vector.shape_cast %76 : vector<8x16x4xbf16> to vector<128x4xbf16>
    %c0_75 = arith.constant 0 : index
    %c28 = arith.constant 28 : index
    %78 = vector.load %arg11[%c0_75, %c28] : memref<128x36xbf16, #tpu.memory_space<vmem>>, vector<128x4xbf16>
    tpu.vector_store %arg11[%c0_75, %c28], %77 {strides = array<i32>} : memref<128x36xbf16, #tpu.memory_space<vmem>>, vector<128x4xbf16>,
    %c2_76 = arith.constant 2 : index
    %c2_77 = arith.constant 2 : index
    %c0_78 = arith.constant 0 : index
    %79 = vector.load %arg10[%c2_76, %c2_77, %c0_78] : memref<10x18x4xbf16, #tpu.memory_space<vmem>>, vector<8x16x4xbf16>
    %80 = vector.shape_cast %79 : vector<8x16x4xbf16> to vector<128x4xbf16>
    %c0_79 = arith.constant 0 : index
    %c32 = arith.constant 32 : index
    %81 = vector.load %arg11[%c0_79, %c32] : memref<128x36xbf16, #tpu.memory_space<vmem>>, vector<128x4xbf16>
    tpu.vector_store %arg11[%c0_79, %c32], %80 {strides = array<i32>} : memref<128x36xbf16, #tpu.memory_space<vmem>>, vector<128x4xbf16>,
    %c0_80 = arith.constant 0 : index
    %c0_81 = arith.constant 0 : index
    %82 = vector.load %arg11[%c0_80, %c0_81] : memref<128x36xbf16, #tpu.memory_space<vmem>>, vector<128x36xbf16>
    %c0_82 = arith.constant 0 : index
    %c0_83 = arith.constant 0 : index
    %83 = vector.load %arg4[%c0_82, %c0_83] : memref<36x4xbf16, #tpu.memory_space<vmem>>, vector<36x4xbf16>
    %cst_84 = arith.constant dense<0.000000e+00> : vector<128x4xf32>
    %84 = tpu.matmul %82, %83, %cst_84 {dimension_numbers = #tpu.dot_dimension_numbers<[1], [0], [0], [1], [0, 0, 1, 1], [], []>} : vector<128x36xbf16>, vector<36x4xbf16>, vector<128x4xf32> -> vector<128x4xf32>
    %c0_85 = arith.constant 0 : index
    %c0_86 = arith.constant 0 : index
    %85 = vector.load %arg7[%c0_85, %c0_86] : memref<1x4xf32, #tpu.memory_space<vmem>>, vector<1x4xf32>
    %86 = vector.broadcast %85 : vector<1x4xf32> to vector<128x4xf32>
    %87 = arith.addf %84, %86 : vector<128x4xf32>
    %cst_87 = arith.constant 0.000000e+00 : f32
    %88 = vector.broadcast %cst_87 : f32 to vector<128x4xf32>
    %89 = arith.maximumf %87, %88 : vector<128x4xf32>
    %90 = arith.truncf %89 : vector<128x4xf32> to vector<128x4xbf16>
    %c0_88 = arith.constant 0 : index
    %c0_89 = arith.constant 0 : index
    %91 = vector.load %arg5[%c0_88, %c0_89] : memref<4x16xbf16, #tpu.memory_space<vmem>>, vector<4x16xbf16>
    %cst_90 = arith.constant dense<0.000000e+00> : vector<128x16xf32>
    %92 = tpu.matmul %90, %91, %cst_90 {dimension_numbers = #tpu.dot_dimension_numbers<[1], [0], [0], [1], [0, 0, 1, 1], [], []>} : vector<128x4xbf16>, vector<4x16xbf16>, vector<128x16xf32> -> vector<128x16xf32>
    %c0_91 = arith.constant 0 : index
    %93 = arith.index_cast %1 : i32 to index
    %c0_92 = arith.constant 0 : index
    %c0_93 = arith.constant 0 : index
    %94 = vector.load %arg2[%c0_91, %93, %c0_92, %c0_93] : memref<1x16x16x16xbf16, #tpu.memory_space<vmem>>, vector<1x8x16x16xbf16>
    %95 = vector.shape_cast %94 : vector<1x8x16x16xbf16> to vector<128x16xbf16>
    %96 = arith.extf %95 : vector<128x16xbf16> to vector<128x16xf32>
    %c0_94 = arith.constant 0 : index
    %c0_95 = arith.constant 0 : index
    %97 = vector.load %arg8[%c0_94, %c0_95] : memref<1x16xf32, #tpu.memory_space<vmem>>, vector<1x16xf32>
    %98 = vector.broadcast %97 : vector<1x16xf32> to vector<128x16xf32>
    %99 = arith.addf %92, %98 : vector<128x16xf32>
    %100 = arith.addf %99, %96 : vector<128x16xf32>
    %cst_96 = arith.constant 0.000000e+00 : f32
    %101 = vector.broadcast %cst_96 : f32 to vector<128x16xf32>
    %102 = arith.maximumf %100, %101 : vector<128x16xf32>
    %103 = vector.shape_cast %102 : vector<128x16xf32> to vector<1x8x16x16xf32>
    %104 = arith.truncf %103 : vector<1x8x16x16xf32> to vector<1x8x16x16xbf16>
    %c0_97 = arith.constant 0 : index
    %c0_98 = arith.constant 0 : index
    %c0_99 = arith.constant 0 : index
    %c0_100 = arith.constant 0 : index
    %105 = vector.load %arg9[%c0_97, %c0_98, %c0_99, %c0_100] : memref<1x8x16x16xbf16, #tpu.memory_space<vmem>>, vector<1x8x16x16xbf16>
    tpu.vector_store %arg9[%c0_97, %c0_98, %c0_99, %c0_100], %104 {strides = array<i32>} : memref<1x8x16x16xbf16, #tpu.memory_space<vmem>>, vector<1x8x16x16xbf16>,
    return
  }
  func.func @transform_0(%arg0: i32, %arg1: i32) -> (i32, i32, i32, i32) {
    %c0_i32 = arith.constant 0 : i32
    %c0_i32_0 = arith.constant 0 : i32
    %c0_i32_1 = arith.constant 0 : i32
    %c0_i32_2 = arith.constant 0 : i32
    return %arg0, %c0_i32, %c0_i32_0, %c0_i32_1 : i32, i32, i32, i32
  }
  func.func @transform_1(%arg0: i32, %arg1: i32) -> (i32, i32) {
    %c0_i32 = arith.constant 0 : i32
    %c0_i32_0 = arith.constant 0 : i32
    %c0_i32_1 = arith.constant 0 : i32
    return %c0_i32, %c0_i32_0 : i32, i32
  }
  func.func @transform_2(%arg0: i32, %arg1: i32) -> (i32, i32) {
    %c0_i32 = arith.constant 0 : i32
    %c0_i32_0 = arith.constant 0 : i32
    %c0_i32_1 = arith.constant 0 : i32
    return %c0_i32, %c0_i32_0 : i32, i32
  }
  func.func @transform_3(%arg0: i32, %arg1: i32) -> (i32, i32) {
    %c0_i32 = arith.constant 0 : i32
    %c0_i32_0 = arith.constant 0 : i32
    %c0_i32_1 = arith.constant 0 : i32
    return %c0_i32, %c0_i32_0 : i32, i32
  }
  func.func @transform_4(%arg0: i32, %arg1: i32) -> (i32, i32) {
    %c0_i32 = arith.constant 0 : i32
    %c0_i32_0 = arith.constant 0 : i32
    %c0_i32_1 = arith.constant 0 : i32
    return %c0_i32, %c0_i32_0 : i32, i32
  }
  func.func @transform_5(%arg0: i32, %arg1: i32) -> (i32, i32) {
    %c0_i32 = arith.constant 0 : i32
    %c0_i32_0 = arith.constant 0 : i32
    %c0_i32_1 = arith.constant 0 : i32
    return %c0_i32, %c0_i32_0 : i32, i32
  }
  func.func @transform_6(%arg0: i32, %arg1: i32) -> (i32, i32) {
    %c0_i32 = arith.constant 0 : i32
    %c0_i32_0 = arith.constant 0 : i32
    %c0_i32_1 = arith.constant 0 : i32
    return %c0_i32, %c0_i32_0 : i32, i32
  }
  func.func @transform_7(%arg0: i32, %arg1: i32) -> (i32, i32, i32, i32) {
    %c0_i32 = arith.constant 0 : i32
    %c0_i32_0 = arith.constant 0 : i32
    %c0_i32_1 = arith.constant 0 : i32
    return %arg0, %arg1, %c0_i32, %c0_i32_0 : i32, i32, i32, i32
  }
}

</mosaic_0001>

<bundles_post_ra>
// kernel: tpu_custom_call.1
= control target key start
LH: loop header
LB: loop body
LE: loop exit
PB: predicated region body
PF: predicated region fallthrough
CT: control target
= control target key end

     0   :  { %s5191_s0 = inlined_call_operand.hbm [shape: bf16[2,16,16,16], index: 0, kind: input, shape index: {}]   ;;  %s5192_s1 = inlined_call_operand.vmem [shape: bf16[16,4], index: 1, kind: input, shape index: {}]   ;;  %s5193_s2 = inlined_call_operand.vmem [shape: bf16[36,4], index: 2, kind: input, shape index: {}]   ;;  %s5194_s3 = inlined_call_operand.vmem [shape: bf16[4,16], index: 3, kind: input, shape index: {}]   ;;  %s5195_s4 = inlined_call_operand.vmem [shape: f32[1,4], index: 4, kind: input, shape index: {}]   ;;  %s5196_s5 = inlined_call_operand.vmem [shape: f32[1,4], index: 5, kind: input, shape index: {}]   ;;  %s5197_s6 = inlined_call_operand.vmem [shape: f32[1,16], index: 6, kind: input, shape index: {}]   ;;  %s5198_s7 = inlined_call_operand.hbm [shape: bf16[2,16,16,16], index: 7, kind: output, shape index: {}]  }
   0x1   :  { %5207 = sst [smem:[#allocation16_spill]] %s5198_s7 }
   0x2   :  { %12 = vsyncpa [#allocation5], 0 }
   0x3   :  { %14 = vsyncpa [#allocation5 + $0x1], 0 }
   0x4   :  { %15 = vsyncpa [#allocation6], 0 }
   0x5   :  { %17 = vsyncpa [#allocation6 + $0x1], 0  ;;  %s3945_s24 = smov 0   ;;  %s3947_s25 = smov 0  }
   0x6   :  { %s3949_s26 = smov 0   ;;  %s3951_s27 = smov 0  }
   0x7   :  { %s3953_s28 = smov 0   ;;  %s3955_s29 = smov 0  }
   0x8   :  { %s3957_s30 = smov 0   ;;  %s3959_s8 = smov 0  }
   0x9   :  { %s3961_s9 = smov 0   ;;  %s3963_s10 = smov 0  }
   0xa   :  { %s3965_s11 = smov 0  }
   0xb LB: > { %5208 = sst [smem:[#allocation10_spill]] %s3876_s8  ;;  %s3277_s12 = sadd.s32 4294967295, %s3888_s11   ;;  %s3888_s11 = sphi %s3965_s11, %s23_s11   ;;  %s3884_s10 = sphi %s3963_s10, %s5244_s10   ;;  %s3880_s9 = sphi %s3961_s9, %s5243_s9   ;;  %s3876_s8 = sphi %s3959_s8, %s5242_s8   ;;  %s3872_s30 = sphi %s3957_s30, %s5251_s30   ;;  %s3868_s29 = sphi %s3955_s29, %s5250_s29   ;;  %s3864_s28 = sphi %s3953_s28, %s5249_s28   ;;  %s3860_s27 = sphi %s3951_s27, %s5248_s27   ;;  %s3856_s26 = sphi %s3949_s26, %s5247_s26   ;;  %s3852_s25 = sphi %s3947_s25, %s5246_s25   ;;  %s3848_s24 = sphi %s3945_s24, %s5245_s24  }
   0xc   : > { %5209 = sst [smem:[#allocation11_spill]] %s3880_s9  ;;  %s3278_s13 = sadd.s32 4294967294, %s3888_s11  }
   0xd   : > { %5210 = sst [smem:[#allocation12_spill]] %s3884_s10  ;;  %s32_s14 = sadd.s32 1, %s3880_s9 }
   0xe   : > { %s35_s15 = sadd.s32 1, %s3884_s10  ;;  %p33_p0 = scmp.ge.s32.totalorder %s32_s14, 2 }
   0xf   : > { %s42_s16 = sadd.s32 1, %s3868_s29  ;;  %p49_p1 = scmp.ne.s32.totalorder %s3868_s29, %s3864_s28 }
  0x10   : > { %p50_p2 = scmp.eq.s32.totalorder %s3888_s11, 0  ;;  %s5253_s14 = smov (%p33_p0, %s32_s14), 0 }
  0x11   : > { %5211 = sst [smem:[#allocation13_spill]] %s5253_s14  ;;  %s5255_s15 = smov (!%p33_p0, %s35_s15), %s3884_s10 }
  0x12   : > { %p4009_p3 = por %p50_p2, %p49_p1  ;;  %p55_p4 = scmp.ne.s32.totalorder %s3864_s28, %s3860_s27 }
  0x13   : > { %p37_p5 = scmp.ge.s32.totalorder %s5255_s15, 2  ;;  %p56_p6 = scmp.eq.s32.totalorder %s3277_s12, 0 }
  0x14   : > { %s192_s18 = ssub.s32 %s3880_s9, %s5253_s14  ;;  %s196_s19 = sadd.s32 1, %s3856_s26 }
  0x15   : > { %s5257_s15 = smov (%p37_p5, %s5255_s15), 0  ;;  %p4019_p7 = por %p56_p6, %p55_p4 }
  0x16   : > { %5213 = sst [smem:[#allocation14_spill]] %s5257_s15  ;;  %p206_p8 = scmp.ne.s32.totalorder %s3856_s26, %s3852_s25 }
  0x17   : > { %s39_s21 = ssub.s32 %s3884_s10, %s5257_s15  ;;  %p207_p9 = scmp.eq.s32.totalorder %s3277_s12, 3 }
  0x18   : > { %p40_p10 = scmp.eq.s32.totalorder %s39_s21, 0  ;;  %s193_s22 = sor.u32 %s192_s18, %s39_s21 }
  0x19   : > { %p194_p11 = scmp.eq.s32.totalorder %s193_s22, 0  ;;  %p4027_p12 = por %p207_p9, %p206_p8 }
  0x1a   : > { %s4032_s27 = scalar_select %p40_p10, %s3868_s29, %s42_s16  }
  0x1b   : > { %s5215_s23 = scalar_select %p4027_p12, 1, 0 }
  0x1c   : > { %s4035_s14 = scalar_select %p194_p11, %s3856_s26, %s196_s19  }
  0x1d   : > { %5216 = sst [smem:[#allocation15_spill]] %s5215_s23  ;;  %p212_p13 = scmp.ne.s32.totalorder %s3852_s25, %s3848_s24 }
  0x1e   : > { %p213_p0 = scmp.eq.s32.totalorder %s3278_s13, 3  ;;  %p3613_p1 = scmp.lt.s32.totalorder %s3888_s11, 4 }
  0x1f   : > { %s251_s12 = sand.u32 1, %s3868_s29   ;;  %s3415_s21 = sshll.u32 %s3884_s10, 11 }
  0x20   : > { %p4040_p2 = por %p213_p0, %p212_p13  ;;  %s3281_s18 = sshll.u32 %s251_s12, 7 }
  0x21   : > { %s261_s7 = scalar_lea.hbm %s5191_s0, %s3415_s21  ;;  %s255_s8 = scalar_lea.vmem [#allocation4], %s3281_s18 }
  0x22   : > { %s262_s23 = sshll.u32 %s255_s8, 4  ;;  %p4051_p4 = pnand %p3613_p1, %p4009_p3  ;;  %s263_s23 = int_to_ptr.vmem [resolvable:$true] %s262_s23 }
  0x23   : > { %p3284_p5 = scmp.ge.s32.totalorder %s3888_s11, 1  ;;  %s252_s13 = scalar_lea.sflag [#allocation5], %s251_s12 }
  0x24   : > { %p3742_p6 = pneg %p4051_p4  ;;  %s3753_s19 = scalar_lea.vmem %s263_s23, 2048 }
  0x25   : > { %p3754_p8 = scmp.ne.s32.totalorder %s263_s23, %s3753_s19  ;;  %s3890_s10 = smov [#allocation4]  }
  0x26   : > { %s3758_s15 = sshll.u32 %s3890_s10, 4  ;;  %s3759_s15 = int_to_ptr.vmem [resolvable:$false] %s3758_s15 }
  0x27   : > { %p3756_p9 = pnand %p3754_p8, %p3742_p6  ;;  %s3760_s18 = scalar_lea.vmem %s3759_s15, 4096 }
  0x28   : > { %p3761_p11 = scmp.lt.s32.totalorder %s263_s23, %s3759_s15  ;;  %p3762_p13 = scmp.lt.s32.totalorder %s3760_s18, %s3753_s19 }
  0x29   : > { %p3757_p10 = pneg %p3756_p9 }
  0x2a   : > { %p3763_p0 = por %p3762_p13, %p3761_p11 }
  0x2c   : > { %p3764_p3 = pnand %p3763_p0, %p3757_p10 }
  0x2e   : > { %3767 = shalt.err (!%p3764_p3)
}
  0x2f   : > { %s3891_s8 = smov 64   ;;  %s3892_s17 = smov 4  }
  0x30   : > { %3608 = dma.hbm_to_vmem [thread:$0]  (!%p4051_p4), %s261_s7, 2048, %s263_s23, %s252_s13, %s3891_s8, %s3891_s8, %s3892_s17  }
  0x31   : > { %p270_p1 = scmp.lt.s32.totalorder %s3888_s11, 5 }
  0x33   : > { %p271_p6 = pnand %p3284_p5, %p270_p1 }
  0x34   : > { %s276_s10 = sand.u32 (!%p271_p6), 1, %s3864_s28  }
  0x35   : > { %274 = sbr.rel (%p271_p6) target bundleno = 1088 (0x440), region = 48  ;;  %s3285_s12 = sshll.u32 (!%p271_p6), %s276_s10, 7 }
  0x36   : > { %s277_s21 = scalar_lea.sflag (!%p271_p6), [#allocation5], %s276_s10  ;;  %s4064_s22 = scalar_lea.vmem (!%p271_p6), [#allocation4], %s3285_s12 }
  0x3a   : > { %3839 = dma.done.wait (%p4019_p7), %s277_s21, 2048  }
  0x3b   : > { %3841 = vsyncadd (%p4019_p7), %s277_s21, 4294965248  ;;  %s3287_s7 = sshll.u32 %s3872_s30, 3  ;;  %v3893_v0 = vmov 0.0   ;;  %vm3894_vm0 = vmmov 0   ;;  %s3417_s13 = sshll.u32 %s3872_s30, 6  ;;  %v3716_v1 = vld [vmem:[%s5192_s1] sm:$0xff]  }
  0x3c   : > { %3547 = vmatprep.subr.bf16.mxu1 %v3893_v0  ;;  %3549 = vmatprep.mubr.msk.bf16.mxu1 %vm3894_vm0, %v3893_v0  ;;  %s3308_s23 = sadd.s32 4294967295, %s3287_s7  ;;  %s594_s16 = sadd.s32 8, %s3287_s7  ;;  %vm527_vm1 = vsmask.f32 256  ;;  %v3717_v2 = vld [vmem:[%s5192_s1] sm:$0xff]   ;;  %vm388_vm2 = vcmask 130048  }
  0x3d   : > { %p592_p4 = scmp.gt.s32.totalorder %s3308_s23, 0  ;;  %p595_p5 = scmp.lt.s32.totalorder %s594_s16, 15  ;;  %3529 = vmatprep.subr.bf16.mxu0 %v3716_v1  ;;  %3548 = vmatpush3.bf16.msra.mxu1 %v3717_v2  ;;  %vm526_vm3 = vcmask 24576   ;;  %v529_v11 = vld [vmem:[#allocation2] sm:$0x1]  ;;  %vm758_vm8 = vcmask 27648  }
  0x3e   : > { %s4074_s19 = scalar_lea.vmem %s4064_s22, %s3417_s13 [#allocation4]  ;;  %3530 = vmatpush3.bf16.msra.mxu0 %v3716_v1  ;;  %3553 = vmatprep.subr.bf16.mxu1 %v3893_v0  ;;  %vm4094_vm4 = vmand %vm526_vm3, %vm527_vm1  ;;  %vm559_vm5 = vsmask.f32 7938  ;;  %v535_v16 = vld [vmem:[#allocation2 + $0x18] sm:$0x1]  ;;  %v532_v19 = vld [vmem:[#allocation2 + $0xc] sm:$0x1] }
  0x3f   : > { %s5259_s23 = smov (!%p592_p4, %s3308_s23), 0  ;;  %s5261_s16 = smov (!%p595_p5, %s594_s16), 15  ;;  %v3718_v3 = vld [vmem:[%s4074_s19] sm:$0xff]   ;;  %v3720_v5 = vld [vmem:[%s4074_s19 + $0x8] sm:$0xff]   ;;  %v3721_v6 = vld [vmem:[%s4074_s19 + $0x10] sm:$0xff]   ;;  %v530_v12 = vsel %vm4094_vm4, 0, %v529_v11 }
  0x40   : > { %s3418_s20 = sshll.u32 %s5259_s23, 3  ;;  %s3419_s12 = sshll.u32 %s5261_s16, 3  ;;  %3531 = vmatprep.mubr.msk.bf16.mxu0 %vm388_vm2, %v3718_v3  ;;  %v3722_v8 = vld [vmem:[%s4074_s19 + $0x18] sm:$0xff]   ;;  %v3724_v10 = vld [vmem:[%s4074_s19 + $0x20] sm:$0xff]   ;;  %531 = vst [vmem:[#allocation2] sm:$0x1] %v530_v12  ;;  %vm4115_vm6 = vmand %vm526_vm3, %vm559_vm5 }
  0x41   : > { %s599_s8 = scalar_lea.vmem %s4064_s22, %s3418_s20 [#allocation4]  ;;  %3532 = vmatmul.mubr.msk.bf16.vlgmr.msra.gmra.mxu0 %vm388_vm2, %v3720_v5  ;;  %s604_s21 = scalar_lea.vmem %s4064_s22, %s3419_s12 [#allocation4]  ;;  %v3725_v13 = vld [vmem:[%s4074_s19 + $0x28] sm:$0xff]   ;;  %v3726_v14 = vld [vmem:[%s4074_s19 + $0x30] sm:$0xff]   ;;  %v3727_v15 = vld [vmem:[%s4074_s19 + $0x38] sm:$0xff]   ;;  %v536_v17 = vsel %vm4094_vm4, 0, %v535_v16  ;;  %v533_v20 = vsel %vm4094_vm4, 0, %v532_v19  ;;  %vm1437_vm12 = vcmask 1042432  }
  0x42   : > { %v3719_v4 = vld [vmem:[%s599_s8] sm:$0xff]   ;;  %3535 = vmatprep.mubr.msk.bf16.mxu0 %vm388_vm2, %v3721_v6  ;;  %537 = vst [vmem:[#allocation2 + $0x18] sm:$0x1] %v536_v17  ;;  %534 = vst [vmem:[#allocation2 + $0xc] sm:$0x1] %v533_v20  ;;  %p724_p7 = scmp.gt.s32.totalorder %s3872_s30, 0 }
  0x43   : > { %3550 = vmatmul.mubr.msk.bf16.vlgmr.msra.gmra.mxu1 %vm388_vm2, %v3719_v4  ;;  %v3723_v9 = vld [vmem:[%s604_s21] sm:$0xff]   ;;  %v561_v23 = vld [vmem:[#allocation2 + $0x8] sm:$0x1]  ;;  %v564_v25 = vld [vmem:[#allocation2 + $0x14] sm:$0x1]  ;;  %p768_p8 = scmp.lt.s32.totalorder %s3872_s30, 1 }
  0x44   : > { %3554 = vmatpush3.bf16.msra.mxu1 %v3717_v2  ;;  %3555 = vmatprep.mubr.msk.bf16.mxu1 %vm3894_vm0, %v3893_v0  ;;  %v567_v21 = vld [vmem:[#allocation2 + $0x20] sm:$0x1]  ;;  %v562_v24 = vsel %vm4115_vm6, 0, %v561_v23  ;;  %v565_v26 = vsel %vm4115_vm6, 0, %v564_v25  ;;  %v541_v27 = vld [vmem:[#allocation2 + $0x30] sm:$0x1]  ;;  %vm4175_vm10 = vmand %vm758_vm8, %vm559_vm5 }
  0x45   : > { %v568_v22 = vsel %vm4115_vm6, 0, %v567_v21  ;;  %563 = vst [vmem:[#allocation2 + $0x8] sm:$0x1] %v562_v24  ;;  %566 = vst [vmem:[#allocation2 + $0x14] sm:$0x1] %v565_v26  ;;  %v542_v28 = vsel %vm4094_vm4, 0, %v541_v27 }
  0x46   : > { %569 = vst [vmem:[#allocation2 + $0x20] sm:$0x1] %v568_v22  ;;  %543 = vst [vmem:[#allocation2 + $0x30] sm:$0x1] %v542_v28  ;;  %v538_v29 = vld [vmem:[#allocation2 + $0x24] sm:$0x1] }
  0x47   : > { %v539_v30 = vsel %vm4094_vm4, 0, %v538_v29  ;;  %v573_v31 = vld [vmem:[#allocation2 + $0x38] sm:$0x1]  ;;  %v570_v33 = vld [vmem:[#allocation2 + $0x2c] sm:$0x1]  ;;  %vm1438_vm13 = vcmask 1046532  }
  0x48   : > { %540 = vst [vmem:[#allocation2 + $0x24] sm:$0x1] %v539_v30  ;;  %v574_v32 = vsel %vm4115_vm6, 0, %v573_v31  ;;  %v571_v34 = vsel %vm4115_vm6, 0, %v570_v33  ;;  %v556_v35 = vld [vmem:[#allocation2 + $0x6c] sm:$0x1]  ;;  %vm4237_vm15 = vmor %vm1437_vm12, %vm1438_vm13 }
  0x49   : > { %3536 = vmatmul.mubr.msk.bf16.gmra.mxu0 %vm388_vm2, %v3722_v8  ;;  %575 = vst [vmem:[#allocation2 + $0x38] sm:$0x1] %v574_v32  ;;  %572 = vst [vmem:[#allocation2 + $0x2c] sm:$0x1] %v571_v34  ;;  %v557_v36 = vsel %vm4094_vm4, 0, %v556_v35  ;;  %s3895_s13 = smov 12  }
  0x4a   : > { %3539 = vmatprep.mubr.msk.bf16.mxu0 %vm388_vm2, %v3724_v10  ;;  %558 = vst [vmem:[#allocation2 + $0x6c] sm:$0x1] %v557_v36  ;;  %v588_v37 = vld [vmem:[#allocation2 + $0x74] sm:$0x1]  ;;  %v547_v39 = vld [vmem:[#allocation2 + $0x48] sm:$0x1] }
  0x4b   : > { %3556 = vmatmul.mubr.msk.bf16.vlgmr.msra.gmra.mxu1 %vm388_vm2, %v3723_v9  ;;  %v589_v38 = vsel %vm4115_vm6, 0, %v588_v37  ;;  %v548_v40 = vsel %vm4094_vm4, 0, %v547_v39  ;;  %v544_v41 = vld [vmem:[#allocation2 + $0x3c] sm:$0x1]  ;;  %v579_v42 = vld [vmem:[#allocation2 + $0x50] sm:$0x1] }
  0x4c   : > { %590 = vst [vmem:[#allocation2 + $0x74] sm:$0x1] %v589_v38  ;;  %549 = vst [vmem:[#allocation2 + $0x48] sm:$0x1] %v548_v40  ;;  %v545_v43 = vsel %vm4094_vm4, 0, %v544_v41  ;;  %v580_v44 = vsel %vm4115_vm6, 0, %v579_v42 }
  0x4d   : > { %546 = vst [vmem:[#allocation2 + $0x3c] sm:$0x1] %v545_v43  ;;  %581 = vst [vmem:[#allocation2 + $0x50] sm:$0x1] %v580_v44  ;;  %v576_v45 = vld [vmem:[#allocation2 + $0x44] sm:$0x1] }
  0x4e   : > { %v577_v46 = vsel %vm4115_vm6, 0, %v576_v45  ;;  %s725_s22 = scalar_select %p724_p7, 1, 0  ;;  %v4151_v47 = vld [vmem:[%s5195_s4] ss:$0 sm:$0xff]  ;;  %vm1372_vm3 = vcmask 60448  }
  0x4f   : > { %578 = vst [vmem:[#allocation2 + $0x44] sm:$0x1] %v577_v46  ;;  %s4160_s16 = scalar_select %p768_p8, 1, 0  ;;  %vm736_vm9 = vsmask.f32 4368 }
  0x50   : > { %v726_v48 = vstv %s725_s22  ;;  %v1024_v24 = vld [vmem:[#allocation2 + $0x18] sm:$0xf]  ;;  %v760_v30 = vld [vmem:[#allocation2] sm:$0xf]  ;;  %v1017_v37 = vld [vmem:[#allocation2 + $0xc] sm:$0xf] }
  0x51   : > { %3540 = vmatmul.mubr.msk.bf16.gmra.mxu0 %vm388_vm2, %v3725_v13  ;;  %vm4156_vm7 = vcmp.eq.s32.totalorder %v726_v48, 1  ;;  %v770_v5 = vstv %s4160_s16  ;;  %vm4192_vm11 = vmor %vm527_vm1, %vm736_vm9  ;;  %s3896_s20 = smov 24   ;;  %s3897_s15 = smov 8   ;;  %vm1129_vm0 = vsmask.f32 3328  ;;  %vm1641_vm5 = vcmask 126048  }
  0x52   : > { %3543 = vmatprep.mubr.msk.bf16.mxu0 %vm388_vm2, %v3726_v14  ;;  %vm4220_vm14 = vcmp.eq.s32.totalorder %v770_v5, 1  ;;  %s3898_s18 = smov 20   ;;  %s3899_s8 = smov 32   ;;  %vm1130_vm1 = vsmask.f32 7440  ;;  %vm2189_vm9 = vcmask 224448  }
  0x53   : > { %s5206_s17 = smov 4   ;;  %s3901_s10 = smov 16   ;;  %vm2739_vm12 = vcmask 293888   ;;  %vm2929_vm13 = vcmask 31744  }
  0x54   : > { %s3902_s12 = smov 28   ;;  %s5235_s21 = sld [smem:[#allocation10_spill]] }
  0x55   : > { %s3456_s22 = sshll.u32 %s3872_s30, 4 }
  0x59   : > { %3544 = vmatmul.mubr.msk.bf16.gmra.mxu0 %vm388_vm2, %v3727_v15  ;;  %vm4304_vm2 = vmor %vm1129_vm0, %vm1130_vm1 }
  0x5a   : > { %s3411_s7 = sshll.u32 %s5235_s21, 5 }
 0x101   : > { %v3533_v50 = vpop.f32.mrf.mxu0 }
 0x102   : > { %v456_v52 = vadd.f32 %v3533_v50, %v4151_v47 }
 0x103   : > { %v664_v49 = vpop.f32.mrf.mxu1  ;;  %v447_v55 = vpop.f32.mrf.mxu0 }
 0x104   : > { %v665_v51 = vadd.f32 %v4151_v47, %v664_v49  ;;  %v512_v57 = vmax.f32 %v456_v52, 0.0  ;;  %v448_v58 = vadd.f32 %v4151_v47, %v447_v55 }
 0x105   : > { %v3551_v54 = vpop.f32.mrf.mxu1  ;;  %v3534_v60 = vpop.f32.mrf.mxu0 }
 0x106   : > { %v671_v56 = vmax.f32 %v665_v51, 0.0  ;;  %v3426_v62 = vpack.c.bf16 %v512_v57, %v512_v57  ;;  %v510_v63 = vmax.f32 %v448_v58, 0.0  ;;  %v459_v2 = vadd.f32 %v3534_v60, %v4151_v47  ;;  %v765_v54 = vld [vmem:[#allocation2 + $0x8] sm:$0x1]  ;;  %v1028_v60 = vld [vmem:[#allocation2 + $0x20] sm:$0x1] }
 0x107   : > { %v667_v59 = vpop.f32.mrf.mxu1  ;;  %v450_v3 = vpop.f32.mrf.mxu0 }
 0x108   : > { %v728_v61 = vsel %vm4156_vm7, %v671_v56, 0.0  ;;  %v668_v0 = vadd.f32 %v4151_v47, %v667_v59  ;;  %v874_v6 = vshrl.u32 %v3426_v62, 16  ;;  %v877_v8 = vshll.u32 %v3426_v62, 16 }
 0x109   : > { %v3420_v1 = vpack.c.bf16 %v728_v61, %v728_v61  ;;  %v3552_v4 = vpop.f32.mrf.mxu1  ;;  %v3424_v9 = vpack.c.bf16 %v510_v63, %v510_v63  ;;  %v513_v13 = vmax.f32 %v459_v2, 0.0  ;;  %v451_v14 = vadd.f32 %v4151_v47, %v450_v3  ;;  %v3537_v15 = vpop.f32.mrf.mxu0 }
 0x10a   : > { %v672_v10 = vmax.f32 %v668_v0, 0.0  ;;  %v876_v17 = vrot.slane %v874_v6, 7  ;;  %v472_v34 = vadd.f32 %v3537_v15, %v4151_v47 }
 0x10b   : > { %v739_v11 = vshrl.u32 %v3420_v1, 16  ;;  %v742_v12 = vshll.u32 %v3420_v1, 16  ;;  %v4169_v16 = vpop.f32.mrf.mxu1  ;;  %v857_v19 = vshrl.u32 %v3424_v9, 16  ;;  %v860_v20 = vshll.u32 %v3424_v9, 16  ;;  %v463_v28 = vpop.f32.mrf.mxu0 }
 0x10c   : > { %v729_v21 = vsel %vm4156_vm7, %v672_v10, 0.0  ;;  %v3427_v26 = vpack.c.bf16 %v513_v13, %v513_v13  ;;  %v511_v27 = vmax.f32 %v451_v14, 0.0  ;;  %v879_v31 = vor.u32 %v877_v8, %v876_v17 }
 0x10d   : > { %v741_v22 = vrot.slane %v739_v11, 7  ;;  %v3421_v25 = vpack.c.bf16 %v729_v21, %v729_v21  ;;  %v3557_v29 = vpop.f32.mrf.mxu1  ;;  %v880_v32 = vrot.slane %v876_v17, 4  ;;  %v4179_v33 = vrot.slane %v857_v19, 7  ;;  %v3538_v50 = vpop.f32.mrf.mxu0 }
 0x10e   : > { %v1025_v41 = vsel %vm4175_vm10, %v879_v31, %v1024_v24  ;;  %v882_v44 = vshrl.u32 %v3427_v26, 16  ;;  %v885_v48 = vshll.u32 %v3427_v26, 16  ;;  %v3425_v49 = vpack.c.bf16 %v511_v27, %v511_v27  ;;  %v1038_v29 = vld [vmem:[#allocation2 + $0x30] sm:$0xf] }
 0x10f   : > { %v744_v35 = vor.u32 %v742_v12, %v741_v22  ;;  %v745_v36 = vrot.slane %v741_v22, 4  ;;  %v747_v38 = vshrl.u32 %v3421_v25, 16  ;;  %v750_v39 = vshll.u32 %v3421_v25, 16  ;;  %v718_v40 = vpop.f32.mrf.mxu1  ;;  %1026 = vst [vmem:[#allocation2 + $0x18] sm:$0xf] %v1025_v41  ;;  %v466_v9 = vpop.f32.mrf.mxu0 }
 0x110   : > { %v862_v42 = vor.u32 %v860_v20, %v4179_v33  ;;  %v863_v43 = vrot.slane %v4179_v33, 4  ;;  %v884_v55 = vrot.slane %v882_v44, 7  ;;  %v516_v56 = vmax.f32 %v472_v34, 0.0  ;;  %v1021_v12 = vld [vmem:[#allocation2 + $0x14] sm:$0x1] }
 0x111   : > { %v761_v45 = vsel %vm4175_vm10, %v744_v35, %v760_v30  ;;  %v749_v46 = vrot.slane %v747_v38, 7  ;;  %v3558_v51 = vpop.f32.mrf.mxu1  ;;  %v464_v57 = vadd.f32 %v4151_v47, %v463_v28  ;;  %v865_v61 = vshrl.u32 %v3425_v49, 16  ;;  %v1031_v41 = vld [vmem:[#allocation2 + $0x24] sm:$0xf] }
 0x112   : > { %762 = vst [vmem:[#allocation2] sm:$0xf] %v761_v45  ;;  %v1018_v52 = vsel %vm4175_vm10, %v862_v42, %v1017_v37  ;;  %v868_v62 = vshll.u32 %v3425_v49, 16  ;;  %v887_v63 = vor.u32 %v885_v48, %v884_v55  ;;  %v889_v0 = vrot.slane %v884_v55, 4 }
 0x113   : > { %1019 = vst [vmem:[#allocation2 + $0xc] sm:$0xf] %v1018_v52  ;;  %v752_v58 = vor.u32 %v750_v39, %v749_v46  ;;  %v754_v59 = vrot.slane %v749_v46, 4  ;;  %v3430_v1 = vpack.c.bf16 %v516_v56, %v516_v56  ;;  %v514_v2 = vmax.f32 %v464_v57, 0.0 }
 0x114   : > { %v867_v6 = vrot.slane %v865_v61, 7  ;;  %v475_v8 = vadd.f32 %v3538_v50, %v4151_v47  ;;  %v888_v10 = vsel %vm4192_vm11, %v880_v32, %v887_v63  ;;  %v1029_v11 = vsel %vm4094_vm4, %v889_v0, %v1028_v60  ;;  %v1035_v60 = vld [vmem:[#allocation2 + $0x2c] sm:$0x1] }
 0x115   : > { %v753_v3 = vsel %vm4192_vm11, %v745_v36, %v752_v58  ;;  %v766_v4 = vsel %vm4094_vm4, %v754_v59, %v765_v54  ;;  %v908_v13 = vshrl.u32 %v3430_v1, 16  ;;  %v911_v14 = vshll.u32 %v3430_v1, 16  ;;  %1027 = vst.msk [vmem:[#allocation2 + $0x1c] sm:$0xf] %vm758_vm8, %v888_v10  ;;  %1030 = vst [vmem:[#allocation2 + $0x20] sm:$0x1] %v1029_v11 }
 0x116   : > { %764 = vst.msk [vmem:[#allocation2 + $0x4] sm:$0xf] %vm758_vm8, %v753_v3  ;;  %767 = vst [vmem:[#allocation2 + $0x8] sm:$0x1] %v766_v4  ;;  %v870_v15 = vor.u32 %v868_v62, %v867_v6  ;;  %v872_v17 = vrot.slane %v867_v6, 4  ;;  %v3428_v19 = vpack.c.bf16 %v514_v2, %v514_v2  ;;  %v517_v20 = vmax.f32 %v475_v8, 0.0 }
 0x117   : > { %v1563_v21 = vld [vmem:[#allocation2 + $0x18] sm:$0xf]  ;;  %v910_v22 = vrot.slane %v908_v13, 7  ;;  %v467_v24 = vadd.f32 %v4151_v47, %v466_v9  ;;  %v716_v25 = vadd.f32 %v4151_v47, %v4169_v16  ;;  %v719_v26 = vadd.f32 %v4151_v47, %v718_v40 }
 0x118   : > { %v871_v27 = vsel %vm4192_vm11, %v863_v43, %v870_v15  ;;  %v1022_v28 = vsel %vm4094_vm4, %v872_v17, %v1021_v12  ;;  %1597 = vrot.lane.b32.xlu0 %v1563_v21, %s3895_s13  ;;  %v891_v30 = vshrl.u32 %v3428_v19, 16  ;;  %v894_v31 = vshll.u32 %v3428_v19, 16  ;;  %v2109_v42 = vld [vmem:[#allocation2 + $0x18] sm:$0xf] }
 0x119   : > { %1020 = vst.msk [vmem:[#allocation2 + $0x10] sm:$0xf] %vm758_vm8, %v871_v27  ;;  %1023 = vst [vmem:[#allocation2 + $0x14] sm:$0x1] %v1022_v28  ;;  %v913_v32 = vor.u32 %v911_v14, %v910_v22  ;;  %v3431_v33 = vpack.c.bf16 %v517_v20, %v517_v20  ;;  %v515_v16 = vmax.f32 %v467_v24, 0.0  ;;  %v914_v36 = vrot.slane %v910_v22, 4 }
 0x11a   : > { %v1389_v35 = vld [vmem:[#allocation2] sm:$0xe]  ;;  %v893_v37 = vrot.slane %v891_v30, 7  ;;  %v722_v38 = vmax.f32 %v716_v25, 0.0  ;;  %v723_v39 = vmax.f32 %v719_v26, 0.0  ;;  %vm2091_vm7 = vcmask 191648  }
 0x11b   : > { %v1039_v40 = vsel %vm4175_vm10, %v913_v32, %v1038_v29  ;;  %v916_v43 = vshrl.u32 %v3431_v33, 16  ;;  %v919_v44 = vshll.u32 %v3431_v33, 16  ;;  %v3429_v45 = vpack.c.bf16 %v515_v16, %v515_v16  ;;  %v1042_v59 = vld [vmem:[#allocation2 + $0x38] sm:$0x1]  ;;  %v1561_v2 = vld [vmem:[#allocation2 + $0xc] sm:$0xf] }
 0x11c   : > { %1040 = vst [vmem:[#allocation2 + $0x30] sm:$0xf] %v1039_v40  ;;  %v896_v46 = vor.u32 %v894_v31, %v893_v37  ;;  %2141 = vrot.lane.b32.xlu0 %v2109_v42, %s3896_s20  ;;  %v772_v5 = vsel %vm4220_vm14, %v722_v38, 0.0  ;;  %v3339_v49 = vrot.slane %v1389_v35, 9  ;;  %v773_v50 = vsel %vm4220_vm14, %v723_v39, 0.0 }
 0x11d   : > { %v1390_v48 = vld [vmem:[#allocation2 + $0x4] sm:$0xf]  ;;  %v1564_v51 = vld [vmem:[#allocation2 + $0x1c] sm:$0xf]  ;;  %v918_v52 = vrot.slane %v916_v43, 7  ;;  %v899_v54 = vshrl.u32 %v3429_v45, 16  ;;  %v3422_v56 = vpack.c.bf16 %v772_v5, %v772_v5  ;;  %v3423_v62 = vpack.c.bf16 %v773_v50, %v773_v50 }
 0x11e   : > { %v902_v55 = vshll.u32 %v3429_v45, 16  ;;  %v897_v57 = vrot.slane %v893_v37, 4  ;;  %v1032_v58 = vsel %vm4175_vm10, %v896_v46, %v1031_v41  ;;  %1599 = vrot.lane.b32.xlu1 %v1564_v51, %s3895_s13  ;;  %v1442_v61 = vrot.slane %v1390_v48, 5  ;;  %v1943_v10 = vld [vmem:[#allocation2 + $0x1c] sm:$0xf] }
 0x11f   : > { %1033 = vst [vmem:[#allocation2 + $0x24] sm:$0xf] %v1032_v58  ;;  %v921_v63 = vor.u32 %v919_v44, %v918_v52  ;;  %v923_v0 = vrot.slane %v918_v52, 4  ;;  %v901_v1 = vrot.slane %v899_v54, 7  ;;  %v781_v3 = vshrl.u32 %v3422_v56, 16 }
 0x120   : > { %1593 = vrot.lane.b32.xlu0 %v1561_v2, %s3895_s13  ;;  %v784_v4 = vshll.u32 %v3422_v56, 16  ;;  %v789_v8 = vshrl.u32 %v3423_v62, 16  ;;  %v792_v9 = vshll.u32 %v3423_v62, 16  ;;  %v2110_v15 = vld [vmem:[#allocation2 + $0x1c] sm:$0xf]  ;;  %v1443_v26 = vsel %vm4237_vm15, %v3339_v49, %v1442_v61 }
 0x121   : > { %v922_v11 = vsel %vm4192_vm11, %v914_v36, %v921_v63  ;;  %v1043_v12 = vsel %vm4094_vm4, %v923_v0, %v1042_v59  ;;  %v904_v13 = vor.u32 %v902_v55, %v901_v1  ;;  %v906_v14 = vrot.slane %v901_v1, 4  ;;  %v1391_v20 = vld [vmem:[#allocation2 + $0x8] sm:$0x1]  ;;  %v1942_v21 = vld [vmem:[#allocation2 + $0x18] sm:$0xe] }
 0x122   : > { %1041 = vst.msk [vmem:[#allocation2 + $0x34] sm:$0xf] %vm758_vm8, %v922_v11  ;;  %1044 = vst [vmem:[#allocation2 + $0x38] sm:$0x1] %v1043_v12  ;;  %2143 = vrot.lane.b32.xlu1 %v2110_v15, %s3896_s20  ;;  %v783_v17 = vrot.slane %v781_v3, 7  ;;  %v791_v19 = vrot.slane %v789_v8, 7  ;;  %v3541_v3 = vpop.f32.mrf.mxu0 }
 0x123   : > { %v905_v22 = vsel %vm4192_vm11, %v897_v57, %v904_v13  ;;  %v1036_v24 = vsel %vm4094_vm4, %v906_v14, %v1035_v60  ;;  %v801_v25 = vld [vmem:[#allocation2 + $0x6c] sm:$0xf]  ;;  %v805_v27 = vld [vmem:[#allocation2 + $0x74] sm:$0x1]  ;;  %v1996_v28 = vrot.slane %v1943_v10, 5  ;;  %v1444_v34 = vrot.slane %v1442_v61, 4 }
 0x124   : > { %1034 = vst.msk [vmem:[#allocation2 + $0x28] sm:$0xf] %vm758_vm8, %v905_v22  ;;  %1037 = vst [vmem:[#allocation2 + $0x2c] sm:$0x1] %v1036_v24  ;;  %v786_v29 = vor.u32 %v784_v4, %v783_v17  ;;  %v787_v30 = vrot.slane %v783_v17, 4  ;;  %1496 = vrot.lane.b32.xlu0 %v1443_v26, %s3897_s15  ;;  %v794_v31 = vor.u32 %v792_v9, %v791_v19  ;;  %v796_v32 = vrot.slane %v791_v19, 4 }
 0x125   : > { %v2488_v33 = vld [vmem:[#allocation2 + $0x1c] sm:$0xf]  ;;  %v1562_v16 = vld [vmem:[#allocation2 + $0x10] sm:$0xf]  ;;  %v1445_v35 = vrot.slane %v1391_v20, 5  ;;  %v3348_v36 = vrot.slane %v1942_v21, 9 }
 0x126   : > { %v802_v37 = vsel %vm4175_vm10, %v786_v29, %v801_v25  ;;  %1595 = vrot.lane.b32.xlu1 %v1562_v16, %s3895_s13  ;;  %v795_v38 = vsel %vm4192_vm11, %v787_v30, %v794_v31  ;;  %v806_v39 = vsel %vm4094_vm4, %v796_v32, %v805_v27  ;;  %v2487_v40 = vld [vmem:[#allocation2 + $0x18] sm:$0xe]  ;;  %v1108_v41 = vld [vmem:[#allocation2 + $0xc] sm:$0xf]  ;;  %v1944_v43 = vld [vmem:[#allocation2 + $0x20] sm:$0x1]  ;;  %v479_v25 = vpop.f32.mrf.mxu0 }
 0x127   : > { %803 = vst [vmem:[#allocation2 + $0x6c] sm:$0xf] %v802_v37  ;;  %804 = vst.msk [vmem:[#allocation2 + $0x70] sm:$0xf] %vm758_vm8, %v795_v38  ;;  %v1997_v42 = vsel %vm4237_vm15, %v3348_v36, %v1996_v28  ;;  %v2537_v44 = vrot.slane %v2488_v33, 5  ;;  %v1998_v45 = vrot.slane %v1996_v28, 4  ;;  %v1446_v5 = vsel %vm4237_vm15, %v1444_v34, %v1445_v35 }
 0x128   : > { %807 = vst [vmem:[#allocation2 + $0x74] sm:$0x1] %v806_v39  ;;  %2047 = vrot.lane.b32.xlu0 %v1997_v42, %s3898_s18  ;;  %v1396_v46 = vld [vmem:[#allocation2 + $0x1c] sm:$0xf]  ;;  %v3355_v48 = vrot.slane %v2487_v40, 9  ;;  %v1157_v49 = vshrl.u32 %v1108_v41, 16  ;;  %v3542_v40 = vpop.f32.mrf.mxu0 }
 0x129   : > { %v1160_v50 = vshll.u32 %v1108_v41, 16  ;;  %v1999_v51 = vrot.slane %v1944_v43, 5  ;;  %v1395_v52 = vld [vmem:[#allocation2 + $0x18] sm:$0xe]  ;;  %v1456_v55 = vrot.slane %v1396_v46, 5  ;;  %v2539_v59 = vrot.slane %v2537_v44, 4 }
 0x12a   : > { %1498 = vrot.lane.b32.xlu1 %v1446_v5, %s3897_s15  ;;  %v2538_v54 = vsel %vm4237_vm15, %v3355_v48, %v2537_v44  ;;  %v1105_v56 = vld [vmem:[#allocation2] sm:$0xf]  ;;  %v3341_v60 = vrot.slane %v1395_v52, 9  ;;  %v1159_v61 = vrot.slane %v1157_v49, 4  ;;  %v4274_v63 = vld [vmem:[#allocation2 + $0x10] sm:$0xf] }
 0x12b   : > { %v2000_v57 = vsel %vm4237_vm15, %v1998_v45, %v1999_v51  ;;  %v2489_v58 = vld [vmem:[#allocation2 + $0x20] sm:$0x1]  ;;  %v1162_v62 = vrot.slane %v1160_v50, 5  ;;  %v4277_v0 = vld [vmem:[#allocation2 + $0x10] sm:$0xf]  ;;  %v1133_v1 = vshrl.u32 %v1105_v56, 16 }
 0x12c   : > { %2591 = vrot.lane.b32.xlu0 %v2538_v54, %s3899_s8  ;;  %v1136_v2 = vshll.u32 %v1105_v56, 16  ;;  %v2540_v4 = vrot.slane %v2489_v58, 5  ;;  %v1457_v8 = vsel %vm4237_vm15, %v3341_v60, %v1456_v55  ;;  %v4281_v9 = vld [vmem:[#allocation2 + $0x10] sm:$0xf]  ;;  %v1397_v10 = vld [vmem:[#allocation2 + $0x20] sm:$0x1]  ;;  %v488_v60 = vadd.f32 %v3541_v3, %v4151_v47 }
 0x12d   : > { %v1449_v11 = vrot.slane %v4274_v63, 5  ;;  %v1458_v13 = vrot.slane %v1456_v55, 4  ;;  %v1567_v14 = vld [vmem:[#allocation2 + $0x30] sm:$0xf]  ;;  %v1163_v15 = vor.u32 %v1162_v62, %v1159_v61  ;;  %v1166_v17 = vshll.u32 %v4277_v0, 16  ;;  %v482_v61 = vpop.f32.mrf.mxu0 }
 0x12e   : > { %2049 = vrot.lane.b32.xlu1 %v2000_v57, %s3898_s18  ;;  %v2541_v12 = vsel %vm4237_vm15, %v2539_v59, %v2540_v4  ;;  %v1661_v19 = vld [vmem:[#allocation2 + $0x18] sm:$0xf]  ;;  %v4289_v20 = vld [vmem:[#allocation2 + $0x4] sm:$0xf]  ;;  %v1135_v21 = vrot.slane %v1133_v1, 4  ;;  %v1138_v22 = vrot.slane %v1136_v2, 5 }
 0x12f   : > { %v1989_v24 = vrot.slane %v4281_v9, 5  ;;  %v1459_v26 = vrot.slane %v1397_v10, 5  ;;  %v1394_v27 = vld [vmem:[#allocation2 + $0x14] sm:$0x1]  ;;  %v1451_v29 = vrot.slane %v1449_v11, 4  ;;  %v1707_v31 = vshrl.u32 %v1661_v19, 16 }
 0x130   : > { %1504 = vrot.lane.b32.xlu0 %v1457_v8, %s3897_s15  ;;  %v1941_v28 = vld [vmem:[#allocation2 + $0x14] sm:$0x1]  ;;  %v1662_v30 = vld [vmem:[#allocation2 + $0x1c] sm:$0xf]  ;;  %v1710_v32 = vshll.u32 %v1661_v19, 16  ;;  %v1164_v16 = vrot.slane %v1163_v15, 4  ;;  %v1139_v37 = vor.u32 %v1138_v22, %v1135_v21 }
 0x131   : > { %v1460_v33 = vsel %vm4237_vm15, %v1458_v13, %v1459_v26  ;;  %v4295_v34 = vrot.slane %v1166_v17, 5  ;;  %v1142_v35 = vshll.u32 %v4289_v20, 16  ;;  %v1452_v36 = vrot.slane %v1394_v27, 5  ;;  %v1392_v39 = vld [vmem:[#allocation2 + $0xc] sm:$0xe] }
 0x132   : > { %2593 = vrot.lane.b32.xlu1 %v2541_v12, %s3899_s8  ;;  %v1991_v38 = vrot.slane %v1989_v24, 4  ;;  %v2113_v41 = vld [vmem:[#allocation2 + $0x30] sm:$0xf]  ;;  %v1992_v42 = vrot.slane %v1941_v28, 5  ;;  %v1716_v43 = vshll.u32 %v1662_v30, 16  ;;  %v1709_v48 = vrot.slane %v1707_v31, 4 }
 0x133   : > { %v2206_v44 = vld [vmem:[#allocation2 + $0x18] sm:$0xf]  ;;  %v2123_v46 = vld [vmem:[#allocation2 + $0x6c] sm:$0xf]  ;;  %v1453_v5 = vsel %vm4237_vm15, %v1451_v29, %v1452_v36  ;;  %v1712_v49 = vrot.slane %v1710_v32, 5  ;;  %v1169_v51 = vsel %vm4304_vm2, %v1164_v16, %v4295_v34  ;;  %v4315_v52 = vrot.slane %v1142_v35, 5 }
 0x134   : > { %1605 = vrot.lane.b32.xlu0 %v1567_v14, %s3895_s13  ;;  %v4310_v50 = vld [vmem:[#allocation2 + $0x1c] sm:$0xf]  ;;  %v3340_v54 = vrot.slane %v1392_v39, 9  ;;  %v1720_v55 = vshrl.u32 %v1662_v30, 16  ;;  %v4317_v56 = vld [vmem:[#allocation2 + $0xc] sm:$0xe]  ;;  %v1993_v58 = vsel %vm4237_vm15, %v1991_v38, %v1992_v42  ;;  %v480_v12 = vadd.f32 %v4151_v47, %v479_v25 }
 0x135   : > { %v1140_v57 = vrot.slane %v1139_v37, 4  ;;  %v2231_v59 = vshrl.u32 %v2206_v44, 16  ;;  %v4325_v63 = vrot.slane %v1716_v43, 5  ;;  %v2234_v1 = vshll.u32 %v2206_v44, 16  ;;  %v1111_v19 = vld [vmem:[#allocation2 + $0x18] sm:$0xf] }
 0x136   : > { %1506 = vrot.lane.b32.xlu1 %v1460_v33, %s3897_s15  ;;  %v1450_v62 = vsel %vm4237_vm15, %v3340_v54, %v1449_v11  ;;  %v2240_v2 = vshll.u32 %v4310_v50, 16  ;;  %v1713_v4 = vor.u32 %v1712_v49, %v1709_v48  ;;  %v3347_v8 = vrot.slane %v4317_v56, 9  ;;  %v1045_v54 = vld [vmem:[#allocation2 + $0x3c] sm:$0xf] }
 0x137   : > { %v520_v10 = vmax.f32 %v488_v60, 0.0  ;;  %v2244_v13 = vshrl.u32 %v4310_v50, 16  ;;  %v4332_v3 = vrot.slane %v1720_v55, 4  ;;  %v491_v14 = vadd.f32 %v3542_v40, %v4151_v47  ;;  %v1112_v55 = vld [vmem:[#allocation2 + $0x1c] sm:$0xf] }
 0x138   : > { %2149 = vrot.lane.b32.xlu0 %v2113_v41, %s3896_s20  ;;  %v483_v11 = vadd.f32 %v4151_v47, %v482_v61  ;;  %v1145_v15 = vsel %vm4304_vm2, %v1140_v57, %v4315_v52  ;;  %v4340_v17 = vrot.slane %v2231_v59, 4  ;;  %v518_v22 = vmax.f32 %v480_v12, 0.0  ;;  %v1052_v41 = vld [vmem:[#allocation2 + $0x48] sm:$0xf]  ;;  %v1663_v12 = vld [vmem:[#allocation2 + $0x20] sm:$0x1] }
 0x139   : > { %v3434_v21 = vpack.c.bf16 %v520_v10, %v520_v10  ;;  %v4342_v25 = vrot.slane %v2234_v1, 5  ;;  %v4344_v26 = vrot.slane %v2240_v2, 5  ;;  %v521_v27 = vmax.f32 %v491_v14, 0.0  ;;  %v1049_v10 = vld [vmem:[#allocation2 + $0x44] sm:$0x1] }
 0x13a   : > { %1328 = vrot.lane.b32.xlu1 %v1169_v51, %s5206_s17  ;;  %v519_v28 = vmax.f32 %v483_v11, 0.0  ;;  %v1714_v29 = vrot.slane %v1713_v4, 4  ;;  %v3432_v32 = vpack.c.bf16 %v518_v22, %v518_v22  ;;  %v1723_v33 = vor.u32 %v4332_v3, %v4325_v63  ;;  %v1056_v4 = vld [vmem:[#allocation2 + $0x50] sm:$0x1] }
 0x13b   : > { %v942_v30 = vshrl.u32 %v3434_v21, 16  ;;  %v945_v31 = vshll.u32 %v3434_v21, 16  ;;  %v1181_v16 = vshrl.u32 %v1111_v19, 16  ;;  %v3435_v35 = vpack.c.bf16 %v521_v27, %v521_v27  ;;  %v2114_v27 = vld [vmem:[#allocation2 + $0x34] sm:$0xf] }
 0x13c   : > { %2169 = vrot.lane.b32.xlu0 %v2123_v46, %s3896_s20  ;;  %v3433_v36 = vpack.c.bf16 %v519_v28, %v519_v28  ;;  %v1184_v37 = vshll.u32 %v1111_v19, 16  ;;  %v925_v39 = vshrl.u32 %v3432_v32, 16  ;;  %v928_v40 = vshll.u32 %v3432_v32, 16 }
 0x13d   : > { %v944_v38 = vrot.slane %v942_v30, 7  ;;  %v950_v42 = vshrl.u32 %v3435_v35, 16  ;;  %v953_v43 = vshll.u32 %v3435_v35, 16  ;;  %v1719_v48 = vsel %vm4304_vm2, %v1714_v29, %v4325_v63  ;;  %v1113_v63 = vld [vmem:[#allocation2 + $0x20] sm:$0x1] }
 0x13e   : > { %1502 = vrot.lane.b32.xlu1 %v1453_v5, %s3897_s15  ;;  %v933_v44 = vshrl.u32 %v3433_v36, 16  ;;  %v936_v46 = vshll.u32 %v3433_v36, 16  ;;  %v1568_v5 = vld [vmem:[#allocation2 + $0x34] sm:$0xf]  ;;  %v2237_v49 = vor.u32 %v4342_v25, %v4340_v17  ;;  %v927_v51 = vrot.slane %v925_v39, 7 }
 0x13f   : > { %v947_v50 = vor.u32 %v945_v31, %v944_v38  ;;  %v1183_v57 = vrot.slane %v1181_v16, 4  ;;  %v952_v59 = vrot.slane %v950_v42, 7  ;;  %v1186_v61 = vrot.slane %v1184_v37, 5  ;;  %v2208_v36 = vld [vmem:[#allocation2 + $0x20] sm:$0x1] }
 0x140   : > { %1324 = vrot.lane.b32.xlu0 %v1145_v15, %s5206_s17  ;;  %v935_v60 = vrot.slane %v933_v44, 7  ;;  %v930_v1 = vor.u32 %v928_v40, %v927_v51  ;;  %v931_v2 = vrot.slane %v927_v51, 4  ;;  %v1190_v19 = vshll.u32 %v1112_v55, 16  ;;  %v1658_v37 = vld [vmem:[#allocation2 + $0xc] sm:$0xf] }
 0x141   : > { %v955_v14 = vor.u32 %v953_v43, %v952_v59  ;;  %v957_v11 = vrot.slane %v952_v59, 4  ;;  %v1194_v21 = vshrl.u32 %v1112_v55, 16  ;;  %v2246_v22 = vrot.slane %v2244_v13, 4 }
 0x142   : > { %2045 = vrot.lane.b32.xlu1 %v1993_v58, %s3898_s18  ;;  %v948_v58 = vrot.slane %v944_v38, 4  ;;  %v938_v15 = vor.u32 %v936_v46, %v935_v60  ;;  %v940_v17 = vrot.slane %v935_v60, 4  ;;  %v1046_v25 = vsel %vm4175_vm10, %v930_v1, %v1045_v54  ;;  %v2124_v38 = vld [vmem:[#allocation2 + $0x70] sm:$0xf]  ;;  %v1107_v1 = vld [vmem:[#allocation2 + $0x8] sm:$0x1] }
 0x143   : > { %1047 = vst [vmem:[#allocation2 + $0x3c] sm:$0xf] %v1046_v25  ;;  %v1057_v29 = vsel %vm4094_vm4, %v957_v11, %v1056_v4  ;;  %v1726_v13 = vshll.u32 %v1663_v12, 16  ;;  %v1990_v32 = vsel %vm4237_vm15, %v3347_v8, %v1989_v24  ;;  %v2238_v16 = vrot.slane %v2237_v49, 4  ;;  %v1659_v54 = vld [vmem:[#allocation2 + $0x10] sm:$0xf] }
 0x144   : > { %1500 = vrot.lane.b32.xlu0 %v1450_v62, %s3897_s15  ;;  %v1053_v62 = vsel %vm4175_vm10, %v947_v50, %v1052_v41  ;;  %v956_v28 = vsel %vm4192_vm11, %v948_v58, %v955_v14  ;;  %v939_v30 = vsel %vm4192_vm11, %v931_v2, %v938_v15  ;;  %v1050_v31 = vsel %vm4094_vm4, %v940_v17, %v1049_v10  ;;  %v1110_v17 = vld [vmem:[#allocation2 + $0x14] sm:$0x1]  ;;  %v1948_v25 = vld [vmem:[#allocation2 + $0x30] sm:$0xe] }
 0x145   : > { %1054 = vst [vmem:[#allocation2 + $0x48] sm:$0xf] %v1053_v62  ;;  %1055 = vst.msk [vmem:[#allocation2 + $0x4c] sm:$0xf] %vm758_vm8, %v956_v28  ;;  %v1187_v35 = vor.u32 %v1186_v61, %v1183_v57  ;;  %v1724_v39 = vrot.slane %v1723_v33, 4  ;;  %v1192_v40 = vrot.slane %v1190_v19, 5  ;;  %v2247_v41 = vor.u32 %v2246_v22, %v4344_v26 }
 0x146   : > { %1607 = vrot.lane.b32.xlu1 %v1568_v5, %s3895_s13  ;;  %1058 = vst [vmem:[#allocation2 + $0x50] sm:$0x1] %v1057_v29  ;;  %1048 = vst.msk [vmem:[#allocation2 + $0x40] sm:$0xf] %vm758_vm8, %v939_v30  ;;  %v1196_v9 = vrot.slane %v1194_v21, 4  ;;  %v1728_v56 = vrot.slane %v1726_v13, 5  ;;  %v2243_v24 = vsel %vm4304_vm2, %v2238_v16, %v4344_v26 }
 0x147   : > { %1051 = vst [vmem:[#allocation2 + $0x44] sm:$0x1] %v1050_v31  ;;  %v2250_v42 = vshll.u32 %v2208_v36, 16  ;;  %v1188_v8 = vrot.slane %v1187_v35, 4  ;;  %v1683_v43 = vshrl.u32 %v1658_v37, 16  ;;  %v1686_v44 = vshll.u32 %v1658_v37, 16 }
 0x148   : > { %1878 = vrot.lane.b32.xlu0 %v1719_v48, %s3901_s10  ;;  %v1729_v3 = vsel %vm4304_vm2, %v1724_v39, %v1728_v56  ;;  %v2248_v33 = vrot.slane %v2247_v41, 4  ;;  %v1197_v46 = vor.u32 %v1196_v9, %v1192_v40  ;;  %v1146_v5 = vshrl.u32 %v4289_v20, 16  ;;  %v2111_v20 = vld [vmem:[#allocation2 + $0x24] sm:$0xf]  ;;  %v2112_v19 = vld [vmem:[#allocation2 + $0x28] sm:$0xf] }
 0x149   : > { %v2252_v48 = vrot.slane %v2250_v42, 5  ;;  %v1193_v26 = vsel %vm4304_vm2, %v1188_v8, %v1192_v40  ;;  %v1200_v49 = vshll.u32 %v1113_v63, 16  ;;  %v1685_v50 = vrot.slane %v1683_v43, 4  ;;  %v1949_v13 = vld [vmem:[#allocation2 + $0x34] sm:$0xf] }
 0x14a   : > { %2151 = vrot.lane.b32.xlu1 %v2114_v27, %s3896_s20  ;;  %v1688_v51 = vrot.slane %v1686_v44, 5  ;;  %v1170_v55 = vshrl.u32 %v4277_v0, 16  ;;  %v1198_v58 = vrot.slane %v1197_v46, 4  ;;  %v1692_v61 = vshll.u32 %v1659_v54, 16  ;;  %v1565_v0 = vld [vmem:[#allocation2 + $0x24] sm:$0xf]  ;;  %v3545_v27 = vpop.f32.mrf.mxu0 }
 0x14b   : > { %v2253_v57 = vsel %vm4304_vm2, %v2248_v33, %v2252_v48  ;;  %v1202_v59 = vrot.slane %v1200_v49, 5  ;;  %v1148_v62 = vrot.slane %v1146_v5, 4  ;;  %v1696_v4 = vshrl.u32 %v1659_v54, 16  ;;  %v1566_v16 = vld [vmem:[#allocation2 + $0x28] sm:$0xf] }
 0x14c   : > { %2043 = vrot.lane.b32.xlu0 %v1990_v32, %s3898_s18  ;;  %v1689_v60 = vor.u32 %v1688_v51, %v1685_v50  ;;  %v1172_v10 = vrot.slane %v1170_v55, 4  ;;  %v1694_v14 = vrot.slane %v1692_v61, 5  ;;  %v1152_v15 = vshll.u32 %v1107_v1, 16  ;;  %v1075_v32 = vld [vmem:[#allocation2 + $0xc] sm:$0xf]  ;;  %v495_v40 = vpop.f32.mrf.mxu0 }
 0x14d   : > { %v1203_v2 = vsel %vm4304_vm2, %v1198_v58, %v1202_v59  ;;  %v1149_v11 = vor.u32 %v1148_v62, %v4315_v52  ;;  %v1698_v22 = vrot.slane %v1696_v4, 4  ;;  %v1176_v31 = vshll.u32 %v1110_v17, 16  ;;  %v1660_v52 = vld [vmem:[#allocation2 + $0x14] sm:$0x1]  ;;  %1091 = vst.msk [vmem:[#allocation3 + $0x8] sm:$0xf] %vm758_vm8, %v1075_v32 }
 0x14e   : > { %2171 = vrot.lane.b32.xlu1 %v2124_v38, %s3896_s20  ;;  %v1690_v12 = vrot.slane %v1689_v60, 4  ;;  %v1173_v21 = vor.u32 %v1172_v10, %v4295_v34  ;;  %v1154_v30 = vrot.slane %v1152_v15, 5  ;;  %v3350_v34 = vrot.slane %v1948_v25, 9  ;;  %v2493_v38 = vld [vmem:[#allocation2 + $0x30] sm:$0xe]  ;;  %v3546_v50 = vpop.f32.mrf.mxu0 }
 0x14f   : > { %v1150_v29 = vrot.slane %v1149_v11, 4  ;;  %v1699_v36 = vor.u32 %v1698_v22, %v1694_v14  ;;  %v2010_v37 = vrot.slane %v1949_v13, 5  ;;  %v553_v39 = vld [vmem:[#allocation2 + $0x60] sm:$0x1]  ;;  %v1178_v9 = vrot.slane %v1176_v31, 5 }
 0x150   : > { %2422 = vrot.lane.b32.xlu0 %v2243_v24, %s3902_s12  ;;  %v1695_v28 = vsel %vm4304_vm2, %v1690_v12, %v1694_v14  ;;  %v1174_v35 = vrot.slane %v1173_v21, 4  ;;  %v1702_v56 = vshll.u32 %v1660_v52, 16  ;;  %v2494_v42 = vld [vmem:[#allocation2 + $0x34] sm:$0xf]  ;;  %v504_v24 = vadd.f32 %v3545_v27, %v4151_v47  ;;  %v585_v43 = vld [vmem:[#allocation2 + $0x68] sm:$0x1]  ;;  %v498_v22 = vpop.f32.mrf.mxu0 }
 0x151   : > { %v1155_v41 = vsel %vm4304_vm2, %v1150_v29, %v1154_v30  ;;  %v550_v8 = vld [vmem:[#allocation2 + $0x54] sm:$0x1]  ;;  %v1700_v63 = vrot.slane %v1699_v36, 4  ;;  %v554_v33 = vsel %vm4094_vm4, 0, %v553_v39  ;;  %v2011_v46 = vsel %vm4237_vm15, %v3350_v34, %v2010_v37  ;;  %v1950_v48 = vld [vmem:[#allocation2 + $0x38] sm:$0x1] }
 0x152   : > { %1880 = vrot.lane.b32.xlu1 %v1729_v3, %s3901_s10  ;;  %v1179_v44 = vsel %vm4304_vm2, %v1174_v35, %v1178_v9  ;;  %v3357_v3 = vrot.slane %v2493_v38, 9  ;;  %v2551_v5 = vrot.slane %v2494_v42, 5  ;;  %555 = vst [vmem:[#allocation2 + $0x60] sm:$0x1] %v554_v33  ;;  %v496_v49 = vadd.f32 %v4151_v47, %v495_v40  ;;  %v1073_v51 = vld [vmem:[#allocation2] sm:$0xf] }
 0x153   : > { %v1704_v54 = vrot.slane %v1702_v56, 5  ;;  %v551_v55 = vsel %vm4094_vm4, 0, %v550_v8  ;;  %v586_v58 = vsel %vm4115_vm6, 0, %v585_v43  ;;  %1089 = vst.msk [vmem:[#allocation3] sm:$0xf] %vm758_vm8, %v1073_v51  ;;  %v2012_v1 = vrot.slane %v2010_v37, 4 }
 0x154   : > { %1332 = vrot.lane.b32.xlu0 %v1193_v26, %s5206_s17  ;;  %v524_v26 = vmax.f32 %v504_v24, 0.0  ;;  %v1402_v59 = vld [vmem:[#allocation2 + $0x34] sm:$0xf]  ;;  %v522_v61 = vmax.f32 %v496_v49, 0.0  ;;  %552 = vst [vmem:[#allocation2 + $0x54] sm:$0x1] %v551_v55  ;;  %v2552_v10 = vsel %vm4237_vm15, %v3357_v3, %v2551_v5 }
 0x155   : > { %587 = vst [vmem:[#allocation2 + $0x68] sm:$0x1] %v586_v58  ;;  %v1705_v62 = vsel %vm4304_vm2, %v1700_v63, %v1704_v54  ;;  %v2495_v4 = vld [vmem:[#allocation2 + $0x38] sm:$0x1]  ;;  %v1470_v15 = vrot.slane %v1402_v59, 5  ;;  %v2553_v17 = vrot.slane %v2551_v5, 4 }
 0x156   : > { %2424 = vrot.lane.b32.xlu1 %v2253_v57, %s3902_s12  ;;  %v507_v57 = vadd.f32 %v3546_v50, %v4151_v47  ;;  %v3438_v60 = vpack.c.bf16 %v524_v26, %v524_v26  ;;  %v3436_v14 = vpack.c.bf16 %v522_v61, %v522_v61  ;;  %v2554_v25 = vrot.slane %v2495_v4, 5  ;;  %v4438_v27 = vld [vmem:[#allocation2 + $0x28] sm:$0xf]  ;;  %v1667_v35 = vld [vmem:[#allocation2 + $0x30] sm:$0xf] }
 0x157   : > { %v3739_v37 = vld [vmem:[%s5195_s4] ss:$0 sm:$0xff]  ;;  %v582_v39 = vld [vmem:[#allocation2 + $0x5c] sm:$0x1]  ;;  %v1077_v3 = vld [vmem:[#allocation2 + $0x18] sm:$0xf] }
 0x158   : > { %2145 = vrot.lane.b32.xlu0 %v2111_v20, %s3896_s20  ;;  %v1401_v20 = vld [vmem:[#allocation2 + $0x30] sm:$0xe]  ;;  %v525_v47 = vmax.f32 %v507_v57, 0.0  ;;  %v979_v12 = vshll.u32 %v3438_v60, 16  ;;  %v959_v29 = vshrl.u32 %v3436_v14, 16  ;;  %v962_v30 = vshll.u32 %v3436_v14, 16 }
 0x159   : > { %v3343_v11 = vrot.slane %v1401_v20, 9  ;;  %v1066_v13 = vld [vmem:[#allocation2 + $0x60] sm:$0xf]  ;;  %v499_v38 = vadd.f32 %v3739_v37, %v498_v22  ;;  %v2555_v24 = vsel %vm4237_vm15, %v2553_v17, %v2554_v25  ;;  %v1571_v33 = vld [vmem:[#allocation2 + $0x48] sm:$0xf]  ;;  %v583_v26 = vsel %vm4115_vm6, 0, %v582_v39 }
 0x15a   : > { %1334 = vrot.lane.b32.xlu1 %v1203_v2, %s5206_s17  ;;  %v2013_v2 = vrot.slane %v1950_v48, 5  ;;  %v3439_v21 = vpack.c.bf16 %v525_v47, %v525_v47  ;;  %v4443_v34 = vrot.slane %v959_v29, 7  ;;  %1093 = vst.msk [vmem:[#allocation3 + $0x10] sm:$0xf] %vm758_vm8, %v1077_v3  ;;  %v2492_v49 = vld [vmem:[#allocation2 + $0x2c] sm:$0x1] }
 0x15b   : > { %v1471_v40 = vsel %vm4237_vm15, %v3343_v11, %v1470_v15  ;;  %v1059_v56 = vld [vmem:[#allocation2 + $0x54] sm:$0xf]  ;;  %v523_v63 = vmax.f32 %v499_v38, 0.0  ;;  %v4461_v50 = vld [vmem:[#allocation2 + $0x28] sm:$0xf]  ;;  %v1755_v57 = vshrl.u32 %v1667_v35, 16 }
 0x15c   : > { %1601 = vrot.lane.b32.xlu0 %v1565_v0, %s3895_s13  ;;  %v976_v0 = vshrl.u32 %v3438_v60, 16  ;;  %v2014_v31 = vsel %vm4237_vm15, %v2012_v1, %v2013_v2  ;;  %v984_v52 = vshrl.u32 %v3439_v21, 16  ;;  %v987_v32 = vshll.u32 %v3439_v21, 16  ;;  %584 = vst [vmem:[#allocation2 + $0x5c] sm:$0x1] %v583_v26 }
 0x15d   : > { %v964_v43 = vor.u32 %v962_v30, %v4443_v34  ;;  %v3437_v54 = vpack.c.bf16 %v523_v63, %v523_v63  ;;  %v1078_v55 = vld [vmem:[#allocation2 + $0x1c] sm:$0xf]  ;;  %v1758_v58 = vshll.u32 %v1667_v35, 16  ;;  %v2490_v59 = vld [vmem:[#allocation2 + $0x24] sm:$0xe]  ;;  %v2547_v1 = vrot.slane %v2492_v49, 5 }
 0x15e   : > { %2147 = vrot.lane.b32.xlu1 %v2112_v19, %s3896_s20  ;;  %v1403_v19 = vld [vmem:[#allocation2 + $0x38] sm:$0x1]  ;;  %v986_v42 = vrot.slane %v984_v52, 7  ;;  %1094 = vst.msk [vmem:[#allocation3 + $0x14] sm:$0xf] %vm758_vm8, %v1078_v55  ;;  %v1463_v4 = vrot.slane %v4461_v50, 5 }
 0x15f   : > { %v1060_v51 = vsel %vm4175_vm10, %v964_v43, %v1059_v56  ;;  %v967_v23 = vshrl.u32 %v3437_v54, 16  ;;  %v970_v60 = vshll.u32 %v3437_v54, 16  ;;  %v1400_v2 = vld [vmem:[#allocation2 + $0x2c] sm:$0x1]  ;;  %v1398_v47 = vld [vmem:[#allocation2 + $0x24] sm:$0xe] }
 0x160   : > { %1874 = vrot.lane.b32.xlu0 %v1695_v28, %s3901_s10  ;;  %v978_v28 = vrot.slane %v976_v0, 7  ;;  %v989_v5 = vor.u32 %v987_v32, %v986_v42  ;;  %v991_v48 = vrot.slane %v986_v42, 4  ;;  %1061 = vst [vmem:[#allocation2 + $0x54] sm:$0xf] %v1060_v51  ;;  %v2212_v0 = vld [vmem:[#allocation2 + $0x30] sm:$0xf] }
 0x161   : > { %v969_v14 = vrot.slane %v967_v23, 7  ;;  %v2117_v11 = vld [vmem:[#allocation2 + $0x48] sm:$0xf]  ;;  %v1757_v17 = vrot.slane %v1755_v57, 4  ;;  %v1947_v21 = vld [vmem:[#allocation2 + $0x2c] sm:$0x1] }
 0x162   : > { %1603 = vrot.lane.b32.xlu1 %v1566_v16, %s3895_s13  ;;  %v1473_v16 = vrot.slane %v1403_v19, 5  ;;  %v981_v36 = vor.u32 %v979_v12, %v978_v28  ;;  %v982_v9 = vrot.slane %v978_v28, 4  ;;  %v965_v12 = vrot.slane %v4443_v34, 4  ;;  %v1668_v22 = vld [vmem:[#allocation2 + $0x34] sm:$0xf] }
 0x163   : > { %v1760_v19 = vrot.slane %v1758_v58, 5  ;;  %v972_v25 = vor.u32 %v970_v60, %v969_v14  ;;  %v974_v28 = vrot.slane %v969_v14, 4  ;;  %v1465_v30 = vrot.slane %v1463_v4, 4  ;;  %v1063_v52 = vld [vmem:[#allocation2 + $0x5c] sm:$0x1] }
 0x164   : > { %1326 = vrot.lane.b32.xlu0 %v1155_v41, %s5206_s17  ;;  %v2544_v41 = vrot.slane %v4438_v27, 5  ;;  %v1067_v8 = vsel %vm4175_vm10, %v981_v36, %v1066_v13  ;;  %v990_v18 = vsel %vm4192_vm11, %v982_v9, %v989_v5  ;;  %v2279_v32 = vshrl.u32 %v2212_v0, 16  ;;  %v1074_v34 = vld [vmem:[#allocation2 + $0x4] sm:$0xf]  ;;  %v1076_v37 = vld [vmem:[#allocation2 + $0x10] sm:$0xf] }
 0x165   : > { %1068 = vst [vmem:[#allocation2 + $0x60] sm:$0xf] %v1067_v8  ;;  %1069 = vst.msk [vmem:[#allocation2 + $0x64] sm:$0xf] %vm758_vm8, %v990_v18  ;;  %v973_v35 = vsel %vm4192_vm11, %v965_v12, %v972_v25  ;;  %v1064_v36 = vsel %vm4094_vm4, %v974_v28, %v1063_v52  ;;  %v3342_v39 = vrot.slane %v1398_v47, 9  ;;  %v1764_v7 = vshll.u32 %v1668_v22, 16 }
 0x166   : > { %1330 = vrot.lane.b32.xlu1 %v1179_v44, %s5206_s17  ;;  %v1070_v44 = vld [vmem:[#allocation2 + $0x68] sm:$0x1]  ;;  %v1117_v9 = vld [vmem:[#allocation2 + $0x30] sm:$0xf]  ;;  %1062 = vst.msk [vmem:[#allocation2 + $0x58] sm:$0xf] %vm758_vm8, %v973_v35 }
 0x167   : > { %v1071_v20 = vsel %vm4094_vm4, %v991_v48, %v1070_v44  ;;  %1065 = vst [vmem:[#allocation2 + $0x5c] sm:$0x1] %v1064_v36  ;;  %1090 = vst.msk [vmem:[#allocation3 + $0x4] sm:$0xf] %vm758_vm8, %v1074_v34  ;;  %v1768_v53 = vshrl.u32 %v1668_v22, 16  ;;  %v2006_v42 = vrot.slane %v1947_v21, 5  ;;  %v1464_v44 = vsel %vm4237_vm15, %v3342_v39, %v1463_v4 }
 0x168   : > { %2055 = vrot.lane.b32.xlu0 %v2011_v46, %s3898_s18  ;;  %v1472_v46 = vrot.slane %v1470_v15, 4  ;;  %1072 = vst [vmem:[#allocation2 + $0x68] sm:$0x1] %v1071_v20  ;;  %v3356_v15 = vrot.slane %v2490_v59, 9  ;;  %1092 = vst.msk [vmem:[#allocation3 + $0xc] sm:$0xf] %vm758_vm8, %v1076_v37 }
 0x169   : > { %v1229_v43 = vshrl.u32 %v1117_v9, 16  ;;  %v1945_v3 = vld [vmem:[#allocation2 + $0x24] sm:$0xe]  ;;  %v1770_v26 = vrot.slane %v1768_v53, 4  ;;  %v2227_v49 = vld [vmem:[#allocation2 + $0x6c] sm:$0xf] }
 0x16a   : > { %1876 = vrot.lane.b32.xlu1 %v1705_v62, %s3901_s10  ;;  %v1474_v61 = vsel %vm4237_vm15, %v1472_v46, %v1473_v16  ;;  %v2546_v62 = vrot.slane %v2544_v41, 4  ;;  %v2282_v16 = vshll.u32 %v2212_v0, 16  ;;  %v2545_v38 = vsel %vm4237_vm15, %v3356_v15, %v2544_v41  ;;  %v2213_v41 = vld [vmem:[#allocation2 + $0x34] sm:$0xf]  ;;  %v1669_v51 = vld [vmem:[#allocation2 + $0x38] sm:$0x1] }
 0x16b   : > { %v1766_v46 = vrot.slane %v1764_v7, 5  ;;  %v2288_v5 = vshll.u32 %v2213_v41, 16  ;;  %v2292_v48 = vshrl.u32 %v2213_v41, 16  ;;  %v3349_v54 = vrot.slane %v1945_v3, 9  ;;  %v1118_v57 = vld [vmem:[#allocation2 + $0x34] sm:$0xf] }
 0x16c   : > { %2599 = vrot.lane.b32.xlu0 %v2552_v10, %s3899_s8  ;;  %v4478_v10 = vld [vmem:[#allocation2 + $0x28] sm:$0xf]  ;;  %v2548_v29 = vsel %vm4237_vm15, %v2546_v62, %v2547_v1  ;;  %v2284_v8 = vrot.slane %v2282_v16, 5  ;;  %v1231_v58 = vrot.slane %v1229_v43, 4  ;;  %v2399_v59 = vshrl.u32 %v2227_v49, 16 }
 0x16d   : > { %v2003_v13 = vrot.slane %v4478_v10, 5  ;;  %v2402_v23 = vshll.u32 %v2227_v49, 16  ;;  %v2290_v60 = vrot.slane %v2288_v5, 5  ;;  %v1774_v62 = vshll.u32 %v1669_v51, 16  ;;  %v2214_v10 = vld [vmem:[#allocation2 + $0x38] sm:$0x1] }
 0x16e   : > { %2057 = vrot.lane.b32.xlu1 %v2014_v31, %s3898_s18  ;;  %v1466_v31 = vrot.slane %v1400_v2, 5  ;;  %v2294_v1 = vrot.slane %v2292_v48, 4  ;;  %v1572_v2 = vld [vmem:[#allocation2 + $0x4c] sm:$0xf]  ;;  %v1238_v4 = vshll.u32 %v1118_v57, 16  ;;  %v1242_v47 = vshrl.u32 %v1118_v57, 16 }
 0x16f   : > { %v2005_v56 = vrot.slane %v2003_v13, 4  ;;  %v2004_v0 = vsel %vm4237_vm15, %v3349_v54, %v2003_v13  ;;  %v2228_v12 = vld [vmem:[#allocation2 + $0x70] sm:$0xf]  ;;  %v2401_v15 = vrot.slane %v2399_v59, 4  ;;  %v1776_v21 = vrot.slane %v1774_v62, 5 }
 0x170   : > { %1512 = vrot.lane.b32.xlu0 %v1471_v40, %s3897_s15  ;;  %v1761_v40 = vor.u32 %v1760_v19, %v1757_v17  ;;  %v1467_v27 = vsel %vm4237_vm15, %v1465_v30, %v1466_v31  ;;  %v2404_v17 = vrot.slane %v2402_v23, 5  ;;  %v2295_v22 = vor.u32 %v2294_v1, %v2290_v60  ;;  %v2118_v28 = vld [vmem:[#allocation2 + $0x4c] sm:$0xf]  ;;  %v1119_v13 = vld [vmem:[#allocation2 + $0x38] sm:$0x1] }
 0x171   : > { %v2007_v50 = vsel %vm4237_vm15, %v2005_v56, %v2006_v42  ;;  %v2298_v25 = vshll.u32 %v2214_v10, 16  ;;  %v2408_v30 = vshll.u32 %v2228_v12, 16  ;;  %v2412_v31 = vshrl.u32 %v2228_v12, 16  ;;  %v2209_v34 = vld [vmem:[#allocation2 + $0x24] sm:$0xf] }
 0x172   : > { %2601 = vrot.lane.b32.xlu1 %v2555_v24, %s3899_s8  ;;  %v2281_v24 = vrot.slane %v2279_v32, 4  ;;  %v1762_v63 = vrot.slane %v1761_v40, 4  ;;  %v1244_v52 = vrot.slane %v1242_v47, 4  ;;  %v2405_v36 = vor.u32 %v2404_v17, %v2401_v15  ;;  %v2229_v53 = vld [vmem:[#allocation2 + $0x74] sm:$0x1] }
 0x173   : > { %v2300_v39 = vrot.slane %v2298_v25, 5  ;;  %v2410_v40 = vrot.slane %v2408_v30, 5  ;;  %v1248_v7 = vshll.u32 %v1119_v13, 16  ;;  %v2255_v42 = vshrl.u32 %v2209_v34, 16  ;;  %v1115_v62 = vld [vmem:[#allocation2 + $0x28] sm:$0xf] }
 0x174   : > { %1613 = vrot.lane.b32.xlu0 %v1571_v33, %s3895_s13  ;;  %v1232_v33 = vshll.u32 %v1117_v9, 16  ;;  %v2285_v55 = vor.u32 %v2284_v8, %v2281_v24  ;;  %v1767_v18 = vsel %vm4304_vm2, %v1762_v63, %v1766_v46  ;;  %v2258_v41 = vshll.u32 %v2209_v34, 16  ;;  %v1114_v63 = vld [vmem:[#allocation2 + $0x24] sm:$0xf]  ;;  %v1569_v30 = vld [vmem:[#allocation2 + $0x3c] sm:$0xf] }
 0x175   : > { %v2406_v8 = vrot.slane %v2405_v36, 4  ;;  %v2257_v49 = vrot.slane %v2255_v42, 4  ;;  %v1205_v54 = vshrl.u32 %v1114_v63, 16  ;;  %v1214_v15 = vshll.u32 %v1115_v62, 16  ;;  %v2116_v36 = vld [vmem:[#allocation2 + $0x40] sm:$0xf] }
 0x176   : > { %1514 = vrot.lane.b32.xlu1 %v1474_v61, %s3897_s15  ;;  %v1234_v20 = vrot.slane %v1232_v33, 5  ;;  %v1771_v61 = vor.u32 %v1770_v26, %v1766_v46  ;;  %v2286_v14 = vrot.slane %v2285_v55, 4  ;;  %v1250_v46 = vrot.slane %v1248_v7, 5  ;;  %v2210_v26 = vld [vmem:[#allocation2 + $0x28] sm:$0xf] }
 0x177   : > { %v2411_v51 = vsel %vm4304_vm2, %v2406_v8, %v2410_v40  ;;  %v1208_v55 = vshll.u32 %v1114_v63, 16  ;;  %v1207_v47 = vrot.slane %v1205_v54, 4  ;;  %v1216_v34 = vrot.slane %v1214_v15, 5  ;;  %v1570_v63 = vld [vmem:[#allocation2 + $0x40] sm:$0xf] }
 0x178   : > { %2157 = vrot.lane.b32.xlu0 %v2117_v11, %s3896_s20  ;;  %v1235_v11 = vor.u32 %v1234_v20, %v1231_v58  ;;  %v1772_v19 = vrot.slane %v1771_v61, 4  ;;  %v2291_v16 = vsel %vm4304_vm2, %v2286_v14, %v2290_v60  ;;  %v1081_v20 = vld [vmem:[#allocation2 + $0x30] sm:$0xf]  ;;  %v2264_v60 = vshll.u32 %v2210_v26, 16  ;;  %v1082_v14 = vld [vmem:[#allocation2 + $0x34] sm:$0xf] }
 0x179   : > { %v2268_v61 = vshrl.u32 %v2210_v26, 16  ;;  %1097 = vst.msk [vmem:[#allocation3 + $0x20] sm:$0xf] %vm758_vm8, %v1081_v20  ;;  %v1210_v10 = vrot.slane %v1208_v55, 5  ;;  %1098 = vst.msk [vmem:[#allocation3 + $0x24] sm:$0xf] %vm758_vm8, %v1082_v14 }
 0x17a   : > { %2597 = vrot.lane.b32.xlu1 %v2548_v29, %s3899_s8  ;;  %v1240_v29 = vrot.slane %v1238_v4, 5  ;;  %v1236_v35 = vrot.slane %v1235_v11, 4  ;;  %v1777_v37 = vsel %vm4304_vm2, %v1772_v19, %v1776_v21  ;;  %v2266_v19 = vrot.slane %v2264_v60, 5  ;;  %v1079_v54 = vld [vmem:[#allocation2 + $0x24] sm:$0xf] }
 0x17b   : > { %v1218_v21 = vshrl.u32 %v1115_v62, 16  ;;  %v2270_v25 = vrot.slane %v2268_v61, 4  ;;  %v1955_v20 = vld [vmem:[#allocation2 + $0x4c] sm:$0xf]  ;;  %1095 = vst.msk [vmem:[#allocation3 + $0x18] sm:$0xf] %vm758_vm8, %v1079_v54 }
 0x17c   : > { %2595 = vrot.lane.b32.xlu0 %v2545_v38, %s3899_s8  ;;  %v2296_v38 = vrot.slane %v2295_v22, 4  ;;  %v1245_v9 = vor.u32 %v1244_v52, %v1240_v29  ;;  %v1241_v24 = vsel %vm4304_vm2, %v1236_v35, %v1240_v29  ;;  %v2211_v22 = vld [vmem:[#allocation2 + $0x2c] sm:$0x1]  ;;  %v1665_v29 = vld [vmem:[#allocation2 + $0x28] sm:$0xf]  ;;  %v1211_v52 = vor.u32 %v1210_v10, %v1207_v47 }
 0x17d   : > { %v1220_v7 = vrot.slane %v1218_v21, 4  ;;  %v1080_v62 = vld [vmem:[#allocation2 + $0x28] sm:$0xf]  ;;  %v1086_v47 = vld [vmem:[#allocation2 + $0x4c] sm:$0xf]  ;;  %vm1544_vm4 = vcmask 93248  }
 0x17e   : > { %1510 = vrot.lane.b32.xlu1 %v1467_v27, %s3897_s15  ;;  %v2414_v27 = vrot.slane %v2412_v31, 4  ;;  %v2301_v3 = vsel %vm4304_vm2, %v2296_v38, %v2300_v39  ;;  %v1246_v33 = vrot.slane %v1245_v9, 4  ;;  %v2271_v38 = vor.u32 %v2270_v25, %v2266_v19  ;;  %v1116_v9 = vld [vmem:[#allocation2 + $0x2c] sm:$0x1]  ;;  %1096 = vst.msk [vmem:[#allocation3 + $0x1c] sm:$0xf] %vm758_vm8, %v1080_v62 }
 0x17f   : > { %v1740_v39 = vshll.u32 %v1665_v29, 16  ;;  %v1212_v42 = vrot.slane %v1211_v52, 4  ;;  %1102 = vst.msk [vmem:[#allocation3 + $0x34] sm:$0xf] %vm758_vm8, %v1086_v47  ;;  %v1083_v14 = vld [vmem:[#allocation2 + $0x3c] sm:$0xf] }
 0x180   : > { %1508 = vrot.lane.b32.xlu0 %v1464_v44, %s3897_s15  ;;  %v2418_v44 = vshll.u32 %v2229_v53, 16  ;;  %v2415_v5 = vor.u32 %v2414_v27, %v2410_v40  ;;  %v1251_v59 = vsel %vm4304_vm2, %v1246_v33, %v1250_v46  ;;  %v1744_v40 = vshrl.u32 %v1665_v29, 16  ;;  %1099 = vst.msk [vmem:[#allocation3 + $0x28] sm:$0xf] %vm758_vm8, %v1083_v14  ;;  %v1084_v21 = vld [vmem:[#allocation2 + $0x40] sm:$0xf] }
 0x181   : > { %v1742_v33 = vrot.slane %v1740_v39, 5  ;;  %v1221_v46 = vor.u32 %v1220_v7, %v1216_v34  ;;  %1100 = vst.msk [vmem:[#allocation3 + $0x2c] sm:$0xf] %vm758_vm8, %v1084_v21  ;;  %v2501_v7 = vld [vmem:[#allocation2 + $0x50] sm:$0x1]  ;;  %vm1922_vm6 = vcmask 158848  }
 0x182   : > { %2053 = vrot.lane.b32.xlu1 %v2007_v50, %s3898_s18  ;;  %v2260_v50 = vrot.slane %v2258_v41, 5  ;;  %v2420_v58 = vrot.slane %v2418_v44, 5  ;;  %v2416_v23 = vrot.slane %v2415_v5, 4  ;;  %v1224_v44 = vshll.u32 %v1116_v9, 16  ;;  %v2498_v54 = vld [vmem:[#allocation2 + $0x44] sm:$0x1] }
 0x183   : > { %v1746_v5 = vrot.slane %v1744_v40, 4  ;;  %v1087_v47 = vld [vmem:[#allocation2 + $0x54] sm:$0xf]  ;;  %v3729_v21 = vld [vmem:[%s5193_s2 + $0x10] ss:$0 sps:$4 sm:$0x33]  }
 0x184   : > { %1886 = vrot.lane.b32.xlu0 %v1767_v18, %s3901_s10  ;;  %v1664_v18 = vld [vmem:[#allocation2 + $0x24] sm:$0xf]  ;;  %v2261_v4 = vor.u32 %v2260_v50, %v2257_v49  ;;  %v2421_v17 = vsel %vm4304_vm2, %v2416_v23, %v2420_v58  ;;  %v1666_v49 = vld [vmem:[#allocation2 + $0x2c] sm:$0x1]  ;;  %v1217_v50 = vsel %vm4304_vm2, %v1212_v42, %v1216_v34  ;;  %v1226_v58 = vrot.slane %v1224_v44, 5 }
 0x185   : > { %v1734_v12 = vshll.u32 %v1664_v18, 16  ;;  %v1222_v23 = vrot.slane %v1221_v46, 4  ;;  %v1747_v60 = vor.u32 %v1746_v5, %v1742_v33  ;;  %v1750_v61 = vshll.u32 %v1666_v49, 16  ;;  %v1407_v34 = vld [vmem:[#allocation2 + $0x48] sm:$0xe] }
 0x186   : > { %1615 = vrot.lane.b32.xlu1 %v1572_v2, %s3895_s13  ;;  %v2115_v2 = vld [vmem:[#allocation2 + $0x3c] sm:$0xf]  ;;  %v2262_v31 = vrot.slane %v2261_v4, 4  ;;  %v3345_v42 = vrot.slane %v1407_v34, 9  ;;  %v1409_v46 = vld [vmem:[#allocation2 + $0x50] sm:$0x1] }
 0x187   : > { %v1748_v25 = vrot.slane %v1747_v60, 4  ;;  %v1752_v29 = vrot.slane %v1750_v61, 5  ;;  %v4612_v5 = vld [vmem:[#allocation2 + $0x40] sm:$0xf]  ;;  %1103 = vst.msk [vmem:[#allocation3 + $0x38] sm:$0xf] %vm758_vm8, %v1087_v47 }
 0x188   : > { %2051 = vrot.lane.b32.xlu0 %v2004_v0, %s3898_s18  ;;  %v1731_v0 = vshrl.u32 %v1664_v18, 16  ;;  %v2267_v27 = vsel %vm4304_vm2, %v2262_v31, %v2266_v19  ;;  %v1954_v18 = vld [vmem:[#allocation2 + $0x48] sm:$0xe]  ;;  %v2500_v19 = vld [vmem:[#allocation2 + $0x4c] sm:$0xf]  ;;  %vm2470_vm10 = vcmask 257248  }
 0x189   : > { %v1956_v31 = vld [vmem:[#allocation2 + $0x50] sm:$0x1]  ;;  %vm2639_vm11 = vcmask 290048   ;;  %vm3150_vm14 = vcmask 125952  }
 0x18a   : > { %2159 = vrot.lane.b32.xlu1 %v2118_v28, %s3896_s20  ;;  %v4515_v32 = vpop.permute.xlu0 %1597  ;;  %v1733_v13 = vrot.slane %v1731_v0, 4  ;;  %v3352_v0 = vrot.slane %v1954_v18, 9  ;;  %v2027_v40 = vrot.slane %v1956_v31, 5  ;;  %v1575_v18 = vld [vmem:[#allocation2 + $0x60] sm:$0xf] }
 0x18b   : > { %v2121_v31 = vld [vmem:[#allocation2 + $0x60] sm:$0xf] }
 0x18c   : > { %2430 = vrot.lane.b32.xlu0 %v2291_v16, %s3902_s12  ;;  %v1736_v16 = vrot.slane %v1734_v12, 5  ;;  %v2024_v12 = vrot.slane %v1955_v20, 5 }
 0x18e   : > { %1888 = vrot.lane.b32.xlu1 %v1777_v37, %s3901_s10  ;;  %v4523_v56 = vpop.permute.xlu0 %2141  ;;  %v2274_v37 = vshll.u32 %v2211_v22, 16  ;;  %v1737_v41 = vor.u32 %v1736_v16, %v1733_v13  ;;  %v1227_v22 = vsel %vm4304_vm2, %v1222_v23, %v1226_v58  ;;  %v2025_v52 = vsel %vm4237_vm15, %v3352_v0, %v2024_v12  ;;  %v1406_v0 = vld [vmem:[#allocation2 + $0x44] sm:$0x1] }
 0x18f   : > { %v2565_v16 = vrot.slane %v2500_v19, 5  ;;  %v2026_v39 = vrot.slane %v2024_v12, 4  ;;  %v2558_v23 = vrot.slane %v4612_v5, 5  ;;  %v1088_v12 = vld [vmem:[#allocation2 + $0x58] sm:$0xf]  ;;  %v1480_v34 = vrot.slane %v1406_v0, 5 }
 0x190   : > { %v4527_v43 = vpop.permute.xlu1 %1599  ;;  %1340 = vrot.lane.b32.xlu0 %v1241_v24, %s5206_s17  ;;  %v2276_v8 = vrot.slane %v2274_v37, 5  ;;  %v1408_v37 = vld [vmem:[#allocation2 + $0x4c] sm:$0xf]  ;;  %1104 = vst.msk [vmem:[#allocation3 + $0x3c] sm:$0xf] %vm758_vm8, %v1088_v12 }
 0x191   : > { %v2028_v44 = vsel %vm4237_vm15, %v2026_v39, %v2027_v40 }
 0x192   : > { %2432 = vrot.lane.b32.xlu1 %v2301_v3, %s3902_s12  ;;  %v4533_v48 = vpop.permute.xlu0 %1593  ;;  %v2272_v3 = vrot.slane %v2271_v38, 4  ;;  %v1753_v38 = vsel %vm4304_vm2, %v1748_v25, %v1752_v29 }
 0x194   : > { %v4537_v57 = vpop.permute.xlu1 %2143  ;;  %2450 = vrot.lane.b32.xlu0 %v2411_v51, %s3902_s12  ;;  %v1738_v51 = vrot.slane %v1737_v41, 4  ;;  %v1484_v41 = vrot.slane %v1408_v37, 5  ;;  %v2218_v37 = vld [vmem:[#allocation2 + $0x48] sm:$0xf] }
 0x196   : > { %1342 = vrot.lane.b32.xlu1 %v1251_v59, %s5206_s17  ;;  %v4544_v1 = vpop.permute.xlu0 %1496  ;;  %v2277_v59 = vsel %vm4304_vm2, %v2272_v3, %v2276_v8  ;;  %v1743_v10 = vsel %vm4304_vm2, %v1738_v51, %v1742_v33  ;;  %v2568_v3 = vrot.slane %v2501_v7, 5  ;;  %v1485_v49 = vsel %vm4237_vm15, %v3345_v42, %v1484_v41  ;;  %v1674_v7 = vld [vmem:[#allocation2 + $0x4c] sm:$0xf] }
 0x197   : > { %v1486_v20 = vrot.slane %v1484_v41, 4 }
 0x198   : > { %v4546_v11 = vpop.permute.xlu1 %1595  ;;  %2153 = vrot.lane.b32.xlu0 %v2115_v2, %s3896_s20  ;;  %v1085_v2 = vld [vmem:[#allocation2 + $0x48] sm:$0xf] }
 0x199   : > { %1101 = vst.msk [vmem:[#allocation3 + $0x30] sm:$0xf] %vm758_vm8, %v1085_v2  ;;  %v2496_v2 = vld [vmem:[#allocation2 + $0x3c] sm:$0xe]  ;;  %vm2764_vm8 = vcmask 1041408  }
 0x19a   : > { %2452 = vrot.lane.b32.xlu1 %v2421_v17, %s3902_s12  ;;  %v4553_v28 = vpop.permute.xlu0 %2047  ;;  %v2499_v17 = vld [vmem:[#allocation2 + $0x48] sm:$0xe]  ;;  %3599 = vmatprep.subr.msk.bf16.mxu1 %vm2764_vm8, %v3729_v21 }
 0x19b   : > { %v3359_v13 = vrot.slane %v2499_v17, 9  ;;  %v2560_v17 = vrot.slane %v2558_v23, 4 }
 0x19c   : > { %v4555_v35 = vpop.permute.xlu1 %1498  ;;  %1609 = vrot.lane.b32.xlu0 %v1569_v30, %s3895_s13 }
 0x19e   : > { %2155 = vrot.lane.b32.xlu1 %v2116_v36, %s3896_s20  ;;  %v4559_v53 = vpop.permute.xlu0 %2591 }
 0x1a0   : > { %v4563_v24 = vpop.permute.xlu1 %2049  ;;  %2426 = vrot.lane.b32.xlu0 %v2267_v27, %s3902_s12  ;;  %v2566_v27 = vsel %vm4237_vm15, %v3359_v13, %v2565_v16  ;;  %v1404_v13 = vld [vmem:[#allocation2 + $0x3c] sm:$0xe] }
 0x1a1   : > { %v3344_v41 = vrot.slane %v1404_v13, 9 }
 0x1a2   : > { %1611 = vrot.lane.b32.xlu1 %v1570_v63, %s3895_s13  ;;  %v4567_v26 = vpop.permute.xlu0 %1504  ;;  %v2567_v63 = vrot.slane %v2565_v16, 4  ;;  %v3730_v16 = vld [vmem:[%s5193_s2 + $0x8] sm:$0xff]  }
 0x1a4   : > { %v4571_v55 = vpop.permute.xlu1 %2593  ;;  %1336 = vrot.lane.b32.xlu0 %v1217_v50, %s5206_s17  ;;  %v1673_v50 = vld [vmem:[#allocation2 + $0x48] sm:$0xf]  ;;  %v2569_v58 = vsel %vm4237_vm15, %v2567_v63, %v2568_v3  ;;  %v2327_v3 = vshrl.u32 %v2218_v37, 16 }
 0x1a5   : > { %v1803_v61 = vshrl.u32 %v1673_v50, 16  ;;  %v1806_v62 = vshll.u32 %v1673_v50, 16  ;;  %v1816_v50 = vshrl.u32 %v1674_v7, 16 }
 0x1a6   : > { %2428 = vrot.lane.b32.xlu1 %v2277_v59, %s3902_s12  ;;  %v4578_v4 = vpop.permute.xlu0 %1605  ;;  %v1487_v59 = vrot.slane %v1409_v46, 5  ;;  %v3731_v46 = vld [vmem:[%s5193_s2] sm:$0xff]  }
 0x1a7   : > { %v1805_v25 = vrot.slane %v1803_v61, 4  ;;  %v1808_v29 = vrot.slane %v1806_v62, 5  ;;  %v1951_v61 = vld [vmem:[#allocation2 + $0x3c] sm:$0xe]  ;;  %v2329_v62 = vrot.slane %v2327_v3, 4 }
 0x1a8   : > { %v4585_v15 = vpop.permute.xlu1 %1506  ;;  %1882 = vrot.lane.b32.xlu0 %v1743_v10, %s3901_s10  ;;  %v1488_v14 = vsel %vm4237_vm15, %v1486_v20, %v1487_v59  ;;  %v2220_v3 = vld [vmem:[#allocation2 + $0x50] sm:$0x1] }
 0x1aa   : > { %1338 = vrot.lane.b32.xlu1 %v1227_v22, %s5206_s17  ;;  %v4593_v30 = vpop.permute.xlu0 %2149  ;;  %v4645_v22 = vld [vmem:[#allocation2 + $0x40] sm:$0xf] }
 0x1ab   : > { %v2017_v40 = vrot.slane %v4645_v22, 5 }
 0x1ac   : > { %v1329_v36 = vpop.permute.xlu1 %1328  ;;  %2063 = vrot.lane.b32.xlu0 %v2025_v52, %s3898_s18  ;;  %v3358_v52 = vrot.slane %v2496_v2, 9 }
 0x1ad   : > { %1375 = vst.msk [vmem:[#allocation3 + $0x8] sm:$0xf] %vm1372_vm3, %v1329_v36 }
 0x1ae   : > { %1884 = vrot.lane.b32.xlu1 %v1753_v38, %s3901_s10  ;;  %v4602_v9 = vpop.permute.xlu0 %2169  ;;  %v2559_v63 = vsel %vm4237_vm15, %v3358_v52, %v2558_v23 }
 0x1b0   : > { %v4606_v8 = vpop.permute.xlu1 %1502  ;;  %2607 = vrot.lane.b32.xlu0 %v2566_v27, %s3899_s8  ;;  %v2766_v27 = vsel %vm2764_vm8, %v3729_v21, 0 }
 0x1b1   : > { %3560 = vmatpush3.bf16.msra.mxu1 %v2766_v27 }
 0x1b2   : > { %2065 = vrot.lane.b32.xlu1 %v2028_v44, %s3898_s18  ;;  %v1325_v33 = vpop.permute.xlu0 %1324  ;;  %v1953_v44 = vld [vmem:[#allocation2 + $0x44] sm:$0x1]  ;;  %3561 = vmatprep.subr.bf16.mxu1 %v3730_v16 }
 0x1b3   : > { %1373 = vst.msk [vmem:[#allocation3] sm:$0xf] %vm1372_vm3, %v1325_v33  ;;  %v2330_v33 = vshll.u32 %v2218_v37, 16  ;;  %v2020_v20 = vrot.slane %v1953_v44, 5 }
 0x1b4   : > { %1545 = vst.msk [vmem:[#allocation3] sm:$0xf] %vm1544_vm4, %v4544_v1  ;;  %v4619_v51 = vpop.permute.xlu1 %2045  ;;  %1520 = vrot.lane.b32.xlu0 %v1485_v49, %s3897_s15  ;;  %v4628_v1 = vld [vmem:[#allocation2 + $0x40] sm:$0xf]  ;;  %v1812_v49 = vshll.u32 %v1674_v7, 16 }
 0x1b5   : > { %1642 = vst.msk [vmem:[#allocation3] sm:$0xf] %vm1641_vm5, %v4533_v48  ;;  %v2561_v48 = vrot.slane %v2498_v54, 5  ;;  %v1477_v19 = vrot.slane %v4628_v1, 5  ;;  %v1123_v54 = vld [vmem:[#allocation2 + $0x48] sm:$0xf]  ;;  %3562 = vmatpush3.bf16.msra.mxu1 %v3730_v16 }
 0x1b6   : > { %2609 = vrot.lane.b32.xlu1 %v2569_v58, %s3899_s8  ;;  %v1501_v60 = vpop.permute.xlu0 %1500  ;;  %v2219_v1 = vld [vmem:[#allocation2 + $0x4c] sm:$0xf]  ;;  %v2332_v2 = vrot.slane %v2330_v33, 5  ;;  %v1277_v47 = vshrl.u32 %v1123_v54, 16  ;;  %3563 = vmatprep.subr.bf16.mxu1 %v3731_v46  ;;  %v1814_v12 = vrot.slane %v1812_v49, 5 }
 0x1b7   : > { %1547 = vst.msk [vmem:[#allocation3 + $0x8] sm:$0xf] %vm1544_vm4, %v1501_v60  ;;  %v2562_v38 = vsel %vm4237_vm15, %v2560_v17, %v2561_v48  ;;  %v1479_v39 = vrot.slane %v1477_v19, 4  ;;  %v1478_v23 = vsel %vm4237_vm15, %v3344_v41, %v1477_v19  ;;  %v1280_v48 = vshll.u32 %v1123_v54, 16  ;;  %v1576_v7 = vld [vmem:[#allocation2 + $0x64] sm:$0xf] }
 0x1b8   : > { %v4631_v10 = vpop.permute.xlu1 %1607  ;;  %1621 = vrot.lane.b32.xlu0 %v1575_v18, %s3895_s13  ;;  %1644 = vst.msk [vmem:[#allocation3 + $0x8] sm:$0xf] %vm1641_vm5, %v4515_v32  ;;  %v2019_v18 = vrot.slane %v2017_v40, 4  ;;  %v2336_v21 = vshll.u32 %v2219_v1, 16  ;;  %v2340_v19 = vshrl.u32 %v2219_v1, 16  ;;  %v2333_v13 = vor.u32 %v2332_v2, %v2329_v62 }
 0x1b9   : > { %v1481_v58 = vsel %vm4237_vm15, %v1479_v39, %v1480_v34  ;;  %3564 = vmatpush3.bf16.msra.mxu1 %v3731_v46  ;;  %v1279_v16 = vrot.slane %v1277_v47, 4  ;;  %v1282_v34 = vrot.slane %v1280_v48, 5  ;;  %v2215_v49 = vld [vmem:[#allocation2 + $0x3c] sm:$0xf] }
 0x1ba   : > { %1522 = vrot.lane.b32.xlu1 %v1488_v14, %s3897_s15  ;;  %v1879_v32 = vpop.permute.xlu0 %1878  ;;  %v1818_v14 = vrot.slane %v1816_v50, 4  ;;  %v2021_v17 = vsel %vm4237_vm15, %v2019_v18, %v2020_v20  ;;  %v2338_v27 = vrot.slane %v2336_v21, 5  ;;  %v2334_v33 = vrot.slane %v2333_v13, 4  ;;  %v2122_v18 = vld [vmem:[#allocation2 + $0x64] sm:$0xf] }
 0x1bb   : > { %1925 = vst.msk [vmem:[#allocation3 + $0x8] sm:$0xf] %vm1922_vm6, %v1879_v32  ;;  %v1675_v32 = vld [vmem:[#allocation2 + $0x50] sm:$0x1]  ;;  %v1283_v46 = vor.u32 %v1282_v34, %v1279_v16  ;;  %v2306_v62 = vshll.u32 %v2215_v49, 16 }
 0x1bc   : > { %v4651_v36 = vpop.permute.xlu1 %2151  ;;  %2165 = vrot.lane.b32.xlu0 %v2121_v31, %s3896_s20  ;;  %2094 = vst.msk [vmem:[#allocation3 + $0x8] sm:$0xf] %vm2091_vm7, %v4553_v28  ;;  %v1809_v28 = vor.u32 %v1808_v29, %v1805_v25  ;;  %v3351_v29 = vrot.slane %v1951_v61, 9  ;;  %v1124_v31 = vld [vmem:[#allocation2 + $0x4c] sm:$0xf]  ;;  %v1822_v39 = vshll.u32 %v1675_v32, 16  ;;  %v2339_v2 = vsel %vm4304_vm2, %v2334_v33, %v2338_v27 }
 0x1bd   : > { %v1286_v41 = vshll.u32 %v1124_v31, 16  ;;  %v1290_v44 = vshrl.u32 %v1124_v31, 16  ;;  %v2303_v61 = vshrl.u32 %v2215_v49, 16  ;;  %v1284_v47 = vrot.slane %v1283_v46, 4  ;;  %v2216_v32 = vld [vmem:[#allocation2 + $0x40] sm:$0xf] }
 0x1be   : > { %2605 = vrot.lane.b32.xlu1 %v2562_v38, %s3899_s8  ;;  %v4662_v42 = vpop.permute.xlu0 %2043  ;;  %v1810_v60 = vrot.slane %v1809_v28, 4  ;;  %v1819_v38 = vor.u32 %v1818_v14, %v1814_v12  ;;  %v2342_v28 = vrot.slane %v2340_v19, 4  ;;  %v2308_v31 = vrot.slane %v2306_v62, 5  ;;  %v2120_v62 = vld [vmem:[#allocation2 + $0x58] sm:$0xf] }
 0x1bf   : > { %v1288_v20 = vrot.slane %v1286_v41, 5  ;;  %v1292_v1 = vrot.slane %v1290_v44, 4 }
 0x1c0   : > { %v4669_v5 = vpop.permute.xlu1 %2171  ;;  %2603 = vrot.lane.b32.xlu0 %v2559_v63, %s3899_s8  ;;  %v1815_v52 = vsel %vm4304_vm2, %v1810_v60, %v1814_v12  ;;  %v1820_v54 = vrot.slane %v1819_v38, 4  ;;  %v2346_v60 = vshll.u32 %v2220_v3, 16  ;;  %v2312_v38 = vshll.u32 %v2216_v32, 16 }
 0x1c1   : > { %v1293_v21 = vor.u32 %v1292_v1, %v1288_v20 }
 0x1c2   : > { %1518 = vrot.lane.b32.xlu1 %v1481_v58, %s3897_s15  ;;  %v4677_v59 = vpop.permute.xlu0 %2422  ;;  %v1824_v58 = vrot.slane %v1822_v39, 5  ;;  %v2316_v39 = vshrl.u32 %v2216_v32, 16 }
 0x1c3   : > { %v1294_v41 = vrot.slane %v1293_v21, 4 }
 0x1c4   : > { %v4681_v0 = vpop.permute.xlu1 %1880  ;;  %1516 = vrot.lane.b32.xlu0 %v1478_v23, %s3897_s15  ;;  %v2343_v23 = vor.u32 %v2342_v28, %v2338_v27  ;;  %v1825_v12 = vsel %vm4304_vm2, %v1820_v54, %v1824_v58 }
 0x1c6   : > { %2061 = vrot.lane.b32.xlu1 %v2021_v17, %s3898_s18  ;;  %v1333_v25 = vpop.permute.xlu0 %1332  ;;  %v2344_v14 = vrot.slane %v2343_v23, 4  ;;  %v2348_v17 = vrot.slane %v2346_v60, 5 }
 0x1c7   : > { %1377 = vst.msk [vmem:[#allocation3 + $0x10] sm:$0xf] %vm1372_vm3, %v1333_v25 }
 0x1c8   : > { %1549 = vst.msk [vmem:[#allocation3 + $0x10] sm:$0xf] %vm1544_vm4, %v4567_v26  ;;  %v4692_v37 = vpop.permute.xlu1 %2424  ;;  %1894 = vrot.lane.b32.xlu0 %v1815_v52, %s3901_s10  ;;  %v2018_v26 = vsel %vm4237_vm15, %v3351_v29, %v2017_v40  ;;  %v1125_v40 = vld [vmem:[#allocation2 + $0x50] sm:$0x1]  ;;  %v2305_v29 = vrot.slane %v2303_v61, 4  ;;  %v1289_v52 = vsel %vm4304_vm2, %v1284_v47, %v1288_v20  ;;  %v2349_v27 = vsel %vm4304_vm2, %v2344_v14, %v2348_v17 }
 0x1c9   : > { %v1296_v19 = vshll.u32 %v1125_v40, 16  ;;  %v1671_v20 = vld [vmem:[#allocation2 + $0x40] sm:$0xf] }
 0x1ca   : > { %1623 = vrot.lane.b32.xlu1 %v1576_v7, %s3895_s13  ;;  %v2146_v63 = vpop.permute.xlu0 %2145  ;;  %v1670_v7 = vld [vmem:[#allocation2 + $0x3c] sm:$0xf]  ;;  %v2309_v28 = vor.u32 %v2308_v31, %v2305_v29  ;;  %v1792_v47 = vshrl.u32 %v1671_v20, 16 }
 0x1cb   : > { %2192 = vst.msk [vmem:[#allocation3 + $0x8] sm:$0xf] %vm2189_vm9, %v2146_v63  ;;  %v1298_v44 = vrot.slane %v1296_v19, 5  ;;  %v1121_v63 = vld [vmem:[#allocation2 + $0x40] sm:$0xf]  ;;  %v1779_v33 = vshrl.u32 %v1670_v7, 16 }
 0x1cc   : > { %v1335_v50 = vpop.permute.xlu1 %1334  ;;  %2059 = vrot.lane.b32.xlu0 %v2018_v26, %s3898_s18  ;;  %v1782_v46 = vshll.u32 %v1670_v7, 16  ;;  %v1262_v54 = vshll.u32 %v1121_v63, 16  ;;  %v1266_v58 = vshrl.u32 %v1121_v63, 16  ;;  %v2310_v23 = vrot.slane %v2309_v28, 4  ;;  %v1574_v19 = vld [vmem:[#allocation2 + $0x58] sm:$0xf] }
 0x1cd   : > { %1378 = vst.msk [vmem:[#allocation3 + $0x14] sm:$0xf] %vm1372_vm3, %v1335_v50  ;;  %v2318_v50 = vrot.slane %v2316_v39, 4  ;;  %v1781_v1 = vrot.slane %v1779_v33, 4  ;;  %v1794_v29 = vrot.slane %v1792_v47, 4 }
 0x1ce   : > { %1550 = vst.msk [vmem:[#allocation3 + $0x14] sm:$0xf] %vm1544_vm4, %v4585_v15  ;;  %2167 = vrot.lane.b32.xlu1 %v2122_v18, %s3896_s20  ;;  %v1602_v22 = vpop.permute.xlu0 %1601  ;;  %v1120_v15 = vld [vmem:[#allocation2 + $0x3c] sm:$0xf]  ;;  %v2217_v18 = vld [vmem:[#allocation2 + $0x44] sm:$0x1] }
 0x1cf   : > { %1646 = vst.msk [vmem:[#allocation3 + $0x10] sm:$0xf] %vm1641_vm5, %v1602_v22  ;;  %v1253_v13 = vshrl.u32 %v1120_v15, 16  ;;  %v1256_v16 = vshll.u32 %v1120_v15, 16  ;;  %v1784_v22 = vrot.slane %v1782_v46, 5  ;;  %v2322_v61 = vshll.u32 %v2217_v18, 16 }
 0x1d0   : > { %v4709_v48 = vpop.permute.xlu1 %2147  ;;  %2438 = vrot.lane.b32.xlu0 %v2339_v2, %s3902_s12  ;;  %v1788_v2 = vshll.u32 %v1671_v20, 16  ;;  %v1122_v15 = vld [vmem:[#allocation2 + $0x44] sm:$0x1]  ;;  %v1679_v39 = vld [vmem:[#allocation2 + $0x60] sm:$0xf] }
 0x1d1   : > { %v1255_v3 = vrot.slane %v1253_v13, 4  ;;  %v1258_v26 = vrot.slane %v1256_v16, 5  ;;  %v1785_v17 = vor.u32 %v1784_v22, %v1781_v1  ;;  %v2324_v21 = vrot.slane %v2322_v61, 5  ;;  %v1960_v16 = vld [vmem:[#allocation2 + $0x60] sm:$0xe] }
 0x1d2   : > { %1896 = vrot.lane.b32.xlu1 %v1825_v12, %s3901_s10  ;;  %v1875_v25 = vpop.permute.xlu0 %1874  ;;  %v1268_v12 = vrot.slane %v1266_v58, 4  ;;  %v1790_v32 = vrot.slane %v1788_v2, 5  ;;  %v3354_v28 = vrot.slane %v1960_v16, 9  ;;  %v1854_v33 = vshll.u32 %v1679_v39, 16  ;;  %v1962_v20 = vld [vmem:[#allocation2 + $0x68] sm:$0x1] }
 0x1d3   : > { %1923 = vst.msk [vmem:[#allocation3] sm:$0xf] %vm1922_vm6, %v1875_v25  ;;  %v1259_v60 = vor.u32 %v1258_v26, %v1255_v3  ;;  %v1272_v25 = vshll.u32 %v1122_v15, 16  ;;  %v1786_v13 = vrot.slane %v1785_v17, 4  ;;  %v2502_v3 = vld [vmem:[#allocation2 + $0x54] sm:$0xe] }
 0x1d4   : > { %2092 = vst.msk [vmem:[#allocation3] sm:$0xf] %vm2091_vm7, %v4662_v42  ;;  %v1604_v34 = vpop.permute.xlu1 %1603  ;;  %1348 = vrot.lane.b32.xlu0 %v1289_v52, %s5206_s17  ;;  %v1672_v52 = vld [vmem:[#allocation2 + $0x44] sm:$0x1]  ;;  %v1851_v26 = vshrl.u32 %v1679_v39, 16  ;;  %v2041_v47 = vrot.slane %v1962_v20, 5 }
 0x1d5   : > { %2190 = vst.msk [vmem:[#allocation3] sm:$0xf] %vm2189_vm9, %v4523_v56  ;;  %v2119_v56 = vld [vmem:[#allocation2 + $0x54] sm:$0xf]  ;;  %v1260_v14 = vrot.slane %v1259_v60, 4  ;;  %v3360_v60 = vrot.slane %v2502_v3, 9 }
 0x1d6   : > { %1647 = vst.msk [vmem:[#allocation3 + $0x14] sm:$0xf] %vm1641_vm5, %v1604_v34  ;;  %2440 = vrot.lane.b32.xlu1 %v2349_v27, %s3902_s12  ;;  %v1327_v42 = vpop.permute.xlu0 %1326  ;;  %v1961_v34 = vld [vmem:[#allocation2 + $0x64] sm:$0xf]  ;;  %v1274_v27 = vrot.slane %v1272_v25, 5  ;;  %v1853_v22 = vrot.slane %v1851_v26, 4 }
 0x1d7   : > { %2471 = vst.msk [vmem:[#allocation3] sm:$0xf] %vm2470_vm10, %v4677_v59  ;;  %v2314_v59 = vrot.slane %v2312_v38, 5  ;;  %v2038_v63 = vrot.slane %v1961_v34, 5  ;;  %v2221_v25 = vld [vmem:[#allocation2 + $0x54] sm:$0xf] }
 0x1d8   : > { %2640 = vst.msk [vmem:[#allocation3] sm:$0xf] %vm2639_vm11, %v4559_v53  ;;  %v1331_v49 = vpop.permute.xlu1 %1330  ;;  %2161 = vrot.lane.b32.xlu0 %v2119_v56, %s3896_s20  ;;  %v1299_v53 = vsel %vm4304_vm2, %v1294_v41, %v1298_v44  ;;  %v1795_v41 = vor.u32 %v1794_v29, %v1790_v32  ;;  %v1798_v44 = vshll.u32 %v1672_v52, 16  ;;  %v1791_v56 = vsel %vm4304_vm2, %v1786_v13, %v1790_v32  ;;  %v1412_v13 = vld [vmem:[#allocation2 + $0x5c] sm:$0x1] }
 0x1d9   : > { %1374 = vst.msk [vmem:[#allocation3 + $0x4] sm:$0xf] %vm1372_vm3, %v1327_v42  ;;  %1376 = vst.msk [vmem:[#allocation3 + $0xc] sm:$0xf] %vm1372_vm3, %v1331_v49  ;;  %v2039_v18 = vsel %vm4237_vm15, %v3354_v28, %v2038_v63  ;;  %v2040_v61 = vrot.slane %v2038_v63, 4  ;;  %v2354_v3 = vshll.u32 %v2221_v25, 16 }
 0x1da   : > { %1546 = vst.msk [vmem:[#allocation3 + $0x4] sm:$0xf] %vm1544_vm4, %v4555_v35  ;;  %1548 = vst.msk [vmem:[#allocation3 + $0xc] sm:$0xf] %vm1544_vm4, %v4606_v8  ;;  %1350 = vrot.lane.b32.xlu1 %v1299_v53, %s5206_s17  ;;  %v4743_v35 = vpop.permute.xlu0 %2055  ;;  %v2319_v8 = vor.u32 %v2318_v50, %v2314_v59  ;;  %v1796_v53 = vrot.slane %v1795_v41, 4  ;;  %v1494_v20 = vrot.slane %v1412_v13, 5 }
 0x1db   : > { %1643 = vst.msk [vmem:[#allocation3 + $0x4] sm:$0xf] %vm1641_vm5, %v4546_v11  ;;  %1645 = vst.msk [vmem:[#allocation3 + $0xc] sm:$0xf] %vm1641_vm5, %v4527_v43  ;;  %v1573_v11 = vld [vmem:[#allocation2 + $0x54] sm:$0xf]  ;;  %v2042_v34 = vsel %vm4237_vm15, %v2040_v61, %v2041_v47 }
 0x1dc   : > { %1926 = vst.msk [vmem:[#allocation3 + $0xc] sm:$0xf] %vm1922_vm6, %v4681_v0  ;;  %v1877_v40 = vpop.permute.xlu1 %1876  ;;  %1617 = vrot.lane.b32.xlu0 %v1573_v11, %s3895_s13  ;;  %v1264_v43 = vrot.slane %v1262_v54, 5  ;;  %v1800_v54 = vrot.slane %v1798_v44, 5  ;;  %v1680_v11 = vld [vmem:[#allocation2 + $0x64] sm:$0xf] }
 0x1dd   : > { %2095 = vst.msk [vmem:[#allocation3 + $0xc] sm:$0xf] %vm2091_vm7, %v4563_v24  ;;  %v2315_v24 = vsel %vm4304_vm2, %v2310_v23, %v2314_v59  ;;  %v2503_v59 = vld [vmem:[#allocation2 + $0x58] sm:$0xf]  ;;  %v2224_v23 = vld [vmem:[#allocation2 + $0x60] sm:$0xf] }
 0x1de   : > { %1924 = vst.msk [vmem:[#allocation3 + $0x4] sm:$0xf] %vm1922_vm6, %v1877_v40  ;;  %2163 = vrot.lane.b32.xlu1 %v2120_v62, %s3896_s20  ;;  %v4758_v0 = vpop.permute.xlu0 %2599  ;;  %v2572_v1 = vrot.slane %v2503_v59, 5  ;;  %v1856_v40 = vrot.slane %v1854_v33, 5  ;;  %v1410_v62 = vld [vmem:[#allocation2 + $0x54] sm:$0xe]  ;;  %v1801_v2 = vsel %vm4304_vm2, %v1796_v53, %v1800_v54 }
 0x1df   : > { %2193 = vst.msk [vmem:[#allocation3 + $0xc] sm:$0xf] %vm2189_vm9, %v4709_v48  ;;  %v1860_v15 = vshll.u32 %v1680_v11, 16  ;;  %v1864_v17 = vshrl.u32 %v1680_v11, 16  ;;  %v1957_v16 = vld [vmem:[#allocation2 + $0x54] sm:$0xe] }
 0x1e0   : > { %2093 = vst.msk [vmem:[#allocation3 + $0x4] sm:$0xf] %vm2091_vm7, %v4619_v51  ;;  %v4766_v48 = vpop.permute.xlu1 %2057  ;;  %2434 = vrot.lane.b32.xlu0 %v2315_v24, %s3902_s12  ;;  %v2320_v51 = vrot.slane %v2319_v8, 4  ;;  %v2375_v24 = vshrl.u32 %v2224_v23, 16  ;;  %v2574_v52 = vrot.slane %v2572_v1, 4  ;;  %v3353_v11 = vrot.slane %v1957_v16, 9 }
 0x1e1   : > { %2191 = vst.msk [vmem:[#allocation3 + $0x4] sm:$0xf] %vm2189_vm9, %v4537_v57  ;;  %v1269_v57 = vor.u32 %v1268_v12, %v1264_v43  ;;  %v2504_v12 = vld [vmem:[#allocation2 + $0x5c] sm:$0x1]  ;;  %v1958_v39 = vld [vmem:[#allocation2 + $0x58] sm:$0xf] }
 0x1e2   : > { %2472 = vst.msk [vmem:[#allocation3 + $0x4] sm:$0xf] %vm2470_vm10, %v4692_v37  ;;  %1619 = vrot.lane.b32.xlu1 %v1574_v19, %s3895_s13  ;;  %v4772_v31 = vpop.permute.xlu0 %1512  ;;  %v1265_v37 = vsel %vm4304_vm2, %v1260_v14, %v1264_v43  ;;  %v1411_v43 = vld [vmem:[#allocation2 + $0x58] sm:$0xf]  ;;  %v3346_v19 = vrot.slane %v1410_v62, 9  ;;  %v1866_v63 = vrot.slane %v1864_v17, 4 }
 0x1e3   : > { %2641 = vst.msk [vmem:[#allocation3 + $0x4] sm:$0xf] %vm2639_vm11, %v4571_v55  ;;  %v2325_v55 = vsel %vm4304_vm2, %v2320_v51, %v2324_v21  ;;  %v1270_v7 = vrot.slane %v1269_v57, 4  ;;  %v2378_v51 = vshll.u32 %v2224_v23, 16  ;;  %v2573_v21 = vsel %vm4237_vm15, %v3360_v60, %v2572_v1  ;;  %v1681_v28 = vld [vmem:[#allocation2 + $0x68] sm:$0x1] }
 0x1e4   : > { %v4776_v38 = vpop.permute.xlu1 %2601  ;;  %1344 = vrot.lane.b32.xlu0 %v1265_v37, %s5206_s17  ;;  %v1491_v32 = vrot.slane %v1411_v43, 5  ;;  %v1857_v57 = vor.u32 %v1856_v40, %v1853_v22  ;;  %v2575_v37 = vrot.slane %v2504_v12, 5  ;;  %v2031_v23 = vrot.slane %v1958_v39, 5  ;;  %v2222_v1 = vld [vmem:[#allocation2 + $0x58] sm:$0xf] }
 0x1e5   : > { %v1275_v50 = vsel %vm4304_vm2, %v1270_v7, %v1274_v27  ;;  %v2225_v7 = vld [vmem:[#allocation2 + $0x64] sm:$0xf]  ;;  %v2377_v27 = vrot.slane %v2375_v24, 4  ;;  %v2380_v44 = vrot.slane %v2378_v51, 5  ;;  %v1870_v60 = vshll.u32 %v1681_v28, 16 }
 0x1e6   : > { %2436 = vrot.lane.b32.xlu1 %v2325_v55, %s3902_s12  ;;  %v4782_v42 = vpop.permute.xlu0 %1613  ;;  %v1862_v55 = vrot.slane %v1860_v15, 5  ;;  %v1492_v26 = vsel %vm4237_vm15, %v3346_v19, %v1491_v32  ;;  %v1858_v33 = vrot.slane %v1857_v57, 4  ;;  %v2576_v59 = vsel %vm4237_vm15, %v2574_v52, %v2575_v37  ;;  %v1959_v40 = vld [vmem:[#allocation2 + $0x5c] sm:$0x1]  ;;  %v2226_v13 = vld [vmem:[#allocation2 + $0x68] sm:$0x1] }
 0x1e7   : > { %v2384_v53 = vshll.u32 %v2225_v7, 16  ;;  %v2388_v54 = vshrl.u32 %v2225_v7, 16  ;;  %v2381_v61 = vor.u32 %v2380_v44, %v2377_v27  ;;  %v2360_v51 = vshll.u32 %v2222_v1, 16  ;;  %v1127_v27 = vld [vmem:[#allocation2 + $0x58] sm:$0xf] }
 0x1e8   : > { %v4786_v46 = vpop.permute.xlu1 %1514  ;;  %1890 = vrot.lane.b32.xlu0 %v1791_v56, %s3901_s10  ;;  %v2351_v56 = vshrl.u32 %v2221_v25, 16  ;;  %v1867_v62 = vor.u32 %v1866_v63, %v1862_v55  ;;  %v1863_v47 = vsel %vm4304_vm2, %v1858_v33, %v1862_v55  ;;  %v2032_v25 = vsel %vm4237_vm15, %v3353_v11, %v2031_v23 }
 0x1e9   : > { %v2386_v17 = vrot.slane %v2384_v53, 5  ;;  %v2390_v19 = vrot.slane %v2388_v54, 4  ;;  %v2033_v52 = vrot.slane %v2031_v23, 4  ;;  %v2034_v37 = vrot.slane %v1959_v40, 5 }
 0x1ea   : > { %v3728_v49 = vld [vmem:[#allocation3] sm:$0xff]   ;;  %1346 = vrot.lane.b32.xlu1 %v1275_v50, %s5206_s17  ;;  %v4793_v58 = vpop.permute.xlu0 %2157  ;;  %v1493_v50 = vrot.slane %v1491_v32, 4  ;;  %v2353_v43 = vrot.slane %v2351_v56, 4  ;;  %v1676_v32 = vld [vmem:[#allocation2 + $0x54] sm:$0xf]  ;;  %v1868_v55 = vrot.slane %v1867_v62, 4 }
 0x1eb   : > { %3565 = vmatprep.mubr.msk.bf16.mxu1 %vm2739_vm12, %v3728_v49  ;;  %v1872_v39 = vrot.slane %v1870_v60, 5  ;;  %v1827_v63 = vshrl.u32 %v1676_v32, 16  ;;  %v1830_v56 = vshll.u32 %v1676_v32, 16  ;;  %v2391_v33 = vor.u32 %v2390_v19, %v2386_v17 }
 0x1ec   : > { %v4797_v8 = vpop.permute.xlu1 %2597  ;;  %2071 = vrot.lane.b32.xlu0 %v2039_v18, %s3898_s18  ;;  %v1126_v18 = vld [vmem:[#allocation2 + $0x54] sm:$0xf]  ;;  %v1495_v57 = vsel %vm4237_vm15, %v1493_v50, %v1494_v20  ;;  %v2035_v53 = vsel %vm4237_vm15, %v2033_v52, %v2034_v37  ;;  %v1310_v54 = vshll.u32 %v1127_v27, 16  ;;  %v2223_v20 = vld [vmem:[#allocation2 + $0x5c] sm:$0x1] }
 0x1ed   : > { %v1301_v12 = vshrl.u32 %v1126_v18, 16  ;;  %v1304_v15 = vshll.u32 %v1126_v18, 16  ;;  %v1314_v18 = vshrl.u32 %v1127_v27, 16  ;;  %v1873_v60 = vsel %vm4304_vm2, %v1868_v55, %v1872_v39 }
 0x1ee   : > { %1892 = vrot.lane.b32.xlu1 %v1801_v2, %s3901_s10  ;;  %v4803_v14 = vpop.permute.xlu0 %2595  ;;  %v2356_v2 = vrot.slane %v2354_v3, 5  ;;  %v1829_v62 = vrot.slane %v1827_v63, 4 }
 0x1ef   : > { %v1303_v44 = vrot.slane %v1301_v12, 4  ;;  %v1306_v28 = vrot.slane %v1304_v15, 5 }
 0x1f0   : > { %v4807_v29 = vpop.permute.xlu1 %1510  ;;  %2611 = vrot.lane.b32.xlu0 %v2573_v21, %s3899_s8  ;;  %v2364_v21 = vshrl.u32 %v2222_v1, 16  ;;  %v2357_v7 = vor.u32 %v2356_v2, %v2353_v43  ;;  %v1677_v1 = vld [vmem:[#allocation2 + $0x58] sm:$0xf]  ;;  %v1832_v43 = vrot.slane %v1830_v56, 5 }
 0x1f1   : > { %v1836_v19 = vshll.u32 %v1677_v1, 16  ;;  %v1840_v32 = vshrl.u32 %v1677_v1, 16 }
 0x1f2   : > { %2073 = vrot.lane.b32.xlu1 %v2042_v34, %s3898_s18  ;;  %v4813_v41 = vpop.permute.xlu0 %1508  ;;  %v2382_v34 = vrot.slane %v2381_v61, 4  ;;  %v2366_v50 = vrot.slane %v2364_v21, 4  ;;  %v2358_v40 = vrot.slane %v2357_v7, 4  ;;  %v1307_v61 = vor.u32 %v1306_v28, %v1303_v44 }
 0x1f3   : > { %v1312_v21 = vrot.slane %v1310_v54, 5  ;;  %v1838_v27 = vrot.slane %v1836_v19, 5  ;;  %v1842_v63 = vrot.slane %v1840_v32, 4  ;;  %v2506_v54 = vld [vmem:[#allocation2 + $0x64] sm:$0xf] }
 0x1f4   : > { %v4817_v49 = vpop.permute.xlu1 %2053  ;;  %1524 = vrot.lane.b32.xlu0 %v1492_v26, %s3897_s15  ;;  %v2362_v26 = vrot.slane %v2360_v51, 5  ;;  %v2387_v23 = vsel %vm4304_vm2, %v2382_v34, %v2386_v17  ;;  %v2370_v51 = vshll.u32 %v2223_v20, 16  ;;  %v1316_v17 = vrot.slane %v1314_v18, 4  ;;  %v2507_v19 = vld [vmem:[#allocation2 + $0x68] sm:$0x1] }
 0x1f5   : > { %v1308_v37 = vrot.slane %v1307_v61, 4 }
 0x1f6   : > { %2613 = vrot.lane.b32.xlu1 %v2576_v59, %s3899_s8  ;;  %v4823_v22 = vpop.permute.xlu0 %1886  ;;  %v2394_v59 = vshll.u32 %v2226_v13, 16  ;;  %v2367_v15 = vor.u32 %v2366_v50, %v2362_v26  ;;  %v2363_v52 = vsel %vm4304_vm2, %v2358_v40, %v2362_v26  ;;  %v1833_v13 = vor.u32 %v1832_v43, %v1829_v62  ;;  %v1678_v26 = vld [vmem:[#allocation2 + $0x5c] sm:$0x1] }
 0x1f7   : > { %v2372_v7 = vrot.slane %v2370_v51, 5  ;;  %v1317_v44 = vor.u32 %v1316_v17, %v1312_v21  ;;  %v2579_v62 = vrot.slane %v2506_v54, 5 }
 0x1f8   : > { %v4827_v24 = vpop.permute.xlu1 %1615  ;;  %1902 = vrot.lane.b32.xlu0 %v1863_v47, %s3901_s10  ;;  %v2392_v47 = vrot.slane %v2391_v33, 4  ;;  %v2396_v12 = vrot.slane %v2394_v59, 5  ;;  %v2368_v39 = vrot.slane %v2367_v15, 4  ;;  %v1834_v33 = vrot.slane %v1833_v13, 4 }
 0x1f9   : > { %v1318_v18 = vrot.slane %v1317_v44, 4  ;;  %v2582_v13 = vrot.slane %v2507_v19, 5 }
 0x1fa   : > { %1526 = vrot.lane.b32.xlu1 %v1495_v57, %s3897_s15  ;;  %v4835_v16 = vpop.permute.xlu0 %2051  ;;  %v2397_v55 = vsel %vm4304_vm2, %v2392_v47, %v2396_v12  ;;  %v2373_v50 = vsel %vm4304_vm2, %v2368_v39, %v2372_v7  ;;  %v1839_v40 = vsel %vm4304_vm2, %v1834_v33, %v1838_v27  ;;  %v2508_v47 = vld [vmem:[#allocation2 + $0x6c] sm:$0xe]  ;;  %v2509_v12 = vld [vmem:[#allocation2 + $0x70] sm:$0xf]  ;;  %v2510_v39 = vld [vmem:[#allocation2 + $0x74] sm:$0x1] }
 0x1fb   : > { %v3362_v17 = vrot.slane %v2508_v47, 9 }
 0x1fc   : > { %v4837_v3 = vpop.permute.xlu1 %2159  ;;  %2067 = vrot.lane.b32.xlu0 %v2032_v25, %s3898_s18  ;;  %v1128_v25 = vld [vmem:[#allocation2 + $0x5c] sm:$0x1] }
 0x1fd   : > { %v1320_v28 = vshll.u32 %v1128_v25, 16 }
 0x1fe   : > { %2069 = vrot.lane.b32.xlu1 %v2035_v53, %s3898_s18  ;;  %v4843_v11 = vpop.permute.xlu0 %2430  ;;  %v2505_v53 = vld [vmem:[#allocation2 + $0x60] sm:$0xe] }
 0x1ff   : > { %v1322_v20 = vrot.slane %v1320_v28, 5  ;;  %v3361_v61 = vrot.slane %v2505_v53, 9  ;;  %v2589_v28 = vrot.slane %v2510_v39, 5 }
 0x200   : > { %v4849_v2 = vpop.permute.xlu1 %1888  ;;  %2446 = vrot.lane.b32.xlu0 %v2387_v23, %s3902_s12  ;;  %v1843_v23 = vor.u32 %v1842_v63, %v1838_v27 }
 0x201   : > { %v1323_v15 = vsel %vm4304_vm2, %v1318_v18, %v1322_v20  ;;  %v2580_v32 = vsel %vm4237_vm15, %v3361_v61, %v2579_v62 }
 0x202   : > { %1904 = vrot.lane.b32.xlu1 %v1873_v60, %s3901_s10  ;;  %v1341_v57 = vpop.permute.xlu0 %1340  ;;  %v1846_v60 = vshll.u32 %v1678_v26, 16  ;;  %v1844_v51 = vrot.slane %v1843_v23, 4 }
 0x203   : > { %1381 = vst.msk [vmem:[#allocation3 + $0x20] sm:$0xf] %vm1372_vm3, %v1341_v57  ;;  %v2586_v57 = vrot.slane %v2509_v12, 5 }
 0x204   : > { %1553 = vst.msk [vmem:[#allocation3 + $0x20] sm:$0xf] %vm1544_vm4, %v4772_v31  ;;  %v4858_v34 = vpop.permute.xlu1 %2432  ;;  %2442 = vrot.lane.b32.xlu0 %v2363_v52, %s3902_s12  ;;  %v1313_v31 = vsel %vm4304_vm2, %v1308_v37, %v1312_v21  ;;  %v1848_v21 = vrot.slane %v1846_v60, 5  ;;  %v2581_v37 = vrot.slane %v2579_v62, 4 }
 0x205   : > { %v2587_v7 = vsel %vm4237_vm15, %v3362_v17, %v2586_v57  ;;  %v2588_v44 = vrot.slane %v2586_v57, 4 }
 0x206   : > { %2448 = vrot.lane.b32.xlu1 %v2397_v55, %s3902_s12  ;;  %v4864_v56 = vpop.permute.xlu0 %2450  ;;  %v1849_v52 = vsel %vm4304_vm2, %v1844_v51, %v1848_v21  ;;  %v2583_v45 = vsel %vm4237_vm15, %v2581_v37, %v2582_v13 }
 0x208   : > { %v1343_v59 = vpop.permute.xlu1 %1342  ;;  %1352 = vrot.lane.b32.xlu0 %v1313_v31, %s5206_s17 }
 0x209   : > { %1382 = vst.msk [vmem:[#allocation3 + $0x24] sm:$0xf] %vm1372_vm3, %v1343_v59 }
 0x20a   : > { %1554 = vst.msk [vmem:[#allocation3 + $0x24] sm:$0xf] %vm1544_vm4, %v4786_v46  ;;  %2444 = vrot.lane.b32.xlu1 %v2373_v50, %s3902_s12  ;;  %v2154_v1 = vpop.permute.xlu0 %2153  ;;  %s308_s12 = sand.u32 1, %s3852_s25  }
 0x20b   : > { %s3286_s23 = sshll.u32 %s308_s12, 6  ;;  %s5130_s21 = scalar_lea.sflag [#allocation6], %s308_s12 }
 0x20c   : > { %v4877_v43 = vpop.permute.xlu1 %2452  ;;  %1898 = vrot.lane.b32.xlu0 %v1839_v40, %s3901_s10  ;;  %s5066_s16 = scalar_lea.vmem [#allocation7], %s3286_s23 }
 0x20d   : > { %s3184_s13 = sshll.u32 %s5066_s16, 4  ;;  %s5117_s13 = int_to_ptr.vmem [resolvable:$true] %s3184_s13 }
 0x20e   : > { %1354 = vrot.lane.b32.xlu1 %v1323_v15, %s5206_s17  ;;  %v1610_v46 = vpop.permute.xlu0 %1609 }
 0x20f   : > { %1650 = vst.msk [vmem:[#allocation3 + $0x20] sm:$0xf] %vm1641_vm5, %v1610_v46 }
 0x210   : > { %v2156_v25 = vpop.permute.xlu1 %2155  ;;  %2615 = vrot.lane.b32.xlu0 %v2580_v32, %s3899_s8 }
 0x212   : > { %1900 = vrot.lane.b32.xlu1 %v1849_v52, %s3901_s10  ;;  %v2427_v55 = vpop.permute.xlu0 %2426 }
 0x213   : > { %2473 = vst.msk [vmem:[#allocation3 + $0x8] sm:$0xf] %vm2470_vm10, %v2427_v55 }
 0x214   : > { %2642 = vst.msk [vmem:[#allocation3 + $0x8] sm:$0xf] %vm2639_vm11, %v4803_v14  ;;  %v1612_v27 = vpop.permute.xlu1 %1611  ;;  %2619 = vrot.lane.b32.xlu0 %v2587_v7, %s3899_s8  ;;  %v2590_v14 = vsel %vm4237_vm15, %v2588_v44, %v2589_v28 }
 0x215   : > { %1651 = vst.msk [vmem:[#allocation3 + $0x24] sm:$0xf] %vm1641_vm5, %v1612_v27 }
 0x216   : > { %2617 = vrot.lane.b32.xlu1 %v2583_v45, %s3899_s8  ;;  %v1337_v63 = vpop.permute.xlu0 %1336 }
 0x217   : > { %1379 = vst.msk [vmem:[#allocation3 + $0x18] sm:$0xf] %vm1372_vm3, %v1337_v63 }
 0x218   : > { %1551 = vst.msk [vmem:[#allocation3 + $0x18] sm:$0xf] %vm1544_vm4, %v4813_v41  ;;  %v2429_v26 = vpop.permute.xlu1 %2428 }
 0x219   : > { %1648 = vst.msk [vmem:[#allocation3 + $0x18] sm:$0xf] %vm1641_vm5, %v4578_v4 }
 0x21a   : > { %2474 = vst.msk [vmem:[#allocation3 + $0xc] sm:$0xf] %vm2470_vm10, %v2429_v26  ;;  %2621 = vrot.lane.b32.xlu1 %v2590_v14, %s3899_s8  ;;  %v1883_v31 = vpop.permute.xlu0 %1882  ;;  %s5237_s8 = sld [smem:[#allocation16_spill]] }
 0x21b   : > { %1929 = vst.msk [vmem:[#allocation3 + $0x18] sm:$0xf] %vm1922_vm6, %v4823_v22  ;;  %1927 = vst.msk [vmem:[#allocation3 + $0x10] sm:$0xf] %vm1922_vm6, %v1883_v31 }
 0x21c   : > { %2643 = vst.msk [vmem:[#allocation3 + $0xc] sm:$0xf] %vm2639_vm11, %v4797_v8  ;;  %v1339_v6 = vpop.permute.xlu1 %1338 }
 0x21d   : > { %2098 = vst.msk [vmem:[#allocation3 + $0x18] sm:$0xf] %vm2091_vm7, %v4743_v35  ;;  %2096 = vst.msk [vmem:[#allocation3 + $0x10] sm:$0xf] %vm2091_vm7, %v4835_v16 }
 0x21e   : > { %2196 = vst.msk [vmem:[#allocation3 + $0x18] sm:$0xf] %vm2189_vm9, %v2154_v1  ;;  %2194 = vst.msk [vmem:[#allocation3 + $0x10] sm:$0xf] %vm2189_vm9, %v4593_v30  ;;  %v2064_v4 = vpop.permute.xlu0 %2063 }
 0x21f   : > { %1380 = vst.msk [vmem:[#allocation3 + $0x1c] sm:$0xf] %vm1372_vm3, %v1339_v6 }
 0x220   : > { %2475 = vst.msk [vmem:[#allocation3 + $0x10] sm:$0xf] %vm2470_vm10, %v4843_v11  ;;  %v1885_v35 = vpop.permute.xlu1 %1884  ;;  %s5238_s23 = smov %s5237_s8 }
 0x221   : > { %1552 = vst.msk [vmem:[#allocation3 + $0x1c] sm:$0xf] %vm1544_vm4, %v4807_v29 }
 0x222   : > { %2644 = vst.msk [vmem:[#allocation3 + $0x10] sm:$0xf] %vm2639_vm11, %v4758_v0  ;;  %v2608_v8 = vpop.permute.xlu0 %2607 }
 0x223   : > { %1649 = vst.msk [vmem:[#allocation3 + $0x1c] sm:$0xf] %vm1641_vm5, %v4631_v10  ;;  %v3732_v30 = vld [vmem:[#allocation3 + $0x8] sm:$0xff]  }
 0x224   : > { %1930 = vst.msk [vmem:[#allocation3 + $0x1c] sm:$0xf] %vm1922_vm6, %v4849_v2  ;;  %1928 = vst.msk [vmem:[#allocation3 + $0x14] sm:$0xf] %vm1922_vm6, %v1885_v35  ;;  %3566 = vmatmul.mubr.msk.bf16.vlgmr.msra.gmra.mxu1 %vm2739_vm12, %v3732_v30  ;;  %v2066_v10 = vpop.permute.xlu1 %2065  ;;  %v3363_v30 = vld [vmem:[%s5196_s5] ss:$0 sm:$0xff] }
 0x225   : > { %2099 = vst.msk [vmem:[#allocation3 + $0x1c] sm:$0xf] %vm2091_vm7, %v4766_v48  ;;  %2097 = vst.msk [vmem:[#allocation3 + $0x14] sm:$0xf] %vm2091_vm7, %v4817_v49 }
 0x226   : > { %2197 = vst.msk [vmem:[#allocation3 + $0x1c] sm:$0xf] %vm2189_vm9, %v2156_v25  ;;  %2195 = vst.msk [vmem:[#allocation3 + $0x14] sm:$0xf] %vm2189_vm9, %v4651_v36  ;;  %v1521_v0 = vpop.permute.xlu0 %1520 }
 0x227   : > { %2476 = vst.msk [vmem:[#allocation3 + $0x14] sm:$0xf] %vm2470_vm10, %v4858_v34 }
 0x228   : > { %2645 = vst.msk [vmem:[#allocation3 + $0x14] sm:$0xf] %vm2639_vm11, %v4776_v38  ;;  %v4945_v48 = vpop.permute.xlu1 %2609 }
 0x22a   : > { %v4947_v29 = vpop.permute.xlu0 %1621 }
 0x22c   : > { %v1523_v41 = vpop.permute.xlu1 %1522 }
 0x22e   : > { %v4950_v22 = vpop.permute.xlu0 %2165 }
 0x22f   : > { %v3733_v49 = vld [vmem:[#allocation3 + $0x10] sm:$0xff]  }
 0x230   : > { %3569 = vmatprep.mubr.msk.bf16.mxu1 %vm2739_vm12, %v3733_v49  ;;  %v2606_v36 = vpop.permute.xlu1 %2605 }
 0x232   : > { %v2604_v16 = vpop.permute.xlu0 %2603 }
 0x234   : > { %v1519_v11 = vpop.permute.xlu1 %1518 }
 0x236   : > { %v1517_v2 = vpop.permute.xlu0 %1516 }
 0x238   : > { %v2062_v34 = vpop.permute.xlu1 %2061 }
 0x23a   : > { %v1895_v33 = vpop.permute.xlu0 %1894 }
 0x23c   : > { %v4952_v59 = vpop.permute.xlu1 %1623 }
 0x23e   : > { %v2060_v38 = vpop.permute.xlu0 %2059 }
 0x240   : > { %v4954_v50 = vpop.permute.xlu1 %2167 }
 0x242   : > { %v2439_v53 = vpop.permute.xlu0 %2438 }
 0x244   : > { %v1897_v54 = vpop.permute.xlu1 %1896 }
 0x246   : > { %v1349_v18 = vpop.permute.xlu0 %1348 }
 0x247   : > { %1385 = vst.msk [vmem:[#allocation3 + $0x30] sm:$0xf] %vm1372_vm3, %v1349_v18 }
 0x248   : > { %1557 = vst.msk [vmem:[#allocation3 + $0x30] sm:$0xf] %vm1544_vm4, %v1521_v0  ;;  %v2441_v20 = vpop.permute.xlu1 %2440 }
 0x24a   : > { %v2162_v23 = vpop.permute.xlu0 %2161 }
 0x24c   : > { %v1351_v60 = vpop.permute.xlu1 %1350 }
 0x24d   : > { %1386 = vst.msk [vmem:[#allocation3 + $0x34] sm:$0xf] %vm1372_vm3, %v1351_v60 }
 0x24e   : > { %1558 = vst.msk [vmem:[#allocation3 + $0x34] sm:$0xf] %vm1544_vm4, %v1523_v41  ;;  %v1618_v1 = vpop.permute.xlu0 %1617 }
 0x24f   : > { %1654 = vst.msk [vmem:[#allocation3 + $0x30] sm:$0xf] %vm1641_vm5, %v1618_v1 }
 0x250   : > { %v2164_v40 = vpop.permute.xlu1 %2163 }
 0x252   : > { %v2435_v61 = vpop.permute.xlu0 %2434 }
 0x253   : > { %2477 = vst.msk [vmem:[#allocation3 + $0x18] sm:$0xf] %vm2470_vm10, %v2435_v61 }
 0x254   : > { %2646 = vst.msk [vmem:[#allocation3 + $0x18] sm:$0xf] %vm2639_vm11, %v2604_v16  ;;  %v1620_v62 = vpop.permute.xlu1 %1619 }
 0x255   : > { %1655 = vst.msk [vmem:[#allocation3 + $0x34] sm:$0xf] %vm1641_vm5, %v1620_v62 }
 0x256   : > { %v1345_v47 = vpop.permute.xlu0 %1344 }
 0x257   : > { %1383 = vst.msk [vmem:[#allocation3 + $0x28] sm:$0xf] %vm1372_vm3, %v1345_v47 }
 0x258   : > { %1555 = vst.msk [vmem:[#allocation3 + $0x28] sm:$0xf] %vm1544_vm4, %v1517_v2  ;;  %v2437_v12 = vpop.permute.xlu1 %2436 }
 0x259   : > { %1652 = vst.msk [vmem:[#allocation3 + $0x28] sm:$0xf] %vm1641_vm5, %v4782_v42 }
 0x25a   : > { %2478 = vst.msk [vmem:[#allocation3 + $0x1c] sm:$0xf] %vm2470_vm10, %v2437_v12  ;;  %v1891_v15 = vpop.permute.xlu0 %1890 }
 0x25b   : > { %1933 = vst.msk [vmem:[#allocation3 + $0x28] sm:$0xf] %vm1922_vm6, %v1895_v33  ;;  %1931 = vst.msk [vmem:[#allocation3 + $0x20] sm:$0xf] %vm1922_vm6, %v1891_v15 }
 0x25c   : > { %2647 = vst.msk [vmem:[#allocation3 + $0x1c] sm:$0xf] %vm2639_vm11, %v2606_v36  ;;  %v1347_v51 = vpop.permute.xlu1 %1346 }
 0x25d   : > { %2102 = vst.msk [vmem:[#allocation3 + $0x28] sm:$0xf] %vm2091_vm7, %v2064_v4  ;;  %2100 = vst.msk [vmem:[#allocation3 + $0x20] sm:$0xf] %vm2091_vm7, %v2060_v38 }
 0x25e   : > { %2200 = vst.msk [vmem:[#allocation3 + $0x28] sm:$0xf] %vm2189_vm9, %v2162_v23  ;;  %2198 = vst.msk [vmem:[#allocation3 + $0x20] sm:$0xf] %vm2189_vm9, %v4793_v58  ;;  %v2072_v42 = vpop.permute.xlu0 %2071 }
 0x25f   : > { %1384 = vst.msk [vmem:[#allocation3 + $0x2c] sm:$0xf] %vm1372_vm3, %v1347_v51 }
 0x260   : > { %2479 = vst.msk [vmem:[#allocation3 + $0x20] sm:$0xf] %vm2470_vm10, %v2439_v53  ;;  %v1893_v21 = vpop.permute.xlu1 %1892 }
 0x261   : > { %1556 = vst.msk [vmem:[#allocation3 + $0x2c] sm:$0xf] %vm1544_vm4, %v1519_v11 }
 0x262   : > { %2648 = vst.msk [vmem:[#allocation3 + $0x20] sm:$0xf] %vm2639_vm11, %v2608_v8  ;;  %v2612_v46 = vpop.permute.xlu0 %2611 }
 0x263   : > { %1653 = vst.msk [vmem:[#allocation3 + $0x2c] sm:$0xf] %vm1641_vm5, %v4827_v24  ;;  %v3734_v58 = vld [vmem:[#allocation3 + $0x18] sm:$0xff]  }
 0x264   : > { %1934 = vst.msk [vmem:[#allocation3 + $0x2c] sm:$0xf] %vm1922_vm6, %v1897_v54  ;;  %1932 = vst.msk [vmem:[#allocation3 + $0x24] sm:$0xf] %vm1922_vm6, %v1893_v21  ;;  %3570 = vmatmul.mubr.msk.bf16.gmra.mxu1 %vm2739_vm12, %v3734_v58  ;;  %v2074_v24 = vpop.permute.xlu1 %2073 }
 0x265   : > { %2103 = vst.msk [vmem:[#allocation3 + $0x2c] sm:$0xf] %vm2091_vm7, %v2066_v10  ;;  %2101 = vst.msk [vmem:[#allocation3 + $0x24] sm:$0xf] %vm2091_vm7, %v2062_v34 }
 0x266   : > { %2201 = vst.msk [vmem:[#allocation3 + $0x2c] sm:$0xf] %vm2189_vm9, %v2164_v40  ;;  %2199 = vst.msk [vmem:[#allocation3 + $0x24] sm:$0xf] %vm2189_vm9, %v4837_v3  ;;  %v1525_v19 = vpop.permute.xlu0 %1524  ;;  %v2889_v3 = vld [vmem:[%s5194_s3] sm:$0x3] }
 0x267   : > { %2480 = vst.msk [vmem:[#allocation3 + $0x24] sm:$0xf] %vm2470_vm10, %v2441_v20  ;;  %3600 = vmatprep.subr.msk.bf16.mxu0 %vm2764_vm8, %v2889_v3  ;;  %v2955_v37 = vsel %vm2764_vm8, %v2889_v3, 0 }
 0x268   : > { %2649 = vst.msk [vmem:[#allocation3 + $0x24] sm:$0xf] %vm2639_vm11, %v4945_v48  ;;  %v2614_v32 = vpop.permute.xlu1 %2613  ;;  %3582 = vmatpush3.bf16.msra.mxu0 %v2955_v37 }
 0x26a   : > { %v1903_v17 = vpop.permute.xlu0 %1902 }
 0x26c   : > { %v1527_v57 = vpop.permute.xlu1 %1526 }
 0x26e   : > { %v2068_v52 = vpop.permute.xlu0 %2067 }
 0x26f   : > { %v3735_v25 = vld [vmem:[#allocation3 + $0x20] sm:$0xff]  }
 0x270   : > { %3573 = vmatprep.mubr.msk.bf16.mxu1 %vm2739_vm12, %v3735_v25  ;;  %v2070_v13 = vpop.permute.xlu1 %2069 }
 0x272   : > { %v2447_v55 = vpop.permute.xlu0 %2446 }
 0x274   : > { %v1905_v39 = vpop.permute.xlu1 %1904 }
 0x276   : > { %v2443_v7 = vpop.permute.xlu0 %2442 }
 0x277   : > { %2481 = vst.msk [vmem:[#allocation3 + $0x28] sm:$0xf] %vm2470_vm10, %v2443_v7 }
 0x278   : > { %2650 = vst.msk [vmem:[#allocation3 + $0x28] sm:$0xf] %vm2639_vm11, %v2612_v46  ;;  %v2449_v27 = vpop.permute.xlu1 %2448 }
 0x27a   : > { %v1353_v45 = vpop.permute.xlu0 %1352 }
 0x27b   : > { %1387 = vst.msk [vmem:[#allocation3 + $0x38] sm:$0xf] %vm1372_vm3, %v1353_v45 }
 0x27c   : > { %1559 = vst.msk [vmem:[#allocation3 + $0x38] sm:$0xf] %vm1544_vm4, %v1525_v19  ;;  %v2445_v44 = vpop.permute.xlu1 %2444 }
 0x27d   : > { %1656 = vst.msk [vmem:[#allocation3 + $0x38] sm:$0xf] %vm1641_vm5, %v4947_v29 }
 0x27e   : > { %2482 = vst.msk [vmem:[#allocation3 + $0x2c] sm:$0xf] %vm2470_vm10, %v2445_v44  ;;  %v1899_v28 = vpop.permute.xlu0 %1898 }
 0x27f   : > { %1937 = vst.msk [vmem:[#allocation3 + $0x38] sm:$0xf] %vm1922_vm6, %v1903_v17  ;;  %1935 = vst.msk [vmem:[#allocation3 + $0x30] sm:$0xf] %vm1922_vm6, %v1899_v28 }
 0x280   : > { %2651 = vst.msk [vmem:[#allocation3 + $0x2c] sm:$0xf] %vm2639_vm11, %v2614_v32  ;;  %v1355_v63 = vpop.permute.xlu1 %1354 }
 0x281   : > { %2106 = vst.msk [vmem:[#allocation3 + $0x38] sm:$0xf] %vm2091_vm7, %v2072_v42  ;;  %2104 = vst.msk [vmem:[#allocation3 + $0x30] sm:$0xf] %vm2091_vm7, %v2068_v52 }
 0x282   : > { %2204 = vst.msk [vmem:[#allocation3 + $0x38] sm:$0xf] %vm2189_vm9, %v4602_v9  ;;  %2202 = vst.msk [vmem:[#allocation3 + $0x30] sm:$0xf] %vm2189_vm9, %v4950_v22  ;;  %v2616_v26 = vpop.permute.xlu0 %2615 }
 0x283   : > { %2485 = vst.msk [vmem:[#allocation3 + $0x38] sm:$0xf] %vm2470_vm10, %v4864_v56  ;;  %2483 = vst.msk [vmem:[#allocation3 + $0x30] sm:$0xf] %vm2470_vm10, %v2447_v55 }
 0x284   : > { %1388 = vst.msk [vmem:[#allocation3 + $0x3c] sm:$0xf] %vm1372_vm3, %v1355_v63  ;;  %v1901_v9 = vpop.permute.xlu1 %1900 }
 0x285   : > { %1560 = vst.msk [vmem:[#allocation3 + $0x3c] sm:$0xf] %vm1544_vm4, %v1527_v57 }
 0x286   : > { %1657 = vst.msk [vmem:[#allocation3 + $0x3c] sm:$0xf] %vm1641_vm5, %v4952_v59  ;;  %v2620_v14 = vpop.permute.xlu0 %2619 }
 0x287   : > { %2652 = vst.msk [vmem:[#allocation3 + $0x30] sm:$0xf] %vm2639_vm11, %v2616_v26  ;;  %v3736_v56 = vld [vmem:[#allocation3 + $0x28] sm:$0xff]   ;;  %2654 = vst.msk [vmem:[#allocation3 + $0x38] sm:$0xf] %vm2639_vm11, %v2620_v14 }
 0x288   : > { %1938 = vst.msk [vmem:[#allocation3 + $0x3c] sm:$0xf] %vm1922_vm6, %v1905_v39  ;;  %1936 = vst.msk [vmem:[#allocation3 + $0x34] sm:$0xf] %vm1922_vm6, %v1901_v9  ;;  %3574 = vmatmul.mubr.msk.bf16.gmra.mxu1 %vm2739_vm12, %v3736_v56  ;;  %v2618_v31 = vpop.permute.xlu1 %2617  ;;  %v3489_v9 = vld [vmem:[%s4074_s19 + $0x8] sm:$0xff]   ;;  %v3458_v14 = vld [vmem:[%s4074_s19] sm:$0xff]  }
 0x289   : > { %2107 = vst.msk [vmem:[#allocation3 + $0x3c] sm:$0xf] %vm2091_vm7, %v2074_v24  ;;  %2105 = vst.msk [vmem:[#allocation3 + $0x34] sm:$0xf] %vm2091_vm7, %v2070_v13  ;;  %v5056_v56 = vld [vmem:[%s5197_s6] ss:$0 sm:$0xff] }
 0x28a   : > { %2205 = vst.msk [vmem:[#allocation3 + $0x3c] sm:$0xf] %vm2189_vm9, %v4669_v5  ;;  %2203 = vst.msk [vmem:[#allocation3 + $0x34] sm:$0xf] %vm2189_vm9, %v4954_v50 }
 0x28b   : > { %2486 = vst.msk [vmem:[#allocation3 + $0x3c] sm:$0xf] %vm2470_vm10, %v4877_v43  ;;  %2484 = vst.msk [vmem:[#allocation3 + $0x34] sm:$0xf] %vm2470_vm10, %v2449_v27 }
 0x28c   : > { %2653 = vst.msk [vmem:[#allocation3 + $0x34] sm:$0xf] %vm2639_vm11, %v2618_v31  ;;  %v2622_v6 = vpop.permute.xlu1 %2621  ;;  %v3463_v31 = vunpack.c.l.bf16 %v3489_v9 }
 0x28d   : > { %2655 = vst.msk [vmem:[#allocation3 + $0x3c] sm:$0xf] %vm2639_vm11, %v2622_v6 }
 0x293   : > { %v3737_v5 = vld [vmem:[#allocation3 + $0x30] sm:$0xff]  }
 0x294   : > { %3577 = vmatprep.mubr.msk.bf16.mxu1 %vm2739_vm12, %v3737_v5  ;;  %v3738_v4 = vld [vmem:[#allocation3 + $0x38] sm:$0xff]  }
 0x295   : > { %3578 = vmatmul.mubr.msk.bf16.gmra.mxu1 %vm2739_vm12, %v3738_v4  ;;  %v3459_v4 = vunpack.c.l.bf16 %v3458_v14 }
 0x2e4   : > { %v3567_v35 = vpop.f32.mrf.mxu1 }
 0x2e5   : > { %v2811_v48 = vadd.f32 %v3567_v35, %v3363_v30 }
 0x2e6   : > { %v2802_v43 = vpop.f32.mrf.mxu1 }
 0x2e7   : > { %v2803_v10 = vadd.f32 %v3363_v30, %v2802_v43  ;;  %v2867_v16 = vmax.f32 %v2811_v48, 0.0 }
 0x2e8   : > { %v3568_v8 = vpop.f32.mrf.mxu1 }
 0x2e9   : > { %v2814_v0 = vadd.f32 %v3568_v8, %v3363_v30  ;;  %v2865_v22 = vmax.f32 %v2803_v10, 0.0  ;;  %v3464_v8 = vunpack.c.h.bf16 %v3489_v9 }
 0x2ea   : > { %v2805_v29 = vpop.f32.mrf.mxu1 }
 0x2eb   : > { %v2806_v41 = vadd.f32 %v3363_v30, %v2805_v29  ;;  %v2868_v49 = vmax.f32 %v2814_v0, 0.0 }
 0x2ed   : > { %v2866_v36 = vmax.f32 %v2806_v41, 0.0  ;;  %v2882_v2 = vpack.c.bf16 %v2868_v49, %v2867_v16  ;;  %v3460_v41 = vunpack.c.h.bf16 %v3458_v14 }
 0x2ef   : > { %v2881_v11 = vpack.c.bf16 %v2866_v36, %v2865_v22 }
 0x2f1   : > { %3583 = vmatprep.mubr.msk.bf16.mxu0 %vm2929_vm13, %v2881_v11 }
 0x2f2   : > { %3584 = vmatmul.mubr.msk.bf16.vlgmr.msra.gmra.mxu0 %vm2929_vm13, %v2882_v2 }
 0x324   : > { %v3571_v34 = vpop.f32.mrf.mxu1 }
 0x325   : > { %v2827_v53 = vadd.f32 %v3571_v34, %v3363_v30 }
 0x326   : > { %v2818_v33 = vpop.f32.mrf.mxu1 }
 0x327   : > { %v2819_v38 = vadd.f32 %v3363_v30, %v2818_v33  ;;  %v2871_v1 = vmax.f32 %v2827_v53, 0.0  ;;  %v3491_v53 = vld [vmem:[%s4074_s19 + $0x18] sm:$0xff]  }
 0x328   : > { %v3572_v59 = vpop.f32.mrf.mxu1 }
 0x329   : > { %v2830_v50 = vadd.f32 %v3572_v59, %v3363_v30  ;;  %v2869_v23 = vmax.f32 %v2819_v38, 0.0 }
 0x32a   : > { %v2821_v54 = vpop.f32.mrf.mxu1 }
 0x32b   : > { %v2822_v18 = vadd.f32 %v3363_v30, %v2821_v54  ;;  %v2872_v20 = vmax.f32 %v2830_v50, 0.0  ;;  %v3490_v54 = vld [vmem:[%s4074_s19 + $0x10] sm:$0xff]  }
 0x32d   : > { %v2870_v60 = vmax.f32 %v2822_v18, 0.0  ;;  %v2884_v61 = vpack.c.bf16 %v2872_v20, %v2871_v1  ;;  %v3471_v18 = vunpack.c.l.bf16 %v3491_v53 }
 0x32f   : > { %v2883_v40 = vpack.c.bf16 %v2870_v60, %v2869_v23  ;;  %v3467_v60 = vunpack.c.l.bf16 %v3490_v54 }
 0x331   : > { %3587 = vmatprep.mubr.msk.bf16.mxu0 %vm2929_vm13, %v2883_v40 }
 0x332   : > { %3588 = vmatmul.mubr.msk.bf16.gmra.mxu0 %vm2929_vm13, %v2884_v61 }
 0x348   : > { %v3575_v62 = vpop.f32.mrf.mxu1 }
 0x349   : > { %v2843_v42 = vadd.f32 %v3575_v62, %v3363_v30  ;;  %v3472_v62 = vunpack.c.h.bf16 %v3491_v53 }
 0x34a   : > { %v2834_v47 = vpop.f32.mrf.mxu1 }
 0x34b   : > { %v2835_v15 = vadd.f32 %v3363_v30, %v2834_v47  ;;  %v2875_v32 = vmax.f32 %v2843_v42, 0.0  ;;  %v3468_v42 = vunpack.c.h.bf16 %v3490_v54 }
 0x34c   : > { %v3576_v12 = vpop.f32.mrf.mxu1 }
 0x34d   : > { %v2846_v51 = vadd.f32 %v3576_v12, %v3363_v30  ;;  %v2873_v24 = vmax.f32 %v2835_v15, 0.0 }
 0x34e   : > { %v2837_v21 = vpop.f32.mrf.mxu1 }
 0x34f   : > { %v2838_v58 = vadd.f32 %v3363_v30, %v2837_v21  ;;  %v2876_v46 = vmax.f32 %v2846_v51, 0.0 }
 0x351   : > { %v2874_v19 = vmax.f32 %v2838_v58, 0.0  ;;  %v2886_v57 = vpack.c.bf16 %v2876_v46, %v2875_v32 }
 0x353   : > { %v2885_v17 = vpack.c.bf16 %v2874_v19, %v2873_v24 }
 0x355   : > { %3591 = vmatprep.mubr.msk.bf16.mxu0 %vm2929_vm13, %v2885_v17  ;;  %v3579_v25 = vpop.f32.mrf.mxu1 }
 0x356   : > { %3592 = vmatmul.mubr.msk.bf16.gmra.mxu0 %vm2929_vm13, %v2886_v57  ;;  %v2859_v55 = vadd.f32 %v3579_v25, %v3363_v30 }
 0x357   : > { %v2850_v52 = vpop.f32.mrf.mxu1 }
 0x358   : > { %v2851_v37 = vadd.f32 %v3363_v30, %v2850_v52  ;;  %v2879_v28 = vmax.f32 %v2859_v55, 0.0 }
 0x359   : > { %v3580_v3 = vpop.f32.mrf.mxu1 }
 0x35a   : > { %v2862_v13 = vadd.f32 %v3580_v3, %v3363_v30  ;;  %v2877_v45 = vmax.f32 %v2851_v37, 0.0  ;;  %v3493_v37 = vld [vmem:[%s4074_s19 + $0x28] sm:$0xff]  }
 0x35b   : > { %v2853_v39 = vpop.f32.mrf.mxu1  ;;  %v3479_v55 = vunpack.c.l.bf16 %v3493_v37 }
 0x35c   : > { %v2854_v7 = vadd.f32 %v3363_v30, %v2853_v39  ;;  %v2880_v27 = vmax.f32 %v2862_v13, 0.0  ;;  %v3492_v13 = vld [vmem:[%s4074_s19 + $0x20] sm:$0xff]  }
 0x35e   : > { %v2878_v44 = vmax.f32 %v2854_v7, 0.0  ;;  %v2888_v26 = vpack.c.bf16 %v2880_v27, %v2879_v28  ;;  %v3475_v27 = vunpack.c.l.bf16 %v3492_v13 }
 0x360   : > { %v2887_v63 = vpack.c.bf16 %v2878_v44, %v2877_v45 }
 0x362   : > { %3595 = vmatprep.mubr.msk.bf16.mxu0 %vm2929_vm13, %v2887_v63  ;;  %v3480_v63 = vunpack.c.h.bf16 %v3493_v37 }
 0x363   : > { %3596 = vmatmul.mubr.msk.bf16.gmra.mxu0 %vm2929_vm13, %v2888_v26 }
 0x3b2   : > { %v3585_v6 = vpop.f32.mrf.mxu0 }
 0x3b3   : > { %v3000_v5 = vadd.f32 %v3585_v6, %v5056_v56  ;;  %v3476_v6 = vunpack.c.h.bf16 %v3492_v13 }
 0x3b4   : > { %v2991_v35 = vpop.f32.mrf.mxu0 }
 0x3b5   : > { %v3056_v43 = vadd.f32 %v3463_v31, %v3000_v5  ;;  %v2992_v30 = vadd.f32 %v5056_v56, %v2991_v35 }
 0x3b6   : > { %v3586_v10 = vpop.f32.mrf.mxu0 }
 0x3b7   : > { %v3072_v0 = vmax.f32 %v3056_v43, 0.0  ;;  %v3054_v48 = vadd.f32 %v3459_v4, %v2992_v30  ;;  %v3003_v29 = vadd.f32 %v3586_v10, %v5056_v56 }
 0x3b8   : > { %v2994_v49 = vpop.f32.mrf.mxu0 }
 0x3b9   : > { %v3442_v22 = vpack.c.bf16 %v3072_v0, %v3072_v0  ;;  %v3070_v36 = vmax.f32 %v3054_v48, 0.0  ;;  %v3057_v16 = vadd.f32 %v3464_v8, %v3003_v29  ;;  %v2995_v11 = vadd.f32 %v5056_v56, %v2994_v49 }
 0x3bb   : > { %3153 = vst.msk [vmem:[%s5066_s16 + $0x8] sm:$0xf] %vm3150_vm14, %v3442_v22  ;;  %v3440_v2 = vpack.c.bf16 %v3070_v36, %v3070_v36  ;;  %v3073_v34 = vmax.f32 %v3057_v16, 0.0  ;;  %v3055_v33 = vadd.f32 %v3460_v41, %v2995_v11  ;;  %v3495_v41 = vld [vmem:[%s4074_s19 + $0x38] sm:$0xff]   ;;  %v3494_v22 = vld [vmem:[%s4074_s19 + $0x30] sm:$0xff]   ;;  %s3181_s19 = sadd.s32 %s3456_s22, %s3411_s7  ;;  %s3768_s22 = scalar_lea.vmem %s5117_s13, 1024 }
 0x3bc   : > { %v3487_v36 = vunpack.c.l.bf16 %v3495_v41  ;;  %s3412_s20 = sshll.u32 %s3181_s19, 6  ;;  %p3769_p9 = scmp.ne.s32.totalorder %s5117_s13, %s3768_s22 }
 0x3bd   : > { %3151 = vst.msk [vmem:[%s5066_s16] sm:$0xf] %vm3150_vm14, %v3440_v2  ;;  %v3443_v59 = vpack.c.bf16 %v3073_v34, %v3073_v34  ;;  %v3071_v38 = vmax.f32 %v3055_v33, 0.0  ;;  %v3483_v2 = vunpack.c.l.bf16 %v3494_v22  ;;  %s5124_s10 = scalar_lea.hbm %s5237_s8, %s3412_s20  ;;  %s3903_s7 = smov [#allocation7]  }
 0x3be   : > { %p3770_p10 = pnand %p3769_p9, %p4027_p12  ;;  %s3772_s19 = sshll.u32 %s3903_s7, 4  ;;  %s3773_s19 = int_to_ptr.vmem [resolvable:$false] %s3772_s19 }
 0x3bf   : > { %3154 = vst.msk [vmem:[%s5066_s16 + $0xc] sm:$0xf] %vm3150_vm14, %v3443_v59  ;;  %v3441_v50 = vpack.c.bf16 %v3071_v38, %v3071_v38  ;;  %v3488_v38 = vunpack.c.h.bf16 %v3495_v41  ;;  %s3774_s17 = scalar_lea.vmem %s3773_s19, 2048  ;;  %p3775_p13 = scmp.lt.s32.totalorder %s5117_s13, %s3773_s19 }
 0x3c0   : > { %p3771_p11 = pneg %p3770_p10  ;;  %p3776_p0 = scmp.lt.s32.totalorder %s3774_s17, %s3768_s22 }
 0x3c1   : > { %3152 = vst.msk [vmem:[%s5066_s16 + $0x4] sm:$0xf] %vm3150_vm14, %v3441_v50 }
 0x3c2   : > { %p3777_p3 = por %p3776_p0, %p3775_p13 }
 0x3c4   : > { %p3778_p1 = pnand %p3777_p3, %p3771_p11 }
 0x3f2   : > { %v3589_v20 = vpop.f32.mrf.mxu0 }
 0x3f3   : > { %v3016_v23 = vadd.f32 %v3589_v20, %v5056_v56  ;;  %v3484_v20 = vunpack.c.h.bf16 %v3494_v22 }
 0x3f4   : > { %v3007_v1 = vpop.f32.mrf.mxu0 }
 0x3f5   : > { %v3060_v40 = vadd.f32 %v3471_v18, %v3016_v23  ;;  %v3008_v61 = vadd.f32 %v5056_v56, %v3007_v1 }
 0x3f6   : > { %v3590_v47 = vpop.f32.mrf.mxu0 }
 0x3f7   : > { %v3076_v12 = vmax.f32 %v3060_v40, 0.0  ;;  %v3058_v15 = vadd.f32 %v3467_v60, %v3008_v61  ;;  %v3019_v51 = vadd.f32 %v3590_v47, %v5056_v56 }
 0x3f8   : > { %v3010_v21 = vpop.f32.mrf.mxu0 }
 0x3f9   : > { %v3446_v58 = vpack.c.bf16 %v3076_v12, %v3076_v12  ;;  %v3074_v46 = vmax.f32 %v3058_v15, 0.0  ;;  %v3061_v24 = vadd.f32 %v3472_v62, %v3019_v51  ;;  %v3011_v19 = vadd.f32 %v5056_v56, %v3010_v21 }
 0x3fb   : > { %3157 = vst.msk [vmem:[%s5066_s16 + $0x18] sm:$0xf] %vm3150_vm14, %v3446_v58  ;;  %v3444_v32 = vpack.c.bf16 %v3074_v46, %v3074_v46  ;;  %v3077_v17 = vmax.f32 %v3061_v24, 0.0  ;;  %v3059_v57 = vadd.f32 %v3468_v42, %v3011_v19 }
 0x3fd   : > { %3155 = vst.msk [vmem:[%s5066_s16 + $0x10] sm:$0xf] %vm3150_vm14, %v3444_v32  ;;  %v3447_v25 = vpack.c.bf16 %v3077_v17, %v3077_v17  ;;  %v3075_v52 = vmax.f32 %v3059_v57, 0.0 }
 0x3ff   : > { %3158 = vst.msk [vmem:[%s5066_s16 + $0x1c] sm:$0xf] %vm3150_vm14, %v3447_v25  ;;  %v3445_v3 = vpack.c.bf16 %v3075_v52, %v3075_v52 }
 0x401   : > { %3156 = vst.msk [vmem:[%s5066_s16 + $0x14] sm:$0xf] %vm3150_vm14, %v3445_v3 }
 0x416   : > { %v3593_v39 = vpop.f32.mrf.mxu0 }
 0x417   : > { %v3032_v7 = vadd.f32 %v3593_v39, %v5056_v56 }
 0x418   : > { %v3023_v45 = vpop.f32.mrf.mxu0 }
 0x419   : > { %v3064_v44 = vadd.f32 %v3479_v55, %v3032_v7  ;;  %v3024_v28 = vadd.f32 %v5056_v56, %v3023_v45 }
 0x41a   : > { %v3594_v26 = vpop.f32.mrf.mxu0 }
 0x41b   : > { %v3080_v9 = vmax.f32 %v3064_v44, 0.0  ;;  %v3062_v14 = vadd.f32 %v3475_v27, %v3024_v28  ;;  %v3035_v31 = vadd.f32 %v3594_v26, %v5056_v56 }
 0x41c   : > { %v3026_v5 = vpop.f32.mrf.mxu0 }
 0x41d   : > { %v3450_v4 = vpack.c.bf16 %v3080_v9, %v3080_v9  ;;  %v3078_v35 = vmax.f32 %v3062_v14, 0.0  ;;  %v3065_v43 = vadd.f32 %v3480_v63, %v3035_v31  ;;  %v3027_v30 = vadd.f32 %v5056_v56, %v3026_v5 }
 0x41f   : > { %3161 = vst.msk [vmem:[%s5066_s16 + $0x28] sm:$0xf] %vm3150_vm14, %v3450_v4  ;;  %v3448_v8 = vpack.c.bf16 %v3078_v35, %v3078_v35  ;;  %v3081_v10 = vmax.f32 %v3065_v43, 0.0  ;;  %v3063_v0 = vadd.f32 %v3476_v6, %v3027_v30 }
 0x421   : > { %3159 = vst.msk [vmem:[%s5066_s16 + $0x20] sm:$0xf] %vm3150_vm14, %v3448_v8  ;;  %v3451_v48 = vpack.c.bf16 %v3081_v10, %v3081_v10  ;;  %v3079_v29 = vmax.f32 %v3063_v0, 0.0 }
 0x423   : > { %3162 = vst.msk [vmem:[%s5066_s16 + $0x2c] sm:$0xf] %vm3150_vm14, %v3451_v48  ;;  %v3449_v49 = vpack.c.bf16 %v3079_v29, %v3079_v29  ;;  %v3597_v16 = vpop.f32.mrf.mxu0 }
 0x424   : > { %v3048_v11 = vadd.f32 %v3597_v16, %v5056_v56 }
 0x425   : > { %3160 = vst.msk [vmem:[%s5066_s16 + $0x24] sm:$0xf] %vm3150_vm14, %v3449_v49  ;;  %v3039_v34 = vpop.f32.mrf.mxu0 }
 0x426   : > { %v3068_v33 = vadd.f32 %v3487_v36, %v3048_v11  ;;  %v3040_v59 = vadd.f32 %v5056_v56, %v3039_v34 }
 0x427   : > { %v3598_v50 = vpop.f32.mrf.mxu0 }
 0x428   : > { %v3084_v53 = vmax.f32 %v3068_v33, 0.0  ;;  %v3066_v54 = vadd.f32 %v3483_v2, %v3040_v59  ;;  %v3051_v18 = vadd.f32 %v3598_v50, %v5056_v56 }
 0x429   : > { %v3042_v23 = vpop.f32.mrf.mxu0 }
 0x42a   : > { %v3454_v60 = vpack.c.bf16 %v3084_v53, %v3084_v53  ;;  %v3082_v1 = vmax.f32 %v3066_v54, 0.0  ;;  %v3069_v40 = vadd.f32 %v3488_v38, %v3051_v18  ;;  %v3043_v61 = vadd.f32 %v5056_v56, %v3042_v23 }
 0x42c   : > { %3165 = vst.msk [vmem:[%s5066_s16 + $0x38] sm:$0xf] %vm3150_vm14, %v3454_v60  ;;  %v3452_v62 = vpack.c.bf16 %v3082_v1, %v3082_v1  ;;  %v3085_v47 = vmax.f32 %v3069_v40, 0.0  ;;  %v3067_v12 = vadd.f32 %v3484_v20, %v3043_v61 }
 0x42e   : > { %3163 = vst.msk [vmem:[%s5066_s16 + $0x30] sm:$0xf] %vm3150_vm14, %v3452_v62  ;;  %v3455_v15 = vpack.c.bf16 %v3085_v47, %v3085_v47  ;;  %v3083_v51 = vmax.f32 %v3067_v12, 0.0 }
 0x430   : > { %3166 = vst.msk [vmem:[%s5066_s16 + $0x3c] sm:$0xf] %vm3150_vm14, %v3455_v15  ;;  %v3453_v56 = vpack.c.bf16 %v3083_v51, %v3083_v51 }
 0x432   : > { %3164 = vst.msk [vmem:[%s5066_s16 + $0x34] sm:$0xf] %vm3150_vm14, %v3453_v56 }
 0x433   : > { %3781 = shalt.err (!%p3778_p1)
}
 0x434   : > { %s3782_s12 = scalar_lea.hbm %s5124_s10, 1024  ;;  %s3786_s15 = scalar_lea.hbm %s5238_s23, 4096 }
 0x435   : > { %p3783_p6 = scmp.ne.s32.totalorder %s5124_s10, %s3782_s12  ;;  %p3787_p7 = scmp.lt.s32.totalorder %s5124_s10, %s5238_s23 }
 0x436   : > { %p3788_p8 = scmp.lt.s32.totalorder %s3786_s15, %s3782_s12 }
 0x437   : > { %p3784_p4 = pnand %p3783_p6, %p4027_p12 }
 0x438   : > { %p3789_p9 = por %p3788_p8, %p3787_p7 }
 0x439   : > { %p3785_p5 = pneg %p3784_p4 }
 0x43b   : > { %p3790_p10 = pnand %p3789_p9, %p3785_p5 }
 0x43d   : > { %3793 = shalt.err (!%p3790_p10)
}
 0x43e   : > { %s3904_s17 = smov 64   ;;  %s5239_s22 = smov 4  }
 0x43f   : > { %3603 = dma.vmem_to_hbm [thread:$0]  (%p4027_p12), %s5117_s13, 1024, %s5124_s10, %s5130_s21, %s3904_s17, %s3904_s17, %s5239_s22  }
 0x440 PF: > { %p3614_p11 = scmp.ge.s32.totalorder %s3888_s11, 2  ;;  %s3199_s7 = sand.u32 1, %s3848_s24  }
 0x441   : > { %s3200_s19 = scalar_lea.sflag [#allocation6], %s3199_s7 }
 0x442   : > { %p3610_p13 = pnand %p3614_p11, %p4040_p2 }
 0x444   : > { %p3611_p0 = pneg %p3610_p13 }
 0x446   : > { %3843 = dma.done.wait (%p3611_p0), %s3200_s19, 1024  }
 0x447   : > { %3845 = vsyncadd (%p3611_p0), %s3200_s19, 4294966272  ;;  %s23_s11 = sadd.s32 1, %s3888_s11   ;;  %s5240_s30 = smov %s4032_s27 }
 0x448   : > { %p20_p3 = scmp.ge.s32.totalorder %s23_s11, 6   ;;  %s5241_s13 = sld [smem:[#allocation11_spill]] }
 0x449   : > { %s5242_s8 = sld [smem:[#allocation12_spill]]  ;;  %s5245_s24 = smov %s3852_s25 }
 0x44a   : > { %s5243_s9 = sld [smem:[#allocation13_spill]]  ;;  %s5246_s25 = smov %s3856_s26 }
 0x44b   : > { %s5244_s10 = sld [smem:[#allocation14_spill]]  ;;  %s5247_s26 = smov %s4035_s14 }
 0x44c   : > { %s5248_s27 = smov %s3864_s28  ;;  %s5249_s28 = smov %s3868_s29 }
 0x44d   : > { %s5250_s29 = smov %s5240_s30  ;;  %22 = sbr.rel (!%p20_p3) target bundleno = 11 (0xb), region = 99 }
 0x44e   : > { %s5251_s30 = smov %s5241_s13 }
 0x452   :  { %3205 = vsyncpa [#allocation5], 1 }
 0x453   :  { %3207 = vsyncpa [#allocation5 + $0x1], 1 }
 0x454   :  { %3208 = vsyncpa [#allocation6], 1 }
 0x455   :  { %3210 = vsyncpa [#allocation6 + $0x1], 1 }

</bundles_post_ra>
